<compile_context>
chip_gen: v7x
topology: tpu7x:2x2x1
jax: 0.10.0
libtpu: 0.0.40
codegen_flags: <defaults>
</compile_context>

<pallas_src>
import functools

import jax
import jax.numpy as jnp
from jax.experimental import pallas as pl
from jax.experimental.pallas import tpu as pltpu

BN_EPS = 1e-3                    # BatchNorm3d(eps=0.001) in the module
_VMEM_LIMIT = 32 * 1024 * 1024   # above v5e's 16 MiB scoped default


# ---------------------------------------------------------------------------
# Kernel 1: fused (rows, K) @ (K, Cout) matmul + folded-BN + ReLU (stage 1).
# ---------------------------------------------------------------------------
def _mm_bn_relu_kernel(x_ref, w_ref, s_ref, b_ref, o_ref):
    y = jnp.dot(x_ref[...], w_ref[...], preferred_element_type=jnp.float32)
    y = y * s_ref[...] + b_ref[...]
    o_ref[...] = jnp.maximum(y, 0.0).astype(o_ref.dtype)


def _choose_row_tile(m, cap=2048):
    """Largest multiple-of-8 row tile <= cap that divides m, then shrink until
    there are >=4 grid steps (v7x dual-TC: >=2 pipelined steps per core)."""
    if m <= 8:
        return m, False
    cap = min(cap, m)
    tm = None
    for cand in range(cap - cap % 8, 7, -8):
        if m % cand == 0:
            tm = cand
            break
    if tm is None:                       # ragged fallback: pad rows
        return min(cap, 512), True
    while m // tm < 4 and tm % 16 == 0:
        tm //= 2
    return tm, False


def conv1x1_bn_relu(x2d, w, scale, bias, out_dtype=jnp.bfloat16):
    """out = relu((x2d @ w) * scale + bias); bf16 operands, f32 accumulation."""
    m, k = x2d.shape
    cout = w.shape[1]
    tm, need_pad = _choose_row_tile(m)
    mp = m
    if need_pad:
        mp = ((m + tm - 1) // tm) * tm
        x2d = jnp.pad(x2d, ((0, mp - m), (0, 0)))
    out = pl.pallas_call(
        _mm_bn_relu_kernel,
        out_shape=jax.ShapeDtypeStruct((mp, cout), out_dtype),
        grid=(mp // tm,),
        in_specs=[
            pl.BlockSpec((tm, k), lambda i: (i, 0)),
            pl.BlockSpec((k, cout), lambda i: (0, 0)),
            pl.BlockSpec((1, cout), lambda i: (0, 0)),
            pl.BlockSpec((1, cout), lambda i: (0, 0)),
        ],
        out_specs=pl.BlockSpec((tm, cout), lambda i: (i, 0)),
        compiler_params=pltpu.CompilerParams(
            dimension_semantics=("parallel",),
            vmem_limit_bytes=_VMEM_LIMIT),
    )(x2d, w, scale, bias)
    return out[:m] if need_pad else out


# ---------------------------------------------------------------------------
# Kernel 2: 3x3x3 conv (pad=1, stride=1) + BN + ReLU.
# grid = (N, D, 3); kd is the innermost ("arbitrary") axis.  Per kd the 9
# (kh,kw) windows of the padded depth frame are packed along channels in VMEM
# and fed to the MXU as one K = 9*cin matmul accumulating into f32 scratch.
# ---------------------------------------------------------------------------
def _conv3x3x3_kernel(x_ref, w_ref, s_ref, b_ref, o_ref, acc_ref, *, h, w, cin):
    t = pl.program_id(2)

    @pl.when(t == 0)
    def _init():
        acc_ref[...] = jnp.zeros_like(acc_ref)

    taps = [x_ref[kh:kh + h, kw:kw + w, :]
            for kh in range(3) for kw in range(3)]
    packed = jnp.concatenate(taps, axis=-1).reshape(h * w, 9 * cin)
    acc_ref[...] += jnp.dot(packed, w_ref[t],
                            preferred_element_type=jnp.float32)

    @pl.when(t == pl.num_programs(2) - 1)
    def _finish():
        y = acc_ref[...] * s_ref[...] + b_ref[...]
        o_ref[...] = jnp.maximum(y, 0.0).reshape(h, w, -1).astype(o_ref.dtype)


def conv3x3x3_bn_relu(h5, w_packed, scale, bias, out_dtype=jnp.bfloat16):
    """h5: (N,D,H,W,Cin) bf16.  w_packed: (3, 9*Cin, Coutp) bf16 (kd-major)."""
    n, d, h, wd, cin = h5.shape
    coutp = w_packed.shape[2]
    xp = jnp.pad(h5, ((0, 0), (1, 1), (1, 1), (1, 1), (0, 0)))  # zero pad D/H/W
    hp, wp = h + 2, wd + 2
    kernel = functools.partial(_conv3x3x3_kernel, h=h, w=wd, cin=cin)
    return pl.pallas_call(
        kernel,
        out_shape=jax.ShapeDtypeStruct((n, d, h, wd, coutp), out_dtype),
        grid=(n, d, 3),
        in_specs=[
            pl.BlockSpec((None, None, hp, wp, cin),
                         lambda i, j, t: (i, j + t, 0, 0, 0)),
            pl.BlockSpec((3, 9 * cin, coutp), lambda i, j, t: (0, 0, 0)),
            pl.BlockSpec((1, coutp), lambda i, j, t: (0, 0)),
            pl.BlockSpec((1, coutp), lambda i, j, t: (0, 0)),
        ],
        out_specs=pl.BlockSpec((None, None, h, wd, coutp),
                               lambda i, j, t: (i, j, 0, 0, 0)),
        scratch_shapes=[pltpu.VMEM((h * wd, coutp), jnp.float32)],
        compiler_params=pltpu.CompilerParams(
            dimension_semantics=("parallel", "parallel", "arbitrary"),
            vmem_limit_bytes=_VMEM_LIMIT),
    )(xp, w_packed, scale, bias)


# ---------------------------------------------------------------------------
# Kernel 3: MaxPool3d(3, stride=1, pad=1) fused with 1x1x1 conv + BN + ReLU.
# grid = (N, D, 3); separable in-plane max per depth frame, f32 pool
# accumulator across the 3 kd frames, one matmul + BN + ReLU at finalize.
# ---------------------------------------------------------------------------
def _maxpool_conv1x1_kernel(x_ref, w_ref, s_ref, b_ref, o_ref, pool_ref, *, h, w):
    t = pl.program_id(2)
    m1 = jnp.maximum(jnp.maximum(x_ref[:, 0:w, :], x_ref[:, 1:w + 1, :]),
                     x_ref[:, 2:w + 2, :])                    # (h+2, w, cin)
    m2 = jnp.maximum(jnp.maximum(m1[0:h], m1[1:h + 1]), m1[2:h + 2])
    m2 = m2.reshape(h * w, -1).astype(jnp.float32)

    @pl.when(t == 0)
    def _init():
        pool_ref[...] = m2

    @pl.when(t != 0)
    def _update():
        pool_ref[...] = jnp.maximum(pool_ref[...], m2)

    @pl.when(t == pl.num_programs(2) - 1)
    def _finish():
        y = jnp.dot(pool_ref[...].astype(jnp.bfloat16), w_ref[...],
                    preferred_element_type=jnp.float32)
        y = y * s_ref[...] + b_ref[...]
        o_ref[...] = jnp.maximum(y, 0.0).reshape(h, w, -1).astype(o_ref.dtype)


def maxpool3_conv1x1_bn_relu(x5, w, scale, bias, out_dtype=jnp.bfloat16):
    n, d, h, wd, cin = x5.shape
    coutp = w.shape[1]
    # Pad with the dtype's finite min so border/depth padding never wins a max
    # (every 3x3x3 window contains at least one real element, so it never
    # leaks into the output).
    neg = float(jnp.finfo(x5.dtype).min)
    xp = jnp.pad(x5, ((0, 0), (1, 1), (1, 1), (1, 1), (0, 0)),
                 constant_values=neg)
    hp, wp = h + 2, wd + 2
    kernel = functools.partial(_maxpool_conv1x1_kernel, h=h, w=wd)
    return pl.pallas_call(
        kernel,
        out_shape=jax.ShapeDtypeStruct((n, d, h, wd, coutp), out_dtype),
        grid=(n, d, 3),
        in_specs=[
            pl.BlockSpec((None, None, hp, wp, cin),
                         lambda i, j, t: (i, j + t, 0, 0, 0)),
            pl.BlockSpec((cin, coutp), lambda i, j, t: (0, 0)),
            pl.BlockSpec((1, coutp), lambda i, j, t: (0, 0)),
            pl.BlockSpec((1, coutp), lambda i, j, t: (0, 0)),
        ],
        out_specs=pl.BlockSpec((None, None, h, wd, coutp),
                               lambda i, j, t: (i, j, 0, 0, 0)),
        scratch_shapes=[pltpu.VMEM((h * wd, cin), jnp.float32)],
        compiler_params=pltpu.CompilerParams(
            dimension_semantics=("parallel", "parallel", "arbitrary"),
            vmem_limit_bytes=_VMEM_LIMIT),
    )(xp, w, scale, bias)


# ---------------------------------------------------------------------------
# Deterministic synthetic parameters (conv weights + eval-mode folded BN).
# ---------------------------------------------------------------------------
def _fold_bn(key, c):
    k1, k2, k3, k4 = jax.random.split(key, 4)
    gamma = jax.random.uniform(k1, (c,), minval=0.5, maxval=1.5)
    beta = jax.random.normal(k2, (c,)) * 0.1
    mean = jax.random.normal(k3, (c,)) * 0.1
    var = jax.random.uniform(k4, (c,), minval=0.5, maxval=1.5)
    scale = gamma / jnp.sqrt(var + BN_EPS)
    bias = beta - mean * scale
    return scale.astype(jnp.float32), bias.astype(jnp.float32)


def _conv1x1_w(key, cin, cout):
    return (jax.random.normal(key, (cin, cout), dtype=jnp.float32)
            * (1.0 / (cin ** 0.5)))


def _conv3x3x3_w(key, cin, cout):
    # tap-major layout: index t = kd*9 + kh*3 + kw, then (cin, cout)
    return (jax.random.normal(key, (27, cin, cout), dtype=jnp.float32)
            * (1.0 / ((27 * cin) ** 0.5)))


def init_mixed3c_params(key):
    ks = jax.random.split(key, 12)
    p = {}
    p["b0_w"] = _conv1x1_w(ks[0], 256, 128)
    p["b0_s"], p["b0_b"] = _fold_bn(ks[1], 128)
    p["b1a_w"] = _conv1x1_w(ks[2], 256, 128)
    p["b1a_s"], p["b1a_b"] = _fold_bn(ks[3], 128)
    p["b1b_w"] = _conv3x3x3_w(ks[4], 128, 192)
    p["b1b_s"], p["b1b_b"] = _fold_bn(ks[5], 192)
    p["b2a_w"] = _conv1x1_w(ks[6], 256, 32)
    p["b2a_s"], p["b2a_b"] = _fold_bn(ks[7], 32)
    p["b2b_w"] = _conv3x3x3_w(ks[8], 32, 96)
    p["b2b_s"], p["b2b_b"] = _fold_bn(ks[9], 96)
    p["b3_w"] = _conv1x1_w(ks[10], 256, 64)
    p["b3_s"], p["b3_b"] = _fold_bn(ks[11], 64)
    return p


# ---------------------------------------------------------------------------
# Weight prep helpers (pack 3x3x3 taps to kd-major K=9*cin, lane-pad cout).
# ---------------------------------------------------------------------------
def _pack_taps(w27, cout_pad):
    taps, cin, cout = w27.shape                   # (27, cin, cout), tap-major
    wpk = w27.reshape(3, 9 * cin, cout)           # kd-major, (kh,kw,cin) in K
    if cout_pad > cout:
        wpk = jnp.pad(wpk, ((0, 0), (0, 0), (0, cout_pad - cout)))
    return wpk.astype(jnp.bfloat16)


def _pad_vec(v, cout_pad):
    if cout_pad > v.shape[0]:
        v = jnp.pad(v, (0, cout_pad - v.shape[0]))
    return v.reshape(1, -1)


# ---------------------------------------------------------------------------
# Mixed_3c forward (input/output in PyTorch NCDHW layout).
# ---------------------------------------------------------------------------
def mixed_3c_forward(x_ncdhw, params):
    x = jnp.transpose(x_ncdhw, (0, 2, 3, 4, 1)).astype(jnp.bfloat16)  # NDHWC
    n, d, h, w, cin = x.shape
    m = n * d * h * w
    c0, c1a, c2a = 128, 128, 32

    # Stage 1: branch0 + branch1[0] + branch2[0] 1x1x1 convs fused into one
    # matmul over x (weights concatenated along Cout): x streamed from HBM once.
    w_cat = jnp.concatenate(
        [params["b0_w"], params["b1a_w"], params["b2a_w"]], axis=1
    ).astype(jnp.bfloat16)
    s_cat = jnp.concatenate(
        [params["b0_s"], params["b1a_s"], params["b2a_s"]]).reshape(1, -1)
    b_cat = jnp.concatenate(
        [params["b0_b"], params["b1a_b"], params["b2a_b"]]).reshape(1, -1)
    y = conv1x1_bn_relu(x.reshape(m, cin), w_cat, s_cat, b_cat)

    x0 = y[:, :c0].reshape(n, d, h, w, c0)
    h1 = y[:, c0:c0 + c1a].reshape(n, d, h, w, c1a)
    h2 = y[:, c0 + c1a:].reshape(n, d, h, w, c2a)

    # Stage 2: per-branch 3x3x3 convs / fused max-pool + 1x1 conv (lane-dense).
    x1 = conv3x3x3_bn_relu(
        h1, _pack_taps(params["b1b_w"], 192),
        _pad_vec(params["b1b_s"], 192), _pad_vec(params["b1b_b"], 192))
    x2 = conv3x3x3_bn_relu(                       # cout 96 -> 128 lanes
        h2, _pack_taps(params["b2b_w"], 128),
        _pad_vec(params["b2b_s"], 128), _pad_vec(params["b2b_b"], 128))
    x3 = maxpool3_conv1x1_bn_relu(                # cout 64 -> 128 lanes
        x, jnp.pad(params["b3_w"], ((0, 0), (0, 64))).astype(jnp.bfloat16),
        _pad_vec(params["b3_s"], 128), _pad_vec(params["b3_b"], 128))

    out = jnp.concatenate([x0, x1, x2[..., :96], x3[..., :64]], axis=-1)
    return jnp.transpose(out, (0, 4, 1, 2, 3)).astype(jnp.float32)  # -> NCDHW


# ---------------------------------------------------------------------------
# Pure-JAX f32 reference (lax.conv / reduce_window) for correctness checking.
# ---------------------------------------------------------------------------
def mixed_3c_reference(x_ncdhw, params):
    x = jnp.transpose(x_ncdhw, (0, 2, 3, 4, 1)).astype(jnp.float32)

    def bcr1(hx, w, s, b):
        yy = jnp.tensordot(hx, w, axes=([4], [0]))
        return jnp.maximum(yy * s + b, 0.0)

    def bcr3(hx, w, s, b):
        k = w.reshape(3, 3, 3, w.shape[1], w.shape[2])
        yy = jax.lax.conv_general_dilated(
            hx, k, (1, 1, 1), [(1, 1)] * 3,
            dimension_numbers=("NDHWC", "DHWIO", "NDHWC"))
        return jnp.maximum(yy * s + b, 0.0)

    x0 = bcr1(x, params["b0_w"], params["b0_s"], params["b0_b"])
    x1 = bcr3(bcr1(x, params["b1a_w"], params["b1a_s"], params["b1a_b"]),
              params["b1b_w"], params["b1b_s"], params["b1b_b"])
    x2 = bcr3(bcr1(x, params["b2a_w"], params["b2a_s"], params["b2a_b"]),
              params["b2b_w"], params["b2b_s"], params["b2b_b"])
    pooled = jax.lax.reduce_window(
        x, -jnp.inf, jax.lax.max, (1, 3, 3, 3, 1), (1, 1, 1, 1, 1),
        [(0, 0), (1, 1), (1, 1), (1, 1), (0, 0)])
    x3 = bcr1(pooled, params["b3_w"], params["b3_s"], params["b3_b"])
    out = jnp.concatenate([x0, x1, x2, x3], axis=-1)
    return jnp.transpose(out, (0, 4, 1, 2, 3))


if __name__ == "__main__":
    key = jax.random.PRNGKey(0)
    kx, kp = jax.random.split(key)

    N, C, D, H, W = 2, 256, 4, 8, 8          # channels fixed by Mixed_3c
    x = jax.random.normal(kx, (N, C, D, H, W), dtype=jnp.float32)
    params = init_mixed3c_params(kp)

    y = jax.block_until_ready(jax.jit(mixed_3c_forward)(x, params))
    y_ref = jax.block_until_ready(jax.jit(mixed_3c_reference)(x, params))

    assert y.shape == (N, 128 + 192 + 96 + 64, D, H, W), y.shape
    max_err = float(jnp.max(jnp.abs(y - y_ref)))
    # bf16 MXU operands / bf16 intermediates vs f32 reference -> loose tol.
    assert jnp.allclose(y, y_ref, atol=1e-1, rtol=1e-1), f"max abs err {max_err}"
    print("KERNEL_OK")
</pallas_src>

<mosaic_0001>
module attributes {stable_mosaic.version = 11 : i64} {
  func.func @_mm_bn_relu_kernel(%arg0: i32, %arg1: memref<128x256xbf16, #tpu.memory_space<vmem>>, %arg2: memref<256x288xbf16, #tpu.memory_space<vmem>>, %arg3: memref<1x288xf32, #tpu.memory_space<vmem>>, %arg4: memref<1x288xf32, #tpu.memory_space<vmem>>, %arg5: memref<128x288xbf16, #tpu.memory_space<vmem>>) attributes {dimension_semantics = [#tpu.dimension_semantics<parallel>], iteration_bounds = array<i64: 4>, scalar_prefetch = 0 : i64, scratch_operands = 0 : i64, tpu.core_type = #tpu.core_type<tc>, window_params = [{transform_indices = @transform_0, window_bounds = array<i64: 128, 256>}, {pipeline_mode = #tpu.pipeline_mode<synchronous>, transform_indices = @transform_1, window_bounds = array<i64: 256, 288>}, {pipeline_mode = #tpu.pipeline_mode<synchronous>, transform_indices = @transform_2, window_bounds = array<i64: 1, 288>}, {pipeline_mode = #tpu.pipeline_mode<synchronous>, transform_indices = @transform_3, window_bounds = array<i64: 1, 288>}, {transform_indices = @transform_4, window_bounds = array<i64: 128, 288>}]} {
    %c0 = arith.constant 0 : index
    %c0_0 = arith.constant 0 : index
    %0 = vector.load %arg1[%c0, %c0_0] : memref<128x256xbf16, #tpu.memory_space<vmem>>, vector<128x256xbf16>
    %c0_1 = arith.constant 0 : index
    %c0_2 = arith.constant 0 : index
    %1 = vector.load %arg2[%c0_1, %c0_2] : memref<256x288xbf16, #tpu.memory_space<vmem>>, vector<256x288xbf16>
    %cst = arith.constant dense<0.000000e+00> : vector<128x288xf32>
    %2 = tpu.matmul %0, %1, %cst {dimension_numbers = #tpu.dot_dimension_numbers<[1], [0], [0], [1], [0, 0, 1, 1], [], []>} : vector<128x256xbf16>, vector<256x288xbf16>, vector<128x288xf32> -> vector<128x288xf32>
    %c0_3 = arith.constant 0 : index
    %c0_4 = arith.constant 0 : index
    %3 = vector.load %arg3[%c0_3, %c0_4] : memref<1x288xf32, #tpu.memory_space<vmem>>, vector<1x288xf32>
    %4 = vector.broadcast %3 : vector<1x288xf32> to vector<128x288xf32>
    %5 = arith.mulf %2, %4 : vector<128x288xf32>
    %c0_5 = arith.constant 0 : index
    %c0_6 = arith.constant 0 : index
    %6 = vector.load %arg4[%c0_5, %c0_6] : memref<1x288xf32, #tpu.memory_space<vmem>>, vector<1x288xf32>
    %7 = vector.broadcast %6 : vector<1x288xf32> to vector<128x288xf32>
    %8 = arith.addf %5, %7 : vector<128x288xf32>
    %cst_7 = arith.constant 0.000000e+00 : f32
    %9 = vector.broadcast %cst_7 : f32 to vector<128x288xf32>
    %10 = arith.maximumf %8, %9 : vector<128x288xf32>
    %11 = arith.truncf %10 : vector<128x288xf32> to vector<128x288xbf16>
    %c0_8 = arith.constant 0 : index
    %c0_9 = arith.constant 0 : index
    %12 = vector.load %arg5[%c0_8, %c0_9] : memref<128x288xbf16, #tpu.memory_space<vmem>>, vector<128x288xbf16>
    tpu.vector_store %arg5[%c0_8, %c0_9], %11 {strides = array<i32>} : memref<128x288xbf16, #tpu.memory_space<vmem>>, vector<128x288xbf16>,
    return
  }
  func.func @transform_0(%arg0: i32) -> (i32, i32) {
    %c0_i32 = arith.constant 0 : i32
    %c0_i32_0 = arith.constant 0 : i32
    return %arg0, %c0_i32 : i32, i32
  }
  func.func @transform_1(%arg0: i32) -> (i32, i32) {
    %c0_i32 = arith.constant 0 : i32
    %c0_i32_0 = arith.constant 0 : i32
    %c0_i32_1 = arith.constant 0 : i32
    return %c0_i32, %c0_i32_0 : i32, i32
  }
  func.func @transform_2(%arg0: i32) -> (i32, i32) {
    %c0_i32 = arith.constant 0 : i32
    %c0_i32_0 = arith.constant 0 : i32
    %c0_i32_1 = arith.constant 0 : i32
    return %c0_i32, %c0_i32_0 : i32, i32
  }
  func.func @transform_3(%arg0: i32) -> (i32, i32) {
    %c0_i32 = arith.constant 0 : i32
    %c0_i32_0 = arith.constant 0 : i32
    %c0_i32_1 = arith.constant 0 : i32
    return %c0_i32, %c0_i32_0 : i32, i32
  }
  func.func @transform_4(%arg0: i32) -> (i32, i32) {
    %c0_i32 = arith.constant 0 : i32
    %c0_i32_0 = arith.constant 0 : i32
    return %arg0, %c0_i32 : i32, i32
  }
}

module attributes {stable_mosaic.version = 11 : i64} {
  func.func @_conv3x3x3_kernel(%arg0: i32, %arg1: i32, %arg2: i32, %arg3: memref<1x1x10x10x32xbf16, #tpu.memory_space<vmem>>, %arg4: memref<3x288x128xbf16, #tpu.memory_space<vmem>>, %arg5: memref<1x128xf32, #tpu.memory_space<vmem>>, %arg6: memref<1x128xf32, #tpu.memory_space<vmem>>, %arg7: memref<1x1x8x8x128xbf16, #tpu.memory_space<vmem>>, %arg8: memref<64x128xf32, #tpu.memory_space<vmem>>) attributes {dimension_semantics = [#tpu.dimension_semantics<parallel>, #tpu.dimension_semantics<parallel>, #tpu.dimension_semantics<arbitrary>], iteration_bounds = array<i64: 2, 4, 3>, scalar_prefetch = 0 : i64, scratch_operands = 1 : i64, tpu.core_type = #tpu.core_type<tc>, window_params = [{transform_indices = @transform_0, window_bounds = array<i64: 1, 1, 10, 10, 32>}, {pipeline_mode = #tpu.pipeline_mode<synchronous>, transform_indices = @transform_1, window_bounds = array<i64: 3, 288, 128>}, {pipeline_mode = #tpu.pipeline_mode<synchronous>, transform_indices = @transform_2, window_bounds = array<i64: 1, 128>}, {pipeline_mode = #tpu.pipeline_mode<synchronous>, transform_indices = @transform_3, window_bounds = array<i64: 1, 128>}, {transform_indices = @transform_4, window_bounds = array<i64: 1, 1, 8, 8, 128>}]} {
    %c0_i32 = arith.constant 0 : i32
    %0 = arith.cmpi eq, %arg2, %c0_i32 : i32
    %1 = arith.extui %0 : i1 to i32
    %c0_i32_0 = arith.constant 0 : i32
    %2 = arith.cmpi ne, %1, %c0_i32_0 : i32
    scf.if %2 {
      %cst_50 = arith.constant 0.000000e+00 : f32
      %33 = vector.broadcast %cst_50 : f32 to vector<64x128xf32>
      %c0_51 = arith.constant 0 : index
      %c0_52 = arith.constant 0 : index
      %34 = vector.load %arg8[%c0_51, %c0_52] : memref<64x128xf32, #tpu.memory_space<vmem>>, vector<64x128xf32>
      tpu.vector_store %arg8[%c0_51, %c0_52], %33 {strides = array<i32>} : memref<64x128xf32, #tpu.memory_space<vmem>>, vector<64x128xf32>,
    } else {
    }
    %c0 = arith.constant 0 : index
    %c0_1 = arith.constant 0 : index
    %c0_2 = arith.constant 0 : index
    %c0_3 = arith.constant 0 : index
    %c0_4 = arith.constant 0 : index
    %3 = vector.load %arg3[%c0, %c0_1, %c0_2, %c0_3, %c0_4] : memref<1x1x10x10x32xbf16, #tpu.memory_space<vmem>>, vector<1x1x8x8x32xbf16>
    %4 = vector.shape_cast %3 : vector<1x1x8x8x32xbf16> to vector<8x8x32xbf16>
    %c0_5 = arith.constant 0 : index
    %c0_6 = arith.constant 0 : index
    %c0_7 = arith.constant 0 : index
    %c1 = arith.constant 1 : index
    %c0_8 = arith.constant 0 : index
    %5 = vector.load %arg3[%c0_5, %c0_6, %c0_7, %c1, %c0_8] : memref<1x1x10x10x32xbf16, #tpu.memory_space<vmem>>, vector<1x1x8x8x32xbf16>
    %6 = vector.shape_cast %5 : vector<1x1x8x8x32xbf16> to vector<8x8x32xbf16>
    %c0_9 = arith.constant 0 : index
    %c0_10 = arith.constant 0 : index
    %c0_11 = arith.constant 0 : index
    %c2 = arith.constant 2 : index
    %c0_12 = arith.constant 0 : index
    %7 = vector.load %arg3[%c0_9, %c0_10, %c0_11, %c2, %c0_12] : memref<1x1x10x10x32xbf16, #tpu.memory_space<vmem>>, vector<1x1x8x8x32xbf16>
    %8 = vector.shape_cast %7 : vector<1x1x8x8x32xbf16> to vector<8x8x32xbf16>
    %c0_13 = arith.constant 0 : index
    %c0_14 = arith.constant 0 : index
    %c1_15 = arith.constant 1 : index
    %c0_16 = arith.constant 0 : index
    %c0_17 = arith.constant 0 : index
    %9 = vector.load %arg3[%c0_13, %c0_14, %c1_15, %c0_16, %c0_17] : memref<1x1x10x10x32xbf16, #tpu.memory_space<vmem>>, vector<1x1x8x8x32xbf16>
    %10 = vector.shape_cast %9 : vector<1x1x8x8x32xbf16> to vector<8x8x32xbf16>
    %c0_18 = arith.constant 0 : index
    %c0_19 = arith.constant 0 : index
    %c1_20 = arith.constant 1 : index
    %c1_21 = arith.constant 1 : index
    %c0_22 = arith.constant 0 : index
    %11 = vector.load %arg3[%c0_18, %c0_19, %c1_20, %c1_21, %c0_22] : memref<1x1x10x10x32xbf16, #tpu.memory_space<vmem>>, vector<1x1x8x8x32xbf16>
    %12 = vector.shape_cast %11 : vector<1x1x8x8x32xbf16> to vector<8x8x32xbf16>
    %c0_23 = arith.constant 0 : index
    %c0_24 = arith.constant 0 : index
    %c1_25 = arith.constant 1 : index
    %c2_26 = arith.constant 2 : index
    %c0_27 = arith.constant 0 : index
    %13 = vector.load %arg3[%c0_23, %c0_24, %c1_25, %c2_26, %c0_27] : memref<1x1x10x10x32xbf16, #tpu.memory_space<vmem>>, vector<1x1x8x8x32xbf16>
    %14 = vector.shape_cast %13 : vector<1x1x8x8x32xbf16> to vector<8x8x32xbf16>
    %c0_28 = arith.constant 0 : index
    %c0_29 = arith.constant 0 : index
    %c2_30 = arith.constant 2 : index
    %c0_31 = arith.constant 0 : index
    %c0_32 = arith.constant 0 : index
    %15 = vector.load %arg3[%c0_28, %c0_29, %c2_30, %c0_31, %c0_32] : memref<1x1x10x10x32xbf16, #tpu.memory_space<vmem>>, vector<1x1x8x8x32xbf16>
    %16 = vector.shape_cast %15 : vector<1x1x8x8x32xbf16> to vector<8x8x32xbf16>
    %c0_33 = arith.constant 0 : index
    %c0_34 = arith.constant 0 : index
    %c2_35 = arith.constant 2 : index
    %c1_36 = arith.constant 1 : index
    %c0_37 = arith.constant 0 : index
    %17 = vector.load %arg3[%c0_33, %c0_34, %c2_35, %c1_36, %c0_37] : memref<1x1x10x10x32xbf16, #tpu.memory_space<vmem>>, vector<1x1x8x8x32xbf16>
    %18 = vector.shape_cast %17 : vector<1x1x8x8x32xbf16> to vector<8x8x32xbf16>
    %c0_38 = arith.constant 0 : index
    %c0_39 = arith.constant 0 : index
    %c2_40 = arith.constant 2 : index
    %c2_41 = arith.constant 2 : index
    %c0_42 = arith.constant 0 : index
    %19 = vector.load %arg3[%c0_38, %c0_39, %c2_40, %c2_41, %c0_42] : memref<1x1x10x10x32xbf16, #tpu.memory_space<vmem>>, vector<1x1x8x8x32xbf16>
    %20 = vector.shape_cast %19 : vector<1x1x8x8x32xbf16> to vector<8x8x32xbf16>
    %21 = tpu.concatenate %4, %6, %8, %10, %12, %14, %16, %18, %20 in 2 : vector<8x8x32xbf16>, vector<8x8x32xbf16>, vector<8x8x32xbf16>, vector<8x8x32xbf16>, vector<8x8x32xbf16>, vector<8x8x32xbf16>, vector<8x8x32xbf16>, vector<8x8x32xbf16>, vector<8x8x32xbf16> -> vector<8x8x288xbf16>
    %22 = vector.shape_cast %21 : vector<8x8x288xbf16> to vector<64x288xbf16>
    %c0_43 = arith.constant 0 : index
    %c0_44 = arith.constant 0 : index
    %23 = vector.load %arg8[%c0_43, %c0_44] : memref<64x128xf32, #tpu.memory_space<vmem>>, vector<64x128xf32>
    %24 = arith.index_cast %arg2 : i32 to index
    %c0_45 = arith.constant 0 : index
    %c0_46 = arith.constant 0 : index
    %25 = vector.load %arg4[%24, %c0_45, %c0_46] : memref<3x288x128xbf16, #tpu.memory_space<vmem>>, vector<1x288x128xbf16>
    %26 = vector.shape_cast %25 : vector<1x288x128xbf16> to vector<288x128xbf16>
    %cst = arith.constant dense<0.000000e+00> : vector<64x128xf32>
    %27 = tpu.matmul %22, %26, %cst {dimension_numbers = #tpu.dot_dimension_numbers<[1], [0], [0], [1], [0, 0, 1, 1], [], []>} : vector<64x288xbf16>, vector<288x128xbf16>, vector<64x128xf32> -> vector<64x128xf32>
    %28 = arith.addf %23, %27 : vector<64x128xf32>
    %c0_47 = arith.constant 0 : index
    %c0_48 = arith.constant 0 : index
    %29 = vector.load %arg8[%c0_47, %c0_48] : memref<64x128xf32, #tpu.memory_space<vmem>>, vector<64x128xf32>
    tpu.vector_store %arg8[%c0_47, %c0_48], %28 {strides = array<i32>} : memref<64x128xf32, #tpu.memory_space<vmem>>, vector<64x128xf32>,
    %c2_i32 = arith.constant 2 : i32
    %30 = arith.cmpi eq, %arg2, %c2_i32 : i32
    %31 = arith.extui %30 : i1 to i32
    %c0_i32_49 = arith.constant 0 : i32
    %32 = arith.cmpi ne, %31, %c0_i32_49 : i32
    scf.if %32 {
      %c0_50 = arith.constant 0 : index
      %c0_51 = arith.constant 0 : index
      %33 = vector.load %arg8[%c0_50, %c0_51] : memref<64x128xf32, #tpu.memory_space<vmem>>, vector<64x128xf32>
      %c0_52 = arith.constant 0 : index
      %c0_53 = arith.constant 0 : index
      %34 = vector.load %arg5[%c0_52, %c0_53] : memref<1x128xf32, #tpu.memory_space<vmem>>, vector<1x128xf32>
      %35 = vector.broadcast %34 : vector<1x128xf32> to vector<64x128xf32>
      %36 = arith.mulf %33, %35 : vector<64x128xf32>
      %c0_54 = arith.constant 0 : index
      %c0_55 = arith.constant 0 : index
      %37 = vector.load %arg6[%c0_54, %c0_55] : memref<1x128xf32, #tpu.memory_space<vmem>>, vector<1x128xf32>
      %38 = vector.broadcast %37 : vector<1x128xf32> to vector<64x128xf32>
      %39 = arith.addf %36, %38 : vector<64x128xf32>
      %cst_56 = arith.constant 0.000000e+00 : f32
      %40 = vector.broadcast %cst_56 : f32 to vector<64x128xf32>
      %41 = arith.maximumf %39, %40 : vector<64x128xf32>
      %42 = vector.shape_cast %41 : vector<64x128xf32> to vector<8x8x128xf32>
      %43 = arith.truncf %42 : vector<8x8x128xf32> to vector<8x8x128xbf16>
      %c0_57 = arith.constant 0 : index
      %c0_58 = arith.constant 0 : index
      %c0_59 = arith.constant 0 : index
      %c0_60 = arith.constant 0 : index
      %c0_61 = arith.constant 0 : index
      %44 = vector.load %arg7[%c0_57, %c0_58, %c0_59, %c0_60, %c0_61] : memref<1x1x8x8x128xbf16, #tpu.memory_space<vmem>>, vector<1x1x8x8x128xbf16>
      %45 = vector.shape_cast %44 : vector<1x1x8x8x128xbf16> to vector<8x8x128xbf16>
      %46 = vector.shape_cast %43 : vector<8x8x128xbf16> to vector<1x1x8x8x128xbf16>
      tpu.vector_store %arg7[%c0_57, %c0_58, %c0_59, %c0_60, %c0_61], %46 {strides = array<i32>} : memref<1x1x8x8x128xbf16, #tpu.memory_space<vmem>>, vector<1x1x8x8x128xbf16>,
    } else {
    }
    return
  }
  func.func @transform_0(%arg0: i32, %arg1: i32, %arg2: i32) -> (i32, i32, i32, i32, i32) {
    %0 = arith.addi %arg1, %arg2 : i32
    %c0_i32 = arith.constant 0 : i32
    %c0_i32_0 = arith.constant 0 : i32
    %c0_i32_1 = arith.constant 0 : i32
    %c0_i32_2 = arith.constant 0 : i32
    return %arg0, %0, %c0_i32, %c0_i32_0, %c0_i32_1 : i32, i32, i32, i32, i32
  }
  func.func @transform_1(%arg0: i32, %arg1: i32, %arg2: i32) -> (i32, i32, i32) {
    %c0_i32 = arith.constant 0 : i32
    %c0_i32_0 = arith.constant 0 : i32
    %c0_i32_1 = arith.constant 0 : i32
    %c0_i32_2 = arith.constant 0 : i32
    return %c0_i32, %c0_i32_0, %c0_i32_1 : i32, i32, i32
  }
  func.func @transform_2(%arg0: i32, %arg1: i32, %arg2: i32) -> (i32, i32) {
    %c0_i32 = arith.constant 0 : i32
    %c0_i32_0 = arith.constant 0 : i32
    %c0_i32_1 = arith.constant 0 : i32
    return %c0_i32, %c0_i32_0 : i32, i32
  }
  func.func @transform_3(%arg0: i32, %arg1: i32, %arg2: i32) -> (i32, i32) {
    %c0_i32 = arith.constant 0 : i32
    %c0_i32_0 = arith.constant 0 : i32
    %c0_i32_1 = arith.constant 0 : i32
    return %c0_i32, %c0_i32_0 : i32, i32
  }
  func.func @transform_4(%arg0: i32, %arg1: i32, %arg2: i32) -> (i32, i32, i32, i32, i32) {
    %c0_i32 = arith.constant 0 : i32
    %c0_i32_0 = arith.constant 0 : i32
    %c0_i32_1 = arith.constant 0 : i32
    %c0_i32_2 = arith.constant 0 : i32
    return %arg0, %arg1, %c0_i32, %c0_i32_0, %c0_i32_1 : i32, i32, i32, i32, i32
  }
}

module attributes {stable_mosaic.version = 11 : i64} {
  func.func @_conv3x3x3_kernel(%arg0: i32, %arg1: i32, %arg2: i32, %arg3: memref<1x1x10x10x128xbf16, #tpu.memory_space<vmem>>, %arg4: memref<3x1152x192xbf16, #tpu.memory_space<vmem>>, %arg5: memref<1x192xf32, #tpu.memory_space<vmem>>, %arg6: memref<1x192xf32, #tpu.memory_space<vmem>>, %arg7: memref<1x1x8x8x192xbf16, #tpu.memory_space<vmem>>, %arg8: memref<64x192xf32, #tpu.memory_space<vmem>>) attributes {dimension_semantics = [#tpu.dimension_semantics<parallel>, #tpu.dimension_semantics<parallel>, #tpu.dimension_semantics<arbitrary>], iteration_bounds = array<i64: 2, 4, 3>, scalar_prefetch = 0 : i64, scratch_operands = 1 : i64, tpu.core_type = #tpu.core_type<tc>, window_params = [{transform_indices = @transform_0, window_bounds = array<i64: 1, 1, 10, 10, 128>}, {pipeline_mode = #tpu.pipeline_mode<synchronous>, transform_indices = @transform_1, window_bounds = array<i64: 3, 1152, 192>}, {pipeline_mode = #tpu.pipeline_mode<synchronous>, transform_indices = @transform_2, window_bounds = array<i64: 1, 192>}, {pipeline_mode = #tpu.pipeline_mode<synchronous>, transform_indices = @transform_3, window_bounds = array<i64: 1, 192>}, {transform_indices = @transform_4, window_bounds = array<i64: 1, 1, 8, 8, 192>}]} {
    %c0_i32 = arith.constant 0 : i32
    %0 = arith.cmpi eq, %arg2, %c0_i32 : i32
    %1 = arith.extui %0 : i1 to i32
    %c0_i32_0 = arith.constant 0 : i32
    %2 = arith.cmpi ne, %1, %c0_i32_0 : i32
    scf.if %2 {
      %cst_50 = arith.constant 0.000000e+00 : f32
      %33 = vector.broadcast %cst_50 : f32 to vector<64x192xf32>
      %c0_51 = arith.constant 0 : index
      %c0_52 = arith.constant 0 : index
      %34 = vector.load %arg8[%c0_51, %c0_52] : memref<64x192xf32, #tpu.memory_space<vmem>>, vector<64x192xf32>
      tpu.vector_store %arg8[%c0_51, %c0_52], %33 {strides = array<i32>} : memref<64x192xf32, #tpu.memory_space<vmem>>, vector<64x192xf32>,
    } else {
    }
    %c0 = arith.constant 0 : index
    %c0_1 = arith.constant 0 : index
    %c0_2 = arith.constant 0 : index
    %c0_3 = arith.constant 0 : index
    %c0_4 = arith.constant 0 : index
    %3 = vector.load %arg3[%c0, %c0_1, %c0_2, %c0_3, %c0_4] : memref<1x1x10x10x128xbf16, #tpu.memory_space<vmem>>, vector<1x1x8x8x128xbf16>
    %4 = vector.shape_cast %3 : vector<1x1x8x8x128xbf16> to vector<8x8x128xbf16>
    %c0_5 = arith.constant 0 : index
    %c0_6 = arith.constant 0 : index
    %c0_7 = arith.constant 0 : index
    %c1 = arith.constant 1 : index
    %c0_8 = arith.constant 0 : index
    %5 = vector.load %arg3[%c0_5, %c0_6, %c0_7, %c1, %c0_8] : memref<1x1x10x10x128xbf16, #tpu.memory_space<vmem>>, vector<1x1x8x8x128xbf16>
    %6 = vector.shape_cast %5 : vector<1x1x8x8x128xbf16> to vector<8x8x128xbf16>
    %c0_9 = arith.constant 0 : index
    %c0_10 = arith.constant 0 : index
    %c0_11 = arith.constant 0 : index
    %c2 = arith.constant 2 : index
    %c0_12 = arith.constant 0 : index
    %7 = vector.load %arg3[%c0_9, %c0_10, %c0_11, %c2, %c0_12] : memref<1x1x10x10x128xbf16, #tpu.memory_space<vmem>>, vector<1x1x8x8x128xbf16>
    %8 = vector.shape_cast %7 : vector<1x1x8x8x128xbf16> to vector<8x8x128xbf16>
    %c0_13 = arith.constant 0 : index
    %c0_14 = arith.constant 0 : index
    %c1_15 = arith.constant 1 : index
    %c0_16 = arith.constant 0 : index
    %c0_17 = arith.constant 0 : index
    %9 = vector.load %arg3[%c0_13, %c0_14, %c1_15, %c0_16, %c0_17] : memref<1x1x10x10x128xbf16, #tpu.memory_space<vmem>>, vector<1x1x8x8x128xbf16>
    %10 = vector.shape_cast %9 : vector<1x1x8x8x128xbf16> to vector<8x8x128xbf16>
    %c0_18 = arith.constant 0 : index
    %c0_19 = arith.constant 0 : index
    %c1_20 = arith.constant 1 : index
    %c1_21 = arith.constant 1 : index
    %c0_22 = arith.constant 0 : index
    %11 = vector.load %arg3[%c0_18, %c0_19, %c1_20, %c1_21, %c0_22] : memref<1x1x10x10x128xbf16, #tpu.memory_space<vmem>>, vector<1x1x8x8x128xbf16>
    %12 = vector.shape_cast %11 : vector<1x1x8x8x128xbf16> to vector<8x8x128xbf16>
    %c0_23 = arith.constant 0 : index
    %c0_24 = arith.constant 0 : index
    %c1_25 = arith.constant 1 : index
    %c2_26 = arith.constant 2 : index
    %c0_27 = arith.constant 0 : index
    %13 = vector.load %arg3[%c0_23, %c0_24, %c1_25, %c2_26, %c0_27] : memref<1x1x10x10x128xbf16, #tpu.memory_space<vmem>>, vector<1x1x8x8x128xbf16>
    %14 = vector.shape_cast %13 : vector<1x1x8x8x128xbf16> to vector<8x8x128xbf16>
    %c0_28 = arith.constant 0 : index
    %c0_29 = arith.constant 0 : index
    %c2_30 = arith.constant 2 : index
    %c0_31 = arith.constant 0 : index
    %c0_32 = arith.constant 0 : index
    %15 = vector.load %arg3[%c0_28, %c0_29, %c2_30, %c0_31, %c0_32] : memref<1x1x10x10x128xbf16, #tpu.memory_space<vmem>>, vector<1x1x8x8x128xbf16>
    %16 = vector.shape_cast %15 : vector<1x1x8x8x128xbf16> to vector<8x8x128xbf16>
    %c0_33 = arith.constant 0 : index
    %c0_34 = arith.constant 0 : index
    %c2_35 = arith.constant 2 : index
    %c1_36 = arith.constant 1 : index
    %c0_37 = arith.constant 0 : index
    %17 = vector.load %arg3[%c0_33, %c0_34, %c2_35, %c1_36, %c0_37] : memref<1x1x10x10x128xbf16, #tpu.memory_space<vmem>>, vector<1x1x8x8x128xbf16>
    %18 = vector.shape_cast %17 : vector<1x1x8x8x128xbf16> to vector<8x8x128xbf16>
    %c0_38 = arith.constant 0 : index
    %c0_39 = arith.constant 0 : index
    %c2_40 = arith.constant 2 : index
    %c2_41 = arith.constant 2 : index
    %c0_42 = arith.constant 0 : index
    %19 = vector.load %arg3[%c0_38, %c0_39, %c2_40, %c2_41, %c0_42] : memref<1x1x10x10x128xbf16, #tpu.memory_space<vmem>>, vector<1x1x8x8x128xbf16>
    %20 = vector.shape_cast %19 : vector<1x1x8x8x128xbf16> to vector<8x8x128xbf16>
    %21 = tpu.concatenate %4, %6, %8, %10, %12, %14, %16, %18, %20 in 2 : vector<8x8x128xbf16>, vector<8x8x128xbf16>, vector<8x8x128xbf16>, vector<8x8x128xbf16>, vector<8x8x128xbf16>, vector<8x8x128xbf16>, vector<8x8x128xbf16>, vector<8x8x128xbf16>, vector<8x8x128xbf16> -> vector<8x8x1152xbf16>
    %22 = vector.shape_cast %21 : vector<8x8x1152xbf16> to vector<64x1152xbf16>
    %c0_43 = arith.constant 0 : index
    %c0_44 = arith.constant 0 : index
    %23 = vector.load %arg8[%c0_43, %c0_44] : memref<64x192xf32, #tpu.memory_space<vmem>>, vector<64x192xf32>
    %24 = arith.index_cast %arg2 : i32 to index
    %c0_45 = arith.constant 0 : index
    %c0_46 = arith.constant 0 : index
    %25 = vector.load %arg4[%24, %c0_45, %c0_46] : memref<3x1152x192xbf16, #tpu.memory_space<vmem>>, vector<1x1152x192xbf16>
    %26 = vector.shape_cast %25 : vector<1x1152x192xbf16> to vector<1152x192xbf16>
    %cst = arith.constant dense<0.000000e+00> : vector<64x192xf32>
    %27 = tpu.matmul %22, %26, %cst {dimension_numbers = #tpu.dot_dimension_numbers<[1], [0], [0], [1], [0, 0, 1, 1], [], []>} : vector<64x1152xbf16>, vector<1152x192xbf16>, vector<64x192xf32> -> vector<64x192xf32>
    %28 = arith.addf %23, %27 : vector<64x192xf32>
    %c0_47 = arith.constant 0 : index
    %c0_48 = arith.constant 0 : index
    %29 = vector.load %arg8[%c0_47, %c0_48] : memref<64x192xf32, #tpu.memory_space<vmem>>, vector<64x192xf32>
    tpu.vector_store %arg8[%c0_47, %c0_48], %28 {strides = array<i32>} : memref<64x192xf32, #tpu.memory_space<vmem>>, vector<64x192xf32>,
    %c2_i32 = arith.constant 2 : i32
    %30 = arith.cmpi eq, %arg2, %c2_i32 : i32
    %31 = arith.extui %30 : i1 to i32
    %c0_i32_49 = arith.constant 0 : i32
    %32 = arith.cmpi ne, %31, %c0_i32_49 : i32
    scf.if %32 {
      %c0_50 = arith.constant 0 : index
      %c0_51 = arith.constant 0 : index
      %33 = vector.load %arg8[%c0_50, %c0_51] : memref<64x192xf32, #tpu.memory_space<vmem>>, vector<64x192xf32>
      %c0_52 = arith.constant 0 : index
      %c0_53 = arith.constant 0 : index
      %34 = vector.load %arg5[%c0_52, %c0_53] : memref<1x192xf32, #tpu.memory_space<vmem>>, vector<1x192xf32>
      %35 = vector.broadcast %34 : vector<1x192xf32> to vector<64x192xf32>
      %36 = arith.mulf %33, %35 : vector<64x192xf32>
      %c0_54 = arith.constant 0 : index
      %c0_55 = arith.constant 0 : index
      %37 = vector.load %arg6[%c0_54, %c0_55] : memref<1x192xf32, #tpu.memory_space<vmem>>, vector<1x192xf32>
      %38 = vector.broadcast %37 : vector<1x192xf32> to vector<64x192xf32>
      %39 = arith.addf %36, %38 : vector<64x192xf32>
      %cst_56 = arith.constant 0.000000e+00 : f32
      %40 = vector.broadcast %cst_56 : f32 to vector<64x192xf32>
      %41 = arith.maximumf %39, %40 : vector<64x192xf32>
      %42 = vector.shape_cast %41 : vector<64x192xf32> to vector<8x8x192xf32>
      %43 = arith.truncf %42 : vector<8x8x192xf32> to vector<8x8x192xbf16>
      %c0_57 = arith.constant 0 : index
      %c0_58 = arith.constant 0 : index
      %c0_59 = arith.constant 0 : index
      %c0_60 = arith.constant 0 : index
      %c0_61 = arith.constant 0 : index
      %44 = vector.load %arg7[%c0_57, %c0_58, %c0_59, %c0_60, %c0_61] : memref<1x1x8x8x192xbf16, #tpu.memory_space<vmem>>, vector<1x1x8x8x192xbf16>
      %45 = vector.shape_cast %44 : vector<1x1x8x8x192xbf16> to vector<8x8x192xbf16>
      %46 = vector.shape_cast %43 : vector<8x8x192xbf16> to vector<1x1x8x8x192xbf16>
      tpu.vector_store %arg7[%c0_57, %c0_58, %c0_59, %c0_60, %c0_61], %46 {strides = array<i32>} : memref<1x1x8x8x192xbf16, #tpu.memory_space<vmem>>, vector<1x1x8x8x192xbf16>,
    } else {
    }
    return
  }
  func.func @transform_0(%arg0: i32, %arg1: i32, %arg2: i32) -> (i32, i32, i32, i32, i32) {
    %0 = arith.addi %arg1, %arg2 : i32
    %c0_i32 = arith.constant 0 : i32
    %c0_i32_0 = arith.constant 0 : i32
    %c0_i32_1 = arith.constant 0 : i32
    %c0_i32_2 = arith.constant 0 : i32
    return %arg0, %0, %c0_i32, %c0_i32_0, %c0_i32_1 : i32, i32, i32, i32, i32
  }
  func.func @transform_1(%arg0: i32, %arg1: i32, %arg2: i32) -> (i32, i32, i32) {
    %c0_i32 = arith.constant 0 : i32
    %c0_i32_0 = arith.constant 0 : i32
    %c0_i32_1 = arith.constant 0 : i32
    %c0_i32_2 = arith.constant 0 : i32
    return %c0_i32, %c0_i32_0, %c0_i32_1 : i32, i32, i32
  }
  func.func @transform_2(%arg0: i32, %arg1: i32, %arg2: i32) -> (i32, i32) {
    %c0_i32 = arith.constant 0 : i32
    %c0_i32_0 = arith.constant 0 : i32
    %c0_i32_1 = arith.constant 0 : i32
    return %c0_i32, %c0_i32_0 : i32, i32
  }
  func.func @transform_3(%arg0: i32, %arg1: i32, %arg2: i32) -> (i32, i32) {
    %c0_i32 = arith.constant 0 : i32
    %c0_i32_0 = arith.constant 0 : i32
    %c0_i32_1 = arith.constant 0 : i32
    return %c0_i32, %c0_i32_0 : i32, i32
  }
  func.func @transform_4(%arg0: i32, %arg1: i32, %arg2: i32) -> (i32, i32, i32, i32, i32) {
    %c0_i32 = arith.constant 0 : i32
    %c0_i32_0 = arith.constant 0 : i32
    %c0_i32_1 = arith.constant 0 : i32
    %c0_i32_2 = arith.constant 0 : i32
    return %arg0, %arg1, %c0_i32, %c0_i32_0, %c0_i32_1 : i32, i32, i32, i32, i32
  }
}

module attributes {stable_mosaic.version = 11 : i64} {
  func.func @_maxpool_conv1x1_kernel(%arg0: i32, %arg1: i32, %arg2: i32, %arg3: memref<1x1x10x10x256xbf16, #tpu.memory_space<vmem>>, %arg4: memref<256x128xbf16, #tpu.memory_space<vmem>>, %arg5: memref<1x128xf32, #tpu.memory_space<vmem>>, %arg6: memref<1x128xf32, #tpu.memory_space<vmem>>, %arg7: memref<1x1x8x8x128xbf16, #tpu.memory_space<vmem>>, %arg8: memref<64x256xf32, #tpu.memory_space<vmem>>) attributes {dimension_semantics = [#tpu.dimension_semantics<parallel>, #tpu.dimension_semantics<parallel>, #tpu.dimension_semantics<arbitrary>], iteration_bounds = array<i64: 2, 4, 3>, scalar_prefetch = 0 : i64, scratch_operands = 1 : i64, tpu.core_type = #tpu.core_type<tc>, window_params = [{transform_indices = @transform_0, window_bounds = array<i64: 1, 1, 10, 10, 256>}, {pipeline_mode = #tpu.pipeline_mode<synchronous>, transform_indices = @transform_1, window_bounds = array<i64: 256, 128>}, {pipeline_mode = #tpu.pipeline_mode<synchronous>, transform_indices = @transform_2, window_bounds = array<i64: 1, 128>}, {pipeline_mode = #tpu.pipeline_mode<synchronous>, transform_indices = @transform_3, window_bounds = array<i64: 1, 128>}, {transform_indices = @transform_4, window_bounds = array<i64: 1, 1, 8, 8, 128>}]} {
    %c0 = arith.constant 0 : index
    %c0_0 = arith.constant 0 : index
    %c0_1 = arith.constant 0 : index
    %c0_2 = arith.constant 0 : index
    %c0_3 = arith.constant 0 : index
    %0 = vector.load %arg3[%c0, %c0_0, %c0_1, %c0_2, %c0_3] : memref<1x1x10x10x256xbf16, #tpu.memory_space<vmem>>, vector<1x1x10x8x256xbf16>
    %1 = vector.shape_cast %0 : vector<1x1x10x8x256xbf16> to vector<10x8x256xbf16>
    %c0_4 = arith.constant 0 : index
    %c0_5 = arith.constant 0 : index
    %c0_6 = arith.constant 0 : index
    %c1 = arith.constant 1 : index
    %c0_7 = arith.constant 0 : index
    %2 = vector.load %arg3[%c0_4, %c0_5, %c0_6, %c1, %c0_7] : memref<1x1x10x10x256xbf16, #tpu.memory_space<vmem>>, vector<1x1x10x8x256xbf16>
    %3 = vector.shape_cast %2 : vector<1x1x10x8x256xbf16> to vector<10x8x256xbf16>
    %4 = arith.maximumf %1, %3 : vector<10x8x256xbf16>
    %c0_8 = arith.constant 0 : index
    %c0_9 = arith.constant 0 : index
    %c0_10 = arith.constant 0 : index
    %c2 = arith.constant 2 : index
    %c0_11 = arith.constant 0 : index
    %5 = vector.load %arg3[%c0_8, %c0_9, %c0_10, %c2, %c0_11] : memref<1x1x10x10x256xbf16, #tpu.memory_space<vmem>>, vector<1x1x10x8x256xbf16>
    %6 = vector.shape_cast %5 : vector<1x1x10x8x256xbf16> to vector<10x8x256xbf16>
    %7 = arith.maximumf %4, %6 : vector<10x8x256xbf16>
    %8 = vector.extract_strided_slice %7 {offsets = [0, 0, 0], sizes = [8, 8, 256], strides = [1, 1, 1]} : vector<10x8x256xbf16> to vector<8x8x256xbf16>
    %9 = vector.extract_strided_slice %7 {offsets = [1, 0, 0], sizes = [8, 8, 256], strides = [1, 1, 1]} : vector<10x8x256xbf16> to vector<8x8x256xbf16>
    %10 = arith.maximumf %8, %9 : vector<8x8x256xbf16>
    %11 = vector.extract_strided_slice %7 {offsets = [2, 0, 0], sizes = [8, 8, 256], strides = [1, 1, 1]} : vector<10x8x256xbf16> to vector<8x8x256xbf16>
    %12 = arith.maximumf %10, %11 : vector<8x8x256xbf16>
    %13 = vector.shape_cast %12 : vector<8x8x256xbf16> to vector<64x256xbf16>
    %14 = arith.extf %13 : vector<64x256xbf16> to vector<64x256xf32>
    %c0_i32 = arith.constant 0 : i32
    %15 = arith.cmpi eq, %arg2, %c0_i32 : i32
    %16 = arith.extui %15 : i1 to i32
    %c0_i32_12 = arith.constant 0 : i32
    %17 = arith.cmpi ne, %16, %c0_i32_12 : i32
    scf.if %17 {
      %c0_16 = arith.constant 0 : index
      %c0_17 = arith.constant 0 : index
      %24 = vector.load %arg8[%c0_16, %c0_17] : memref<64x256xf32, #tpu.memory_space<vmem>>, vector<64x256xf32>
      tpu.vector_store %arg8[%c0_16, %c0_17], %14 {strides = array<i32>} : memref<64x256xf32, #tpu.memory_space<vmem>>, vector<64x256xf32>,
    } else {
    }
    %c0_i32_13 = arith.constant 0 : i32
    %18 = arith.cmpi ne, %arg2, %c0_i32_13 : i32
    %19 = arith.extui %18 : i1 to i32
    %c0_i32_14 = arith.constant 0 : i32
    %20 = arith.cmpi ne, %19, %c0_i32_14 : i32
    scf.if %20 {
      %c0_16 = arith.constant 0 : index
      %c0_17 = arith.constant 0 : index
      %24 = vector.load %arg8[%c0_16, %c0_17] : memref<64x256xf32, #tpu.memory_space<vmem>>, vector<64x256xf32>
      %25 = arith.maximumf %24, %14 : vector<64x256xf32>
      %c0_18 = arith.constant 0 : index
      %c0_19 = arith.constant 0 : index
      %26 = vector.load %arg8[%c0_18, %c0_19] : memref<64x256xf32, #tpu.memory_space<vmem>>, vector<64x256xf32>
      tpu.vector_store %arg8[%c0_18, %c0_19], %25 {strides = array<i32>} : memref<64x256xf32, #tpu.memory_space<vmem>>, vector<64x256xf32>,
    } else {
    }
    %c2_i32 = arith.constant 2 : i32
    %21 = arith.cmpi eq, %arg2, %c2_i32 : i32
    %22 = arith.extui %21 : i1 to i32
    %c0_i32_15 = arith.constant 0 : i32
    %23 = arith.cmpi ne, %22, %c0_i32_15 : i32
    scf.if %23 {
      %c0_16 = arith.constant 0 : index
      %c0_17 = arith.constant 0 : index
      %24 = vector.load %arg8[%c0_16, %c0_17] : memref<64x256xf32, #tpu.memory_space<vmem>>, vector<64x256xf32>
      %25 = arith.truncf %24 : vector<64x256xf32> to vector<64x256xbf16>
      %c0_18 = arith.constant 0 : index
      %c0_19 = arith.constant 0 : index
      %26 = vector.load %arg4[%c0_18, %c0_19] : memref<256x128xbf16, #tpu.memory_space<vmem>>, vector<256x128xbf16>
      %cst = arith.constant dense<0.000000e+00> : vector<64x128xf32>
      %27 = tpu.matmul %25, %26, %cst {dimension_numbers = #tpu.dot_dimension_numbers<[1], [0], [0], [1], [0, 0, 1, 1], [], []>} : vector<64x256xbf16>, vector<256x128xbf16>, vector<64x128xf32> -> vector<64x128xf32>
      %c0_20 = arith.constant 0 : index
      %c0_21 = arith.constant 0 : index
      %28 = vector.load %arg5[%c0_20, %c0_21] : memref<1x128xf32, #tpu.memory_space<vmem>>, vector<1x128xf32>
      %29 = vector.broadcast %28 : vector<1x128xf32> to vector<64x128xf32>
      %30 = arith.mulf %27, %29 : vector<64x128xf32>
      %c0_22 = arith.constant 0 : index
      %c0_23 = arith.constant 0 : index
      %31 = vector.load %arg6[%c0_22, %c0_23] : memref<1x128xf32, #tpu.memory_space<vmem>>, vector<1x128xf32>
      %32 = vector.broadcast %31 : vector<1x128xf32> to vector<64x128xf32>
      %33 = arith.addf %30, %32 : vector<64x128xf32>
      %cst_24 = arith.constant 0.000000e+00 : f32
      %34 = vector.broadcast %cst_24 : f32 to vector<64x128xf32>
      %35 = arith.maximumf %33, %34 : vector<64x128xf32>
      %36 = vector.shape_cast %35 : vector<64x128xf32> to vector<8x8x128xf32>
      %37 = arith.truncf %36 : vector<8x8x128xf32> to vector<8x8x128xbf16>
      %c0_25 = arith.constant 0 : index
      %c0_26 = arith.constant 0 : index
      %c0_27 = arith.constant 0 : index
      %c0_28 = arith.constant 0 : index
      %c0_29 = arith.constant 0 : index
      %38 = vector.load %arg7[%c0_25, %c0_26, %c0_27, %c0_28, %c0_29] : memref<1x1x8x8x128xbf16, #tpu.memory_space<vmem>>, vector<1x1x8x8x128xbf16>
      %39 = vector.shape_cast %38 : vector<1x1x8x8x128xbf16> to vector<8x8x128xbf16>
      %40 = vector.shape_cast %37 : vector<8x8x128xbf16> to vector<1x1x8x8x128xbf16>
      tpu.vector_store %arg7[%c0_25, %c0_26, %c0_27, %c0_28, %c0_29], %40 {strides = array<i32>} : memref<1x1x8x8x128xbf16, #tpu.memory_space<vmem>>, vector<1x1x8x8x128xbf16>,
    } else {
    }
    return
  }
  func.func @transform_0(%arg0: i32, %arg1: i32, %arg2: i32) -> (i32, i32, i32, i32, i32) {
    %0 = arith.addi %arg1, %arg2 : i32
    %c0_i32 = arith.constant 0 : i32
    %c0_i32_0 = arith.constant 0 : i32
    %c0_i32_1 = arith.constant 0 : i32
    %c0_i32_2 = arith.constant 0 : i32
    return %arg0, %0, %c0_i32, %c0_i32_0, %c0_i32_1 : i32, i32, i32, i32, i32
  }
  func.func @transform_1(%arg0: i32, %arg1: i32, %arg2: i32) -> (i32, i32) {
    %c0_i32 = arith.constant 0 : i32
    %c0_i32_0 = arith.constant 0 : i32
    %c0_i32_1 = arith.constant 0 : i32
    return %c0_i32, %c0_i32_0 : i32, i32
  }
  func.func @transform_2(%arg0: i32, %arg1: i32, %arg2: i32) -> (i32, i32) {
    %c0_i32 = arith.constant 0 : i32
    %c0_i32_0 = arith.constant 0 : i32
    %c0_i32_1 = arith.constant 0 : i32
    return %c0_i32, %c0_i32_0 : i32, i32
  }
  func.func @transform_3(%arg0: i32, %arg1: i32, %arg2: i32) -> (i32, i32) {
    %c0_i32 = arith.constant 0 : i32
    %c0_i32_0 = arith.constant 0 : i32
    %c0_i32_1 = arith.constant 0 : i32
    return %c0_i32, %c0_i32_0 : i32, i32
  }
  func.func @transform_4(%arg0: i32, %arg1: i32, %arg2: i32) -> (i32, i32, i32, i32, i32) {
    %c0_i32 = arith.constant 0 : i32
    %c0_i32_0 = arith.constant 0 : i32
    %c0_i32_1 = arith.constant 0 : i32
    %c0_i32_2 = arith.constant 0 : i32
    return %arg0, %arg1, %c0_i32, %c0_i32_0, %c0_i32_1 : i32, i32, i32, i32, i32
  }
}

</mosaic_0001>

<bundles_post_ra>
// kernel: mixed_3c_forward.4
= control target key start
LH: loop header
LB: loop body
LE: loop exit
PB: predicated region body
PF: predicated region fallthrough
CT: control target
= control target key end

     0   :  { %s1597_s15 = smov 0   ;;  %s1946_s0 = inlined_call_operand.vmem [shape: bf16[512,256], index: 0, kind: input, shape index: {}]   ;;  %s1947_s1 = inlined_call_operand.vmem [shape: bf16[256,288], index: 1, kind: input, shape index: {}]   ;;  %s1948_s2 = inlined_call_operand.vmem [shape: f32[1,288], index: 2, kind: input, shape index: {}]   ;;  %s1949_s3 = inlined_call_operand.vmem [shape: f32[1,288], index: 3, kind: input, shape index: {}]   ;;  %s1950_s4 = inlined_call_operand.vmem [shape: bf16[512,288], index: 4, kind: output, shape index: {}]  }
   0x1 LB: > { %s1262_s16 = sadd.s32 4294967295, %s1570_s15   ;;  %p1266_p0 = scmp.ge.s32.totalorder %s1570_s15, 1  ;;  %s1570_s15 = sphi %s1597_s15, %s14_s15  }
   0x2   : > { %p164_p1 = scmp.lt.s32.totalorder %s1570_s15, 5 }
   0x4   : > { %p165_p2 = pnand %p1266_p0, %p164_p1 }
   0x5   : > { %v1476_v0 = vld [vmem:[%s1947_s1 + $0x4] ss:$12 sps:$4 sm:$0xff] (!%p165_p2)   ;;  %v1478_v1 = vld [vmem:[%s1947_s1] ss:$12 sps:$4 sm:$0xff] (!%p165_p2)   ;;  %v1479_v2 = vld [vmem:[%s1947_s1 + $0x1c] ss:$12 sps:$4 sm:$0xff] (!%p165_p2)  }
   0x6   : > { %168 = sbr.rel (%p165_p2) target bundleno = 350 (0x15e), region = 36  ;;  %623 = vmatprep.subr.bf16.mxu0 (!%p165_p2), %v1476_v0  ;;  %v1481_v3 = vld [vmem:[%s1947_s1 + $0x18] ss:$12 sps:$4 sm:$0xff] (!%p165_p2)   ;;  %v1482_v4 = vld [vmem:[%s1947_s1 + $0x34] ss:$12 sps:$4 sm:$0xff] (!%p165_p2)   ;;  %s1267_s27 = sshll.u32 (!%p165_p2), %s1262_s16, 4  ;;  %v835_v0 = vlaneseq (!%p165_p2) }
   0x7   : > { %624 = vmatpush1.bf16.msra.mxu0 (!%p165_p2), %v1478_v1  ;;  %v1484_v5 = vld [vmem:[%s1947_s1 + $0x30] ss:$12 sps:$4 sm:$0xff] (!%p165_p2)   ;;  %v1485_v6 = vld [vmem:[%s1947_s1 + $0x4c] ss:$12 sps:$4 sm:$0xff] (!%p165_p2)   ;;  %v1497_v7 = vld [vmem:[%s1947_s1 + $0xc8] ss:$12 sps:$4 sm:$0xff] (!%p165_p2)  }
   0x8   : > { %625 = vmatprep.subr.bf16.mxu0 (!%p165_p2), %v1479_v2  ;;  %v1487_v8 = vld [vmem:[%s1947_s1 + $0x48] ss:$12 sps:$4 sm:$0xff] (!%p165_p2)   ;;  %v1488_v9 = vld [vmem:[%s1947_s1 + $0x64] ss:$12 sps:$4 sm:$0xff] (!%p165_p2)   ;;  %1403 = vmatprep.subr.bf16.mxu1 (!%p165_p2), %v1497_v7  ;;  %v1502_v11 = vld [vmem:[%s1947_s1 + $0xe0] ss:$12 sps:$4 sm:$0xff] (!%p165_p2)  }
   0x9   : > { %v1500_v10 = vld [vmem:[%s1947_s1 + $0x8] ss:$12 sps:$4 sm:$0xff] (!%p165_p2)   ;;  %v1490_v12 = vld [vmem:[%s1947_s1 + $0x60] ss:$12 sps:$4 sm:$0xff] (!%p165_p2)   ;;  %v1507_v15 = vld [vmem:[%s1947_s1 + $0xf8] ss:$12 sps:$4 sm:$0xff] (!%p165_p2)  }
   0xa   : > { %1404 = vmatpush3.bf16.msra.mxu1 (!%p165_p2), %v1500_v10  ;;  %v1491_v13 = vld [vmem:[%s1947_s1 + $0x7c] ss:$12 sps:$4 sm:$0xff] (!%p165_p2)   ;;  %v1505_v14 = vld [vmem:[%s1947_s1 + $0x20] ss:$12 sps:$4 sm:$0xff] (!%p165_p2)   ;;  %v1493_v16 = vld [vmem:[%s1947_s1 + $0x78] ss:$12 sps:$4 sm:$0xff] (!%p165_p2)  }
   0xb   : > { %626 = vmatpush1.bf16.msra.mxu0 (!%p165_p2), %v1481_v3  ;;  %1405 = vmatprep.subr.bf16.mxu1 (!%p165_p2), %v1502_v11  ;;  %v1510_v17 = vld [vmem:[%s1947_s1 + $0x38] ss:$12 sps:$4 sm:$0xff] (!%p165_p2)   ;;  %v1494_v18 = vld [vmem:[%s1947_s1 + $0x94] ss:$12 sps:$4 sm:$0xff] (!%p165_p2)   ;;  %v1512_v19 = vld [vmem:[%s1947_s1 + $0x110] ss:$12 sps:$4 sm:$0xff] (!%p165_p2)  }
   0xc   : > { %627 = vmatprep.subr.bf16.mxu0 (!%p165_p2), %v1482_v4  ;;  %p193_p3 = scmp.lt.s32.totalorder (!%p165_p2), %s1267_s27, 63  ;;  %v1496_v20 = vld [vmem:[%s1947_s1 + $0x90] ss:$12 sps:$4 sm:$0xff] (!%p165_p2)   ;;  %v1517_v22 = vld [vmem:[%s1947_s1 + $0x128] ss:$12 sps:$4 sm:$0xff] (!%p165_p2)   ;;  %v836_v1 = vshrl.u32 (!%p165_p2), %v835_v0, 7 }
   0xd   : > { %v1515_v21 = vld [vmem:[%s1947_s1 + $0x50] ss:$12 sps:$4 sm:$0xff]   ;;  %v1498_v23 = vld [vmem:[%s1947_s1 + $0xac] ss:$12 sps:$4 sm:$0xff]   ;;  %v1501_v24 = vld [vmem:[%s1947_s1 + $0xa8] ss:$12 sps:$4 sm:$0xff]  }
   0xe   : > { %1406 = vmatpush3.bf16.msra.mxu1 %v1505_v14  ;;  %s1952_s27 = smov (!%p193_p3, %s1267_s27), 63  ;;  %v1520_v25 = vld [vmem:[%s1947_s1 + $0x68] ss:$12 sps:$4 sm:$0xff]   ;;  %v1522_v26 = vld [vmem:[%s1947_s1 + $0x140] ss:$12 sps:$4 sm:$0xff]   ;;  %v845_v2 = vsub.s32 2, %v836_v1 }
   0xf   : > { %628 = vmatpush1.bf16.msra.mxu0 %v1484_v5  ;;  %1407 = vmatprep.subr.bf16.mxu1 %v1507_v15  ;;  %v1503_v27 = vld [vmem:[%s1947_s1 + $0xc4] ss:$12 sps:$4 sm:$0xff]   ;;  %v1506_v28 = vld [vmem:[%s1947_s1 + $0xc0] ss:$12 sps:$4 sm:$0xff]   ;;  %s1370_s30 = sshll.u32 %s1952_s27, 3  ;;  %vm1172_vm0 = vcmask 257024  }
  0x10   : > { %629 = vmatprep.subr.bf16.mxu0 %v1485_v6  ;;  %v1525_v29 = vld [vmem:[%s1947_s1 + $0x80] ss:$12 sps:$4 sm:$0xff]   ;;  %v1527_v30 = vld [vmem:[%s1947_s1 + $0x158] ss:$12 sps:$4 sm:$0xff]   ;;  %v1508_v31 = vld [vmem:[%s1947_s1 + $0xdc] ss:$12 sps:$4 sm:$0xff]   ;;  %s1712_s12 = scalar_lea.vmem %s1946_s0, %s1370_s30 }
  0x11   : > { %v1530_v32 = vld [vmem:[%s1947_s1 + $0x98] ss:$12 sps:$4 sm:$0xff]   ;;  %v1532_v34 = vld [vmem:[%s1947_s1 + $0x170] ss:$12 sps:$4 sm:$0xff]   ;;  %v1513_v35 = vld [vmem:[%s1947_s1 + $0xf4] ss:$12 sps:$4 sm:$0xff]  }
  0x12   : > { %1408 = vmatpush3.bf16.msra.mxu1 %v1510_v17  ;;  %v1511_v33 = vld [vmem:[%s1947_s1 + $0xd8] ss:$12 sps:$4 sm:$0xff]   ;;  %v1535_v37 = vld [vmem:[%s1947_s1 + $0xb0] ss:$12 sps:$4 sm:$0xff]   ;;  %v1537_v40 = vld [vmem:[%s1712_s12] ss:$8 sps:$4 sm:$0xff]  }
  0x13   : > { %630 = vmatpush1.bf16.msra.mxu0 %v1487_v8  ;;  %1409 = vmatprep.subr.bf16.mxu1 %v1512_v19  ;;  %v1539_v36 = vld [vmem:[%s1712_s12 + $0x4] ss:$8 sps:$4 sm:$0xff]   ;;  %v1516_v38 = vld [vmem:[%s1947_s1 + $0xf0] ss:$12 sps:$4 sm:$0xff]   ;;  %v1521_v42 = vld [vmem:[%s1947_s1 + $0x108] ss:$12 sps:$4 sm:$0xff]  }
  0x14   : > { %631 = vmatprep.subr.bf16.mxu0 %v1488_v9  ;;  %v1518_v39 = vld [vmem:[%s1947_s1 + $0x10c] ss:$12 sps:$4 sm:$0xff]   ;;  %768 = vmatprep.mubr.bf16.mxu1 %v1539_v36  ;;  %v1543_v41 = vld [vmem:[%s1712_s12 + $0x14] ss:$8 sps:$4 sm:$0xff]   ;;  %v1523_v43 = vld [vmem:[%s1947_s1 + $0x124] ss:$12 sps:$4 sm:$0xff]  }
  0x15   : > { %655 = vmatprep.mubr.bf16.mxu0 %v1539_v36  ;;  %v1526_v44 = vld [vmem:[%s1947_s1 + $0x120] ss:$12 sps:$4 sm:$0xff]   ;;  %v1528_v45 = vld [vmem:[%s1947_s1 + $0x13c] ss:$12 sps:$4 sm:$0xff]   ;;  %v1545_v46 = vld [vmem:[%s1712_s12 + $0x10] ss:$8 sps:$4 sm:$0xff]  }
  0x16   : > { %1410 = vmatpush3.bf16.msra.mxu1 %v1515_v21  ;;  %v1546_v47 = vld [vmem:[%s1712_s12 + $0x24] ss:$8 sps:$4 sm:$0xff]   ;;  %v1533_v49 = vld [vmem:[%s1947_s1 + $0x154] ss:$12 sps:$4 sm:$0xff]   ;;  %v1536_v50 = vld [vmem:[%s1947_s1 + $0x150] ss:$12 sps:$4 sm:$0xff]  }
  0x17   : > { %632 = vmatpush1.bf16.msra.mxu0 %v1490_v12  ;;  %1411 = vmatprep.subr.bf16.mxu1 %v1517_v22  ;;  %v1531_v48 = vld [vmem:[%s1947_s1 + $0x138] ss:$12 sps:$4 sm:$0xff]   ;;  %v1548_v52 = vld [vmem:[%s1712_s12 + $0x20] ss:$8 sps:$4 sm:$0xff]   ;;  %v1549_v53 = vld [vmem:[%s1712_s12 + $0x34] ss:$8 sps:$4 sm:$0xff]  }
  0x18   : > { %633 = vmatprep.subr.bf16.mxu0 %v1491_v13  ;;  %v1540_v51 = vld [vmem:[%s1947_s1 + $0x16c] ss:$12 sps:$4 sm:$0xff]   ;;  %v1542_v54 = vld [vmem:[%s1947_s1 + $0x168] ss:$12 sps:$4 sm:$0xff]   ;;  %v833_v3 = vld [vmem:[%s1948_s2] sm:$0x7] }
  0x19   : > { %v1551_v55 = vld [vmem:[%s1712_s12 + $0x30] ss:$8 sps:$4 sm:$0xff]   ;;  %v1552_v56 = vld [vmem:[%s1712_s12 + $0x44] ss:$8 sps:$4 sm:$0xff]   ;;  %v1554_v57 = vld [vmem:[%s1712_s12 + $0x40] ss:$8 sps:$4 sm:$0xff]   ;;  %v1781_v6 = vrot.slane %v833_v3, %v845_v2 }
  0x1a   : > { %1412 = vmatpush3.bf16.msra.mxu1 %v1520_v25  ;;  %v1555_v58 = vld [vmem:[%s1712_s12 + $0x54] ss:$8 sps:$4 sm:$0xff]   ;;  %v1557_v59 = vld [vmem:[%s1712_s12 + $0x50] ss:$8 sps:$4 sm:$0xff]   ;;  %v1558_v60 = vld [vmem:[%s1712_s12 + $0x64] ss:$8 sps:$4 sm:$0xff]  }
  0x1b   : > { %634 = vmatpush1.bf16.msra.mxu0 %v1493_v16  ;;  %1413 = vmatprep.subr.bf16.mxu1 %v1522_v26  ;;  %v1560_v61 = vld [vmem:[%s1712_s12 + $0x60] ss:$8 sps:$4 sm:$0xff]   ;;  %v1561_v62 = vld [vmem:[%s1712_s12 + $0x74] ss:$8 sps:$4 sm:$0xff]   ;;  %v1563_v63 = vld [vmem:[%s1712_s12 + $0x70] ss:$8 sps:$4 sm:$0xff]  }
  0x1c   : > { %635 = vmatprep.subr.bf16.mxu0 %v1494_v18  ;;  %v898_v4 = vld [vmem:[%s1949_s3] sm:$0x7]  ;;  %s1467_s12 = smul.u32 12, %s1952_s27 }
  0x1d   : > { %v1783_v9 = vrot.slane %v898_v4, %v845_v2 }
  0x1e   : > { %1414 = vmatpush3.bf16.msra.mxu1 %v1525_v29  ;;  %s1793_s29 = scalar_lea.vmem %s1950_s4, %s1467_s12 }
  0x1f   : > { %636 = vmatpush1.bf16.msra.mxu0 %v1496_v20  ;;  %1415 = vmatprep.subr.bf16.mxu1 %v1527_v30 }
  0x20   : > { %637 = vmatprep.subr.bf16.mxu0 %v1498_v23 }
  0x22   : > { %1416 = vmatpush3.bf16.msra.mxu1 %v1530_v32 }
  0x23   : > { %638 = vmatpush1.bf16.msra.mxu0 %v1501_v24  ;;  %1417 = vmatprep.subr.bf16.mxu1 %v1532_v34 }
  0x24   : > { %639 = vmatprep.subr.bf16.mxu0 %v1503_v27 }
  0x26   : > { %1418 = vmatpush3.bf16.msra.mxu1 %v1535_v37 }
  0x27   : > { %640 = vmatpush1.bf16.msra.mxu0 %v1506_v28  ;;  %v837_v28 = vsub.s32 0, %v836_v1 }
  0x28   : > { %641 = vmatprep.subr.bf16.mxu0 %v1508_v31  ;;  %v841_v31 = vsub.s32 1, %v836_v1 }
  0x29   : > { %769 = vmatmul.mubr.bf16.vlgmr.msra.gmra.mrb[0].mxu1 %v1537_v40  ;;  %v1803_v36 = vrot.slane %v833_v3, %v837_v28 }
  0x2a   : > { %776 = vmatprep.mubr.bf16.mxu1 %v1543_v41 }
  0x2b   : > { %642 = vmatpush1.bf16.msra.mxu0 %v1511_v33 }
  0x2c   : > { %643 = vmatprep.subr.bf16.mxu0 %v1513_v35 }
  0x2f   : > { %644 = vmatpush1.bf16.msra.mxu0 %v1516_v38 }
  0x30   : > { %645 = vmatprep.subr.bf16.mxu0 %v1518_v39 }
  0x31   : > { %777 = vmatmul.mubr.bf16.gmra.mrb[4].mxu1 %v1545_v46 }
  0x32   : > { %784 = vmatprep.mubr.bf16.mxu1 %v1546_v47 }
  0x33   : > { %646 = vmatpush1.bf16.msra.mxu0 %v1521_v42 }
  0x34   : > { %647 = vmatprep.subr.bf16.mxu0 %v1523_v43  ;;  %v1807_v43 = vrot.slane %v898_v4, %v837_v28 }
  0x37   : > { %648 = vmatpush1.bf16.msra.mxu0 %v1526_v44 }
  0x38   : > { %649 = vmatprep.subr.bf16.mxu0 %v1528_v45 }
  0x39   : > { %785 = vmatmul.mubr.bf16.gmra.mrb[8].mxu1 %v1548_v52 }
  0x3a   : > { %792 = vmatprep.mubr.bf16.mxu1 %v1549_v53 }
  0x3b   : > { %650 = vmatpush1.bf16.msra.mxu0 %v1531_v48  ;;  %v1812_v48 = vrot.slane %v898_v4, %v841_v31 }
  0x3c   : > { %651 = vmatprep.subr.bf16.mxu0 %v1533_v49 }
  0x3f   : > { %652 = vmatpush1.bf16.msra.mxu0 %v1536_v50 }
  0x40   : > { %653 = vmatprep.subr.bf16.mxu0 %v1540_v51 }
  0x41   : > { %793 = vmatmul.mubr.bf16.gmra.mrb[12].mxu1 %v1551_v55 }
  0x42   : > { %800 = vmatprep.mubr.bf16.mxu1 %v1552_v56 }
  0x43   : > { %654 = vmatpush1.bf16.msra.mxu0 %v1542_v54 }
  0x46   : > { %656 = vmatmul.mubr.bf16.vlgmr.msra.gmra.mrb[0].mxu0 %v1537_v40 }
  0x47   : > { %665 = vmatprep.mubr.bf16.mxu0 %v1543_v41  ;;  %v1805_v41 = vrot.slane %v833_v3, %v841_v31 }
  0x49   : > { %801 = vmatmul.mubr.bf16.gmra.mrb[16].mxu1 %v1554_v57 }
  0x4a   : > { %808 = vmatprep.mubr.bf16.mxu1 %v1555_v58 }
  0x4e   : > { %666 = vmatmul.mubr.bf16.gmra.mrb[4].mxu0 %v1545_v46 }
  0x4f   : > { %675 = vmatprep.mubr.bf16.mxu0 %v1546_v47 }
  0x51   : > { %809 = vmatmul.mubr.bf16.gmra.mrb[20].mxu1 %v1557_v59 }
  0x52   : > { %816 = vmatprep.mubr.bf16.mxu1 %v1558_v60 }
  0x56   : > { %676 = vmatmul.mubr.bf16.gmra.mrb[8].mxu0 %v1548_v52 }
  0x57   : > { %685 = vmatprep.mubr.bf16.mxu0 %v1549_v53 }
  0x59   : > { %817 = vmatmul.mubr.bf16.gmra.mrb[24].mxu1 %v1560_v61 }
  0x5a   : > { %824 = vmatprep.mubr.bf16.mxu1 %v1561_v62 }
  0x5e   : > { %686 = vmatmul.mubr.bf16.gmra.mrb[12].mxu0 %v1551_v55 }
  0x5f   : > { %695 = vmatprep.mubr.bf16.mxu0 %v1552_v56 }
  0x61   : > { %825 = vmatmul.mubr.bf16.gmra.mrb[28].mxu1 %v1563_v63 }
  0x66   : > { %696 = vmatmul.mubr.bf16.gmra.mrb[16].mxu0 %v1554_v57 }
  0x67   : > { %705 = vmatprep.mubr.bf16.mxu0 %v1555_v58 }
  0x6e   : > { %706 = vmatmul.mubr.bf16.gmra.mrb[20].mxu0 %v1557_v59 }
  0x6f   : > { %715 = vmatprep.mubr.bf16.mxu0 %v1558_v60 }
  0x76   : > { %716 = vmatmul.mubr.bf16.gmra.mrb[24].mxu0 %v1560_v61 }
  0x77   : > { %725 = vmatprep.mubr.bf16.mxu0 %v1561_v62 }
  0x7e   : > { %726 = vmatmul.mubr.bf16.gmra.mrb[28].mxu0 %v1563_v63 }
  0xfc   : > { %v1419_v5 = vpop.f32.mrb[0].mxu1 }
  0xfd   : > { %v1420_v7 = vpop.f32.mrb[1].mxu1 }
  0xfe   : > { %v1421_v8 = vadd.f32 %v1420_v7, %v1419_v5  ;;  %v1422_v10 = vpop.f32.mrb[2].mxu1 }
  0xff   : > { %v1423_v11 = vpop.f32.mrb[3].mxu1 }
 0x100   : > { %v852_v12 = vmul.f32 %v1421_v8, %v1781_v6  ;;  %v1424_v13 = vadd.f32 %v1423_v11, %v1422_v10 }
 0x102   : > { %v917_v14 = vadd.f32 %v1783_v9, %v852_v12  ;;  %v855_v15 = vmul.f32 %v1424_v13, %v1781_v6 }
 0x104   : > { %v965_v16 = vmax.f32 %v917_v14, 0.0  ;;  %v920_v17 = vadd.f32 %v1783_v9, %v855_v15  ;;  %v1425_v18 = vpop.f32.mrb[4].mxu1 }
 0x105   : > { %v1426_v19 = vpop.f32.mrb[5].mxu1 }
 0x106   : > { %v1372_v20 = vpack.c.bf16 %v965_v16, %v965_v16  ;;  %v968_v21 = vmax.f32 %v920_v17, 0.0  ;;  %v1427_v22 = vadd.f32 %v1426_v19, %v1425_v18  ;;  %v1428_v23 = vpop.f32.mrb[6].mxu1 }
 0x107   : > { %v1429_v24 = vpop.f32.mrb[7].mxu1 }
 0x108   : > { %1173 = vst.msk [vmem:[%s1793_s29 + $0x8] sm:$0xf] %vm1172_vm0, %v1372_v20  ;;  %v1374_v25 = vpack.c.bf16 %v968_v21, %v968_v21  ;;  %v858_v26 = vmul.f32 %v1427_v22, %v1781_v6  ;;  %v1430_v27 = vadd.f32 %v1429_v24, %v1428_v23 }
 0x10a   : > { %1175 = vst.msk [vmem:[%s1793_s29 + $0x14] sm:$0xf] %vm1172_vm0, %v1374_v25  ;;  %v923_v29 = vadd.f32 %v1783_v9, %v858_v26  ;;  %v861_v30 = vmul.f32 %v1430_v27, %v1781_v6 }
 0x10c   : > { %v971_v32 = vmax.f32 %v923_v29, 0.0  ;;  %v926_v33 = vadd.f32 %v1783_v9, %v861_v30  ;;  %v1431_v34 = vpop.f32.mrb[8].mxu1 }
 0x10d   : > { %v1432_v35 = vpop.f32.mrb[9].mxu1 }
 0x10e   : > { %v1376_v37 = vpack.c.bf16 %v971_v32, %v971_v32  ;;  %v974_v38 = vmax.f32 %v926_v33, 0.0  ;;  %v1433_v39 = vadd.f32 %v1432_v35, %v1431_v34  ;;  %v1434_v40 = vpop.f32.mrb[10].mxu1 }
 0x10f   : > { %v1435_v42 = vpop.f32.mrb[11].mxu1 }
 0x110   : > { %1177 = vst.msk [vmem:[%s1793_s29 + $0x20] sm:$0xf] %vm1172_vm0, %v1376_v37  ;;  %v1378_v44 = vpack.c.bf16 %v974_v38, %v974_v38  ;;  %v864_v45 = vmul.f32 %v1433_v39, %v1781_v6  ;;  %v1436_v46 = vadd.f32 %v1435_v42, %v1434_v40 }
 0x112   : > { %1179 = vst.msk [vmem:[%s1793_s29 + $0x2c] sm:$0xf] %vm1172_vm0, %v1378_v44  ;;  %v929_v51 = vadd.f32 %v1783_v9, %v864_v45  ;;  %v867_v52 = vmul.f32 %v1436_v46, %v1781_v6 }
 0x114   : > { %v977_v58 = vmax.f32 %v929_v51, 0.0  ;;  %v932_v59 = vadd.f32 %v1783_v9, %v867_v52  ;;  %v1437_v60 = vpop.f32.mrb[12].mxu1 }
 0x115   : > { %v1438_v63 = vpop.f32.mrb[13].mxu1 }
 0x116   : > { %v1380_v2 = vpack.c.bf16 %v977_v58, %v977_v58  ;;  %v980_v3 = vmax.f32 %v932_v59, 0.0  ;;  %v1440_v4 = vpop.f32.mrb[14].mxu1  ;;  %v1439_v8 = vadd.f32 %v1438_v63, %v1437_v60 }
 0x117   : > { %v1441_v10 = vpop.f32.mrb[15].mxu1 }
 0x118   : > { %1181 = vst.msk [vmem:[%s1793_s29 + $0x38] sm:$0xf] %vm1172_vm0, %v1380_v2  ;;  %v1382_v12 = vpack.c.bf16 %v980_v3, %v980_v3  ;;  %v1442_v13 = vadd.f32 %v1441_v10, %v1440_v4  ;;  %v870_v17 = vmul.f32 %v1439_v8, %v1781_v6 }
 0x119   : > { %v657_v47 = vpop.f32.mrb[0].mxu0 }
 0x11a   : > { %v850_v49 = vmul.f32 %v1803_v36, %v657_v47  ;;  %v659_v50 = vpop.f32.mrb[1].mxu0  ;;  %1183 = vst.msk [vmem:[%s1793_s29 + $0x44] sm:$0xf] %vm1172_vm0, %v1382_v12  ;;  %v873_v20 = vmul.f32 %v1442_v13, %v1781_v6  ;;  %v935_v24 = vadd.f32 %v1783_v9, %v870_v17 }
 0x11b   : > { %v851_v53 = vmul.f32 %v1805_v41, %v659_v50  ;;  %v661_v54 = vpop.f32.mrb[2].mxu0 }
 0x11c   : > { %v915_v55 = vadd.f32 %v1807_v43, %v850_v49  ;;  %v853_v56 = vmul.f32 %v1803_v36, %v661_v54  ;;  %v663_v57 = vpop.f32.mrb[3].mxu0  ;;  %v938_v28 = vadd.f32 %v1783_v9, %v873_v20  ;;  %v1443_v29 = vpop.f32.mrb[16].mxu1  ;;  %v983_v32 = vmax.f32 %v935_v24, 0.0 }
 0x11d   : > { %v916_v61 = vadd.f32 %v1812_v48, %v851_v53  ;;  %v854_v62 = vmul.f32 %v1805_v41, %v663_v57  ;;  %v1444_v33 = vpop.f32.mrb[17].mxu1 }
 0x11e   : > { %v963_v0 = vmax.f32 %v915_v55, 0.0  ;;  %v918_v1 = vadd.f32 %v1807_v43, %v853_v56  ;;  %v986_v37 = vmax.f32 %v938_v28, 0.0  ;;  %v1445_v38 = vadd.f32 %v1444_v33, %v1443_v29  ;;  %v1446_v39 = vpop.f32.mrb[18].mxu1 }
 0x11f   : > { %v964_v5 = vmax.f32 %v916_v61, 0.0  ;;  %v919_v7 = vadd.f32 %v1812_v48, %v854_v62  ;;  %v1384_v44 = vpack.c.bf16 %v983_v32, %v983_v32  ;;  %v1447_v45 = vpop.f32.mrb[19].mxu1 }
 0x120   : > { %v966_v11 = vmax.f32 %v918_v1, 0.0  ;;  %v1386_v47 = vpack.c.bf16 %v986_v37, %v986_v37  ;;  %v876_v49 = vmul.f32 %v1445_v38, %v1781_v6  ;;  %v1448_v50 = vadd.f32 %v1447_v45, %v1446_v39 }
 0x121   : > { %v1371_v14 = vpack.c.bf16 %v964_v5, %v963_v0  ;;  %v967_v15 = vmax.f32 %v919_v7, 0.0  ;;  %v667_v16 = vpop.f32.mrb[4].mxu0  ;;  %1185 = vst.msk [vmem:[%s1793_s29 + $0x50] sm:$0xf] %vm1172_vm0, %v1384_v44 }
 0x122   : > { %v856_v18 = vmul.f32 %v1803_v36, %v667_v16  ;;  %v669_v19 = vpop.f32.mrb[5].mxu0  ;;  %1187 = vst.msk [vmem:[%s1793_s29 + $0x5c] sm:$0xf] %vm1172_vm0, %v1386_v47  ;;  %v941_v56 = vadd.f32 %v1783_v9, %v876_v49  ;;  %v879_v57 = vmul.f32 %v1448_v50, %v1781_v6 }
 0x123   : > { %1171 = vst [vmem:[%s1793_s29] sm:$0xff] %v1371_v14  ;;  %v1373_v21 = vpack.c.bf16 %v967_v15, %v966_v11  ;;  %v857_v22 = vmul.f32 %v1805_v41, %v669_v19  ;;  %v671_v23 = vpop.f32.mrb[6].mxu0 }
 0x124   : > { %v921_v25 = vadd.f32 %v1807_v43, %v856_v18  ;;  %v859_v26 = vmul.f32 %v1803_v36, %v671_v23  ;;  %v673_v27 = vpop.f32.mrb[7].mxu0  ;;  %v989_v0 = vmax.f32 %v941_v56, 0.0  ;;  %v944_v1 = vadd.f32 %v1783_v9, %v879_v57  ;;  %v1449_v2 = vpop.f32.mrb[20].mxu1 }
 0x125   : > { %1174 = vst [vmem:[%s1793_s29 + $0xc] sm:$0xff] %v1373_v21  ;;  %v922_v30 = vadd.f32 %v1812_v48, %v857_v22  ;;  %v860_v31 = vmul.f32 %v1805_v41, %v673_v27  ;;  %v1450_v5 = vpop.f32.mrb[21].mxu1 }
 0x126   : > { %v969_v34 = vmax.f32 %v921_v25, 0.0  ;;  %v924_v35 = vadd.f32 %v1807_v43, %v859_v26  ;;  %v1388_v10 = vpack.c.bf16 %v989_v0, %v989_v0  ;;  %v992_v11 = vmax.f32 %v944_v1, 0.0  ;;  %v1452_v12 = vpop.f32.mrb[22].mxu1 }
 0x127   : > { %v970_v40 = vmax.f32 %v922_v30, 0.0  ;;  %v925_v42 = vadd.f32 %v1812_v48, %v860_v31  ;;  %v1451_v15 = vadd.f32 %v1450_v5, %v1449_v2  ;;  %v1453_v16 = vpop.f32.mrb[23].mxu1 }
 0x128   : > { %v972_v46 = vmax.f32 %v924_v35, 0.0  ;;  %1189 = vst.msk [vmem:[%s1793_s29 + $0x68] sm:$0xf] %vm1172_vm0, %v1388_v10  ;;  %v1390_v18 = vpack.c.bf16 %v992_v11, %v992_v11  ;;  %v1454_v19 = vadd.f32 %v1453_v16, %v1452_v12 }
 0x129   : > { %v1375_v51 = vpack.c.bf16 %v970_v40, %v969_v34  ;;  %v973_v52 = vmax.f32 %v925_v42, 0.0  ;;  %v677_v53 = vpop.f32.mrb[8].mxu0  ;;  %v882_v23 = vmul.f32 %v1451_v15, %v1781_v6 }
 0x12a   : > { %v862_v54 = vmul.f32 %v1803_v36, %v677_v53  ;;  %v679_v55 = vpop.f32.mrb[9].mxu0  ;;  %1191 = vst.msk [vmem:[%s1793_s29 + $0x74] sm:$0xf] %vm1172_vm0, %v1390_v18  ;;  %v885_v26 = vmul.f32 %v1454_v19, %v1781_v6 }
 0x12b   : > { %1176 = vst [vmem:[%s1793_s29 + $0x18] sm:$0xff] %v1375_v51  ;;  %v1377_v58 = vpack.c.bf16 %v973_v52, %v972_v46  ;;  %v863_v59 = vmul.f32 %v1805_v41, %v679_v55  ;;  %v681_v60 = vpop.f32.mrb[10].mxu0  ;;  %v947_v30 = vadd.f32 %v1783_v9, %v882_v23 }
 0x12c   : > { %v927_v61 = vadd.f32 %v1807_v43, %v862_v54  ;;  %v865_v62 = vmul.f32 %v1803_v36, %v681_v60  ;;  %v683_v63 = vpop.f32.mrb[11].mxu0  ;;  %v950_v34 = vadd.f32 %v1783_v9, %v885_v26  ;;  %v1455_v35 = vpop.f32.mrb[24].mxu1 }
 0x12d   : > { %1178 = vst [vmem:[%s1793_s29 + $0x24] sm:$0xff] %v1377_v58  ;;  %v928_v3 = vadd.f32 %v1812_v48, %v863_v59  ;;  %v866_v4 = vmul.f32 %v1805_v41, %v683_v63  ;;  %v995_v39 = vmax.f32 %v947_v30, 0.0  ;;  %v1456_v40 = vpop.f32.mrb[25].mxu1 }
 0x12e   : > { %v975_v7 = vmax.f32 %v927_v61, 0.0  ;;  %v930_v8 = vadd.f32 %v1807_v43, %v865_v62  ;;  %v998_v45 = vmax.f32 %v950_v34, 0.0  ;;  %v1457_v46 = vadd.f32 %v1456_v40, %v1455_v35  ;;  %v1458_v47 = vpop.f32.mrb[26].mxu1 }
 0x12f   : > { %v976_v13 = vmax.f32 %v928_v3, 0.0  ;;  %v931_v14 = vadd.f32 %v1812_v48, %v866_v4  ;;  %v1392_v51 = vpack.c.bf16 %v995_v39, %v995_v39  ;;  %v1459_v52 = vpop.f32.mrb[27].mxu1 }
 0x130   : > { %v978_v17 = vmax.f32 %v930_v8, 0.0  ;;  %v1394_v54 = vpack.c.bf16 %v998_v45, %v998_v45  ;;  %v888_v55 = vmul.f32 %v1457_v46, %v1781_v6  ;;  %v1460_v56 = vadd.f32 %v1459_v52, %v1458_v47 }
 0x131   : > { %v1379_v20 = vpack.c.bf16 %v976_v13, %v975_v7  ;;  %v979_v21 = vmax.f32 %v931_v14, 0.0  ;;  %v687_v22 = vpop.f32.mrb[12].mxu0  ;;  %1193 = vst.msk [vmem:[%s1793_s29 + $0x80] sm:$0xf] %vm1172_vm0, %v1392_v51 }
 0x132   : > { %v868_v24 = vmul.f32 %v1803_v36, %v687_v22  ;;  %v689_v25 = vpop.f32.mrb[13].mxu0  ;;  %1195 = vst.msk [vmem:[%s1793_s29 + $0x8c] sm:$0xf] %vm1172_vm0, %v1394_v54  ;;  %v953_v62 = vadd.f32 %v1783_v9, %v888_v55  ;;  %v891_v63 = vmul.f32 %v1460_v56, %v1781_v6 }
 0x133   : > { %1180 = vst [vmem:[%s1793_s29 + $0x30] sm:$0xff] %v1379_v20  ;;  %v1381_v27 = vpack.c.bf16 %v979_v21, %v978_v17  ;;  %v869_v28 = vmul.f32 %v1805_v41, %v689_v25  ;;  %v691_v29 = vpop.f32.mrb[14].mxu0 }
 0x134   : > { %v933_v31 = vadd.f32 %v1807_v43, %v868_v24  ;;  %v871_v32 = vmul.f32 %v1803_v36, %v691_v29  ;;  %v693_v33 = vpop.f32.mrb[15].mxu0  ;;  %v1001_v7 = vmax.f32 %v953_v62, 0.0  ;;  %v956_v8 = vadd.f32 %v1783_v9, %v891_v63  ;;  %v1461_v10 = vpop.f32.mrb[28].mxu1 }
 0x135   : > { %1182 = vst [vmem:[%s1793_s29 + $0x3c] sm:$0xff] %v1381_v27  ;;  %v934_v37 = vadd.f32 %v1812_v48, %v869_v28  ;;  %v872_v38 = vmul.f32 %v1805_v41, %v693_v33  ;;  %v1462_v13 = vpop.f32.mrb[29].mxu1 }
 0x136   : > { %v981_v42 = vmax.f32 %v933_v31, 0.0  ;;  %v936_v44 = vadd.f32 %v1807_v43, %v871_v32  ;;  %v1396_v16 = vpack.c.bf16 %v1001_v7, %v1001_v7  ;;  %v1004_v17 = vmax.f32 %v956_v8, 0.0  ;;  %v1464_v18 = vpop.f32.mrb[30].mxu1 }
 0x137   : > { %v982_v49 = vmax.f32 %v934_v37, 0.0  ;;  %v937_v50 = vadd.f32 %v1812_v48, %v872_v38  ;;  %v1463_v21 = vadd.f32 %v1462_v13, %v1461_v10  ;;  %v1465_v22 = vpop.f32.mrb[31].mxu1 }
 0x138   : > { %v984_v53 = vmax.f32 %v936_v44, 0.0  ;;  %1197 = vst.msk [vmem:[%s1793_s29 + $0x98] sm:$0xf] %vm1172_vm0, %v1396_v16  ;;  %v1398_v24 = vpack.c.bf16 %v1004_v17, %v1004_v17  ;;  %v1466_v25 = vadd.f32 %v1465_v22, %v1464_v18 }
 0x139   : > { %v1383_v57 = vpack.c.bf16 %v982_v49, %v981_v42  ;;  %v985_v58 = vmax.f32 %v937_v50, 0.0  ;;  %v697_v59 = vpop.f32.mrb[16].mxu0  ;;  %v894_v29 = vmul.f32 %v1463_v21, %v1781_v6 }
 0x13a   : > { %v874_v60 = vmul.f32 %v1803_v36, %v697_v59  ;;  %v699_v61 = vpop.f32.mrb[17].mxu0  ;;  %1199 = vst.msk [vmem:[%s1793_s29 + $0xa4] sm:$0xf] %vm1172_vm0, %v1398_v24  ;;  %v897_v32 = vmul.f32 %v1466_v25, %v1781_v6 }
 0x13b   : > { %1184 = vst [vmem:[%s1793_s29 + $0x48] sm:$0xff] %v1383_v57  ;;  %v1385_v0 = vpack.c.bf16 %v985_v58, %v984_v53  ;;  %v875_v1 = vmul.f32 %v1805_v41, %v699_v61  ;;  %v701_v2 = vpop.f32.mrb[18].mxu0  ;;  %v959_v37 = vadd.f32 %v1783_v9, %v894_v29 }
 0x13c   : > { %v939_v3 = vadd.f32 %v1807_v43, %v874_v60  ;;  %v877_v4 = vmul.f32 %v1803_v36, %v701_v2  ;;  %v703_v5 = vpop.f32.mrb[19].mxu0  ;;  %v962_v42 = vadd.f32 %v1783_v9, %v897_v32 }
 0x13d   : > { %1186 = vst [vmem:[%s1793_s29 + $0x54] sm:$0xff] %v1385_v0  ;;  %v940_v11 = vadd.f32 %v1812_v48, %v875_v1  ;;  %v878_v12 = vmul.f32 %v1805_v41, %v703_v5  ;;  %v1007_v45 = vmax.f32 %v959_v37, 0.0 }
 0x13e   : > { %v987_v14 = vmax.f32 %v939_v3, 0.0  ;;  %v942_v15 = vadd.f32 %v1807_v43, %v877_v4  ;;  %v1010_v49 = vmax.f32 %v962_v42, 0.0 }
 0x13f   : > { %v988_v19 = vmax.f32 %v940_v11, 0.0  ;;  %v943_v20 = vadd.f32 %v1812_v48, %v878_v12  ;;  %v1400_v52 = vpack.c.bf16 %v1007_v45, %v1007_v45 }
 0x140   : > { %v990_v23 = vmax.f32 %v942_v15, 0.0  ;;  %v1402_v9 = vpack.c.bf16 %v1010_v49, %v1010_v49 }
 0x141   : > { %v1387_v26 = vpack.c.bf16 %v988_v19, %v987_v14  ;;  %v991_v27 = vmax.f32 %v943_v20, 0.0  ;;  %v707_v28 = vpop.f32.mrb[20].mxu0  ;;  %1201 = vst.msk [vmem:[%s1793_s29 + $0xb0] sm:$0xf] %vm1172_vm0, %v1400_v52 }
 0x142   : > { %v880_v30 = vmul.f32 %v1803_v36, %v707_v28  ;;  %v709_v31 = vpop.f32.mrb[21].mxu0  ;;  %1203 = vst.msk [vmem:[%s1793_s29 + $0xbc] sm:$0xf] %vm1172_vm0, %v1402_v9 }
 0x143   : > { %1188 = vst [vmem:[%s1793_s29 + $0x60] sm:$0xff] %v1387_v26  ;;  %v1389_v33 = vpack.c.bf16 %v991_v27, %v990_v23  ;;  %v881_v34 = vmul.f32 %v1805_v41, %v709_v31  ;;  %v711_v35 = vpop.f32.mrb[22].mxu0 }
 0x144   : > { %v945_v38 = vadd.f32 %v1807_v43, %v880_v30  ;;  %v883_v39 = vmul.f32 %v1803_v36, %v711_v35  ;;  %v713_v40 = vpop.f32.mrb[23].mxu0 }
 0x145   : > { %1190 = vst [vmem:[%s1793_s29 + $0x6c] sm:$0xff] %v1389_v33  ;;  %v946_v44 = vadd.f32 %v1812_v48, %v881_v34  ;;  %v884_v6 = vmul.f32 %v1805_v41, %v713_v40 }
 0x146   : > { %v993_v46 = vmax.f32 %v945_v38, 0.0  ;;  %v948_v47 = vadd.f32 %v1807_v43, %v883_v39 }
 0x147   : > { %v994_v50 = vmax.f32 %v946_v44, 0.0  ;;  %v949_v51 = vadd.f32 %v1812_v48, %v884_v6 }
 0x148   : > { %v996_v53 = vmax.f32 %v948_v47, 0.0 }
 0x149   : > { %v1391_v54 = vpack.c.bf16 %v994_v50, %v993_v46  ;;  %v997_v55 = vmax.f32 %v949_v51, 0.0  ;;  %v717_v56 = vpop.f32.mrb[24].mxu0 }
 0x14a   : > { %v886_v57 = vmul.f32 %v1803_v36, %v717_v56  ;;  %v719_v58 = vpop.f32.mrb[25].mxu0 }
 0x14b   : > { %1192 = vst [vmem:[%s1793_s29 + $0x78] sm:$0xff] %v1391_v54  ;;  %v1393_v59 = vpack.c.bf16 %v997_v55, %v996_v53  ;;  %v887_v60 = vmul.f32 %v1805_v41, %v719_v58  ;;  %v721_v61 = vpop.f32.mrb[26].mxu0 }
 0x14c   : > { %v951_v62 = vadd.f32 %v1807_v43, %v886_v57  ;;  %v889_v63 = vmul.f32 %v1803_v36, %v721_v61  ;;  %v723_v0 = vpop.f32.mrb[27].mxu0 }
 0x14d   : > { %1194 = vst [vmem:[%s1793_s29 + $0x84] sm:$0xff] %v1393_v59  ;;  %v952_v1 = vadd.f32 %v1812_v48, %v887_v60  ;;  %v890_v2 = vmul.f32 %v1805_v41, %v723_v0 }
 0x14e   : > { %v999_v3 = vmax.f32 %v951_v62, 0.0  ;;  %v954_v4 = vadd.f32 %v1807_v43, %v889_v63 }
 0x14f   : > { %v1000_v5 = vmax.f32 %v952_v1, 0.0  ;;  %v955_v7 = vadd.f32 %v1812_v48, %v890_v2 }
 0x150   : > { %v1002_v8 = vmax.f32 %v954_v4, 0.0 }
 0x151   : > { %v1395_v10 = vpack.c.bf16 %v1000_v5, %v999_v3  ;;  %v1003_v11 = vmax.f32 %v955_v7, 0.0  ;;  %v727_v12 = vpop.f32.mrb[28].mxu0 }
 0x152   : > { %v892_v13 = vmul.f32 %v1803_v36, %v727_v12  ;;  %v729_v14 = vpop.f32.mrb[29].mxu0 }
 0x153   : > { %1196 = vst [vmem:[%s1793_s29 + $0x90] sm:$0xff] %v1395_v10  ;;  %v1397_v15 = vpack.c.bf16 %v1003_v11, %v1002_v8  ;;  %v893_v16 = vmul.f32 %v1805_v41, %v729_v14  ;;  %v731_v17 = vpop.f32.mrb[30].mxu0 }
 0x154   : > { %v957_v18 = vadd.f32 %v1807_v43, %v892_v13  ;;  %v895_v19 = vmul.f32 %v1803_v36, %v731_v17  ;;  %v733_v20 = vpop.f32.mrb[31].mxu0 }
 0x155   : > { %1198 = vst [vmem:[%s1793_s29 + $0x9c] sm:$0xff] %v1397_v15  ;;  %v958_v21 = vadd.f32 %v1812_v48, %v893_v16  ;;  %v896_v22 = vmul.f32 %v1805_v41, %v733_v20 }
 0x156   : > { %v1005_v23 = vmax.f32 %v957_v18, 0.0  ;;  %v960_v24 = vadd.f32 %v1807_v43, %v895_v19 }
 0x157   : > { %v1006_v25 = vmax.f32 %v958_v21, 0.0  ;;  %v961_v26 = vadd.f32 %v1812_v48, %v896_v22 }
 0x158   : > { %v1008_v27 = vmax.f32 %v960_v24, 0.0 }
 0x159   : > { %v1399_v28 = vpack.c.bf16 %v1006_v25, %v1005_v23  ;;  %v1009_v29 = vmax.f32 %v961_v26, 0.0 }
 0x15b   : > { %1200 = vst [vmem:[%s1793_s29 + $0xa8] sm:$0xff] %v1399_v28  ;;  %v1401_v30 = vpack.c.bf16 %v1009_v29, %v1008_v27 }
 0x15d   : > { %1202 = vst [vmem:[%s1793_s29 + $0xb4] sm:$0xff] %v1401_v30 }
 0x15e PF: > { %s14_s15 = sadd.s32 1, %s1570_s15  }
 0x15f   : > { %p11_p4 = scmp.ge.s32.totalorder %s14_s15, 6  }
 0x161   :  { %13 = sbr.rel (!%p11_p4) target bundleno = 1 (0x1), region = 66 }

// kernel: mixed_3c_forward.6
= control target key start
LH: loop header
LB: loop body
LE: loop exit
PB: predicated region body
PF: predicated region fallthrough
CT: control target
= control target key end

     0   :  { %s1977_s15 = smov 0   ;;  %s1979_s16 = smov 0   ;;  %s2491_s0 = inlined_call_operand.vmem [shape: bf16[2,6,10,10,32], index: 0, kind: input, shape index: {}]   ;;  %s2492_s1 = inlined_call_operand.vmem [shape: bf16[3,288,128], index: 1, kind: input, shape index: {}]   ;;  %s2493_s2 = inlined_call_operand.vmem [shape: f32[1,128], index: 2, kind: input, shape index: {}]   ;;  %s2494_s3 = inlined_call_operand.vmem [shape: f32[1,128], index: 3, kind: input, shape index: {}]   ;;  %s2495_s4 = inlined_call_operand.vmem [shape: bf16[2,4,8,8,128], index: 4, kind: output, shape index: {}]  }
   0x1   :  { %s1981_s17 = smov 0   ;;  %s1983_s18 = smov 0  }
   0x2   :  { %s1985_s19 = smov 0   ;;  %s1987_s20 = smov 0  }
   0x3   :  { %s1989_s21 = smov 0  }
   0x4 LB: > { %s26_s22 = sadd.s32 1, %s1934_s18  ;;  %s29_s23 = sadd.s32 1, %s1938_s19  ;;  %s1946_s21 = sphi %s1989_s21, %s14_s21   ;;  %s1942_s20 = sphi %s1987_s20, %s2501_s20   ;;  %s1938_s19 = sphi %s1985_s19, %s2500_s19   ;;  %s1934_s18 = sphi %s1983_s18, %s2499_s18   ;;  %s1930_s17 = sphi %s1981_s17, %s2498_s17   ;;  %s1926_s16 = sphi %s1979_s16, %s2497_s16   ;;  %s1922_s15 = sphi %s1977_s15, %s2496_s15  }
   0x5   : > { %p27_p0 = scmp.ge.s32.totalorder %s26_s22, 3  ;;  %p1492_p1 = scmp.ge.s32.totalorder %s1946_s21, 1 }
   0x6   : > { %p193_p2 = scmp.lt.s32.totalorder %s1946_s21, 25  ;;  %s33_s24 = sadd.s32 1, %s1942_s20 }
   0x7   : > { %s2503_s22 = smov (%p27_p0, %s26_s22), 0  ;;  %s2505_s23 = smov (!%p27_p0, %s29_s23), %s1938_s19 }
   0x8   : > { %p194_p3 = pnand %p1492_p1, %p193_p2  ;;  %p31_p4 = scmp.ge.s32.totalorder %s2505_s23, 4 }
   0x9   : > { %s228_s25 = sadd.s32 (!%p194_p3), %s1922_s15, %s1926_s16  ;;  %p229_p6 = scmp.lt.s32.totalorder (!%p194_p3), %s1930_s17, 1 }
   0xa   : > { %s2507_s23 = smov (%p31_p4, %s2505_s23), 0  ;;  %s2509_s24 = smov (!%p31_p4, %s33_s24), %s1942_s20 }
   0xb   : > { %p35_p5 = scmp.ge.s32.totalorder %s2509_s24, 2  ;;  %197 = sbr.rel (%p194_p3) target bundleno = 483 (0x1e3), region = 36 }
   0xc   : > { %p231_p7 = scmp.lt.s32.totalorder (!%p194_p3), %s228_s25, 5  ;;  %p241_p8 = scmp.lt.s32.totalorder (!%p194_p3), %s1926_s16, 3 }
   0xd   : > { %s2511_s24 = smov (%p35_p5, %s2509_s24), 0  ;;  %p1497_p9 = scmp.ne.s32.totalorder (!%p194_p3), %s1922_s15, 0 }
  0x12   : > { %s2513_s17 = smov (!%p229_p6, %s1930_s17), 1  ;;  %s2515_s25 = smov (!%p231_p7, %s228_s25), 5 }
  0x13   : > { %s1749_s26 = smul.u32 120, %s2513_s17  ;;  %s1495_s28 = sshll.u32 %s2513_s17, 5  ;;  %v1948_v0 = vmov (!%p1497_p9), 0.0  }
  0x14   : > { %s1748_s27 = smul.u32 20, %s2515_s25  ;;  %s2517_s16 = smov (!%p241_p8, %s1926_s16), 3  ;;  %253 = vst [vmem:[#allocation2] sm:$0xff] (!%p1497_p9), %v1948_v0  ;;  %254 = vst [vmem:[#allocation2 + $0x8] sm:$0xff] (!%p1497_p9), %v1948_v0 }
  0x15   : > { %s1494_s5 = sshll.u32 %s2517_s16, 3  ;;  %252 = sbr.rel (%p1497_p9) target bundleno = 28 (0x1c), region = 40  ;;  %255 = vst [vmem:[#allocation2 + $0x10] sm:$0xff] (!%p1497_p9), %v1948_v0  ;;  %256 = vst [vmem:[#allocation2 + $0x18] sm:$0xff] (!%p1497_p9), %v1948_v0 }
  0x16   : > { %s235_s29 = sadd.s32 %s1749_s26, %s1748_s27  ;;  %s245_s9 = sadd.s32 %s1495_s28, %s1494_s5  ;;  %257 = vst [vmem:[#allocation2 + $0x20] sm:$0xff] (!%p1497_p9), %v1948_v0  ;;  %258 = vst [vmem:[#allocation2 + $0x28] sm:$0xff] (!%p1497_p9), %v1948_v0 }
  0x17   : > { %s1493_s30 = sshll.u32 %s235_s29, 2  ;;  %s1496_s10 = sshll.u32 %s245_s9, 2  ;;  %259 = vst [vmem:[#allocation2 + $0x30] sm:$0xff] (!%p1497_p9), %v1948_v0  ;;  %260 = vst [vmem:[#allocation2 + $0x38] sm:$0xff] (!%p1497_p9), %v1948_v0 }
  0x18   : > { %s2030_s8 = scalar_lea.vmem %s2491_s0, %s1493_s30  ;;  %s2035_s13 = scalar_lea.vmem %s2495_s4, %s1496_s10 }
  0x1c PF: > { %v1523_v1 = vld [vmem:[%s2030_s8 + $0x18] sm:$0xf]  ;;  %v1506_v3 = vld [vmem:[%s2030_s8 + $0xc] sm:$0x1]  ;;  %v1514_v4 = vld [vmem:[%s2030_s8 + $0x8] sm:$0xe] }
  0x1d   : > { %v1587_v2 = vcombine.low %v1523_v1, %v1523_v1  ;;  %v1578_v5 = vcombine.low %v1514_v4, %v1506_v3  ;;  %v2042_v6 = vld [vmem:[%s2030_s8 + $0x8] sm:$0xf]  ;;  %v1507_v7 = vld [vmem:[%s2030_s8 + $0x14] sm:$0x1]  ;;  %v1515_v8 = vld [vmem:[%s2030_s8 + $0x10] sm:$0xe] }
  0x1e   : > { %s1949_s14 = smov 64   ;;  %v2048_v9 = vcombine.low %v2042_v6, %v1506_v3  ;;  %v2051_v10 = vld [vmem:[%s2030_s8] sm:$0xf]  ;;  %v1579_v12 = vcombine.low %v1515_v8, %v1507_v7  ;;  %v269_v13 = vld [vmem:[%s2030_s8 + $0x4] sm:$0x1]  ;;  %s1650_s16 = smul.u32 144, %s1922_s15 }
  0x1f   : > { %689 = vrot.lane.b32.xlu1 %v1587_v2, %s1949_s14  ;;  %v639_v11 = vrot.slane %v1578_v5, 1  ;;  %v1546_v14 = vcombine.low %v2051_v10, %v269_v13  ;;  %v1522_v15 = vld [vmem:[%s2030_s8 + $0x10] sm:$0xf]  ;;  %v2058_v16 = vld [vmem:[%s2030_s8 + $0x14] sm:$0x1]  ;;  %s1950_s17 = smov 32  }
  0x20   : > { %v640_v17 = vrot.slane %v1579_v12, 1  ;;  %v2062_v18 = vld [vmem:[%s2030_s8 + $0x8] sm:$0xf]  ;;  %v270_v19 = vld [vmem:[%s2030_s8 + $0xc] sm:$0x1]  ;;  %s2068_s27 = scalar_lea.vmem %s2492_s1, %s1650_s16  ;;  %v2074_v25 = vcombine.low %v1522_v15, %v2058_v16  ;;  %v1586_v32 = vcombine.low %v1522_v15, %v1522_v15  ;;  %s1951_s28 = smov 96  }
  0x21   : > { %647 = vrot.lane.b32.xlu0 %v639_v11, %s1950_s17  ;;  %v376_v20 = vshrl.u32 %v1546_v14, 16  ;;  %v378_v21 = vshll.u32 %v1546_v14, 16  ;;  %v1547_v22 = vcombine.low %v2062_v18, %v270_v19  ;;  %v277_v23 = vld [vmem:[%s2030_s8] sm:$0xe]  ;;  %v2077_v26 = vld [vmem:[%s2030_s8 + $0x1c] sm:$0x1] }
  0x22   : > { %v1874_v24 = vld [vmem:[%s2068_s27 + $0x40] sm:$0xff]   ;;  %v1554_v30 = vcombine.low %v277_v23, %v269_v13  ;;  %v278_v33 = vld [vmem:[%s2030_s8 + $0x8] sm:$0xe]  ;;  %v1512_v34 = vld [vmem:[%s2030_s8 + $0x3c] sm:$0x1]  ;;  %v1595_v40 = vcombine.low %v1523_v1, %v2077_v26  ;;  %v730_v46 = vshll.u32 %v2074_v25, 16 }
  0x23   : > { %v380_v27 = vrot.slane %v378_v21, 1  ;;  %v383_v28 = vshrl.u32 %v1547_v22, 16  ;;  %v385_v29 = vshll.u32 %v1547_v22, 16  ;;  %1674 = vmatprep.subr.bf16.mxu0 %v1874_v24  ;;  %v1875_v31 = vld [vmem:[%s2068_s27] sm:$0xff]   ;;  %1732 = vmatprep.subr.bf16.mxu1 %v1874_v24  ;;  %v1520_v35 = vld [vmem:[%s2030_s8 + $0x38] sm:$0xe]  ;;  %v1555_v43 = vcombine.low %v278_v33, %v270_v19 }
  0x24   : > { %v2085_v38 = vld [vmem:[%s2030_s8 + $0x30] sm:$0xf]  ;;  %v2088_v39 = vld [vmem:[%s2030_s8 + $0x34] sm:$0x1]  ;;  %1675 = vmatpush3.bf16.msra.mxu0 %v1875_v31  ;;  %1740 = vmatpush3.bf16.msra.mxu1 %v1875_v31  ;;  %v471_v42 = vrot.slane %v1554_v30, 1  ;;  %v1584_v47 = vcombine.low %v1520_v35, %v1512_v34  ;;  %v1876_v53 = vld [vmem:[%s2068_s27 + $0x48] sm:$0xff]  }
  0x25   : > { %649 = vrot.lane.b32.xlu0 %v640_v17, %s1950_s17  ;;  %v381_v36 = vor.u32 %v380_v27, %v376_v20  ;;  %v387_v37 = vrot.slane %v385_v29, 1  ;;  %v1513_v44 = vld [vmem:[%s2030_s8 + $0x44] sm:$0x1]  ;;  %v1521_v45 = vld [vmem:[%s2030_s8 + $0x40] sm:$0xe]  ;;  %v1552_v48 = vcombine.low %v2085_v38, %v2088_v39  ;;  %v737_v54 = vshll.u32 %v1595_v40, 16  ;;  %1676 = vmatprep.subr.bf16.mxu0 %v1876_v53 }
  0x26   : > { %v2099_v49 = vld [vmem:[%s2030_s8 + $0x38] sm:$0xf]  ;;  %v2102_v50 = vld [vmem:[%s2030_s8 + $0x3c] sm:$0x1]  ;;  %v2105_v51 = vld [vmem:[%s2030_s8 + $0x10] sm:$0xf]  ;;  %v1585_v56 = vcombine.low %v1521_v45, %v1513_v44  ;;  %1733 = vmatprep.subr.bf16.mxu1 %v1876_v53 }
  0x27   : > { %431 = vrot.lane.b32.xlu1 %v381_v36, %s1950_s17  ;;  %v388_v41 = vor.u32 %v387_v37, %v383_v28  ;;  %v2108_v52 = vcombine.low %v2105_v51, %v1507_v7  ;;  %v472_v55 = vrot.slane %v1555_v43, 1  ;;  %v1553_v57 = vcombine.low %v2099_v49, %v2102_v50  ;;  %v1877_v58 = vld [vmem:[%s2068_s27 + $0x8] sm:$0xff]   ;;  %v1878_v63 = vld [vmem:[%s2068_s27 + $0x50] sm:$0xff]   ;;  %v2119_v1 = vld [vmem:[%s2030_s8 + $0x38] sm:$0xf]  ;;  %p1645_p10 = scmp.ne.s32.totalorder %s1922_s15, 2 }
  0x28   : > { %v645_v59 = vrot.slane %v1584_v47, 1  ;;  %v728_v60 = vshrl.u32 %v2074_v25, 16  ;;  %v732_v61 = vrot.slane %v730_v46, 1  ;;  %v420_v62 = vshll.u32 %v1552_v48, 16  ;;  %1677 = vmatpush3.bf16.msra.mxu0 %v1877_v58  ;;  %1741 = vmatpush3.bf16.msra.mxu1 %v1877_v58  ;;  %v2126_v7 = vld [vmem:[%s2030_s8 + $0x40] sm:$0xf] }
  0x29   : > { %687 = vrot.lane.b32.xlu0 %v1586_v32, %s1949_s14  ;;  %v735_v0 = vshrl.u32 %v1595_v40, 16  ;;  %1678 = vmatprep.subr.bf16.mxu0 %v1878_v63  ;;  %v646_v2 = vrot.slane %v1585_v56, 1  ;;  %v739_v3 = vrot.slane %v737_v54, 1  ;;  %v427_v4 = vshll.u32 %v1553_v57, 16  ;;  %v1879_v14 = vld [vmem:[%s2068_s27 + $0x10] sm:$0xff]   ;;  %v1880_v17 = vld [vmem:[%s2068_s27 + $0x58] sm:$0xff]  }
  0x2a   : > { %v2123_v5 = vcombine.low %v2119_v1, %v1512_v34  ;;  %1734 = vmatprep.subr.bf16.mxu1 %v1878_v63  ;;  %v733_v8 = vor.u32 %v732_v61, %v728_v60  ;;  %v418_v11 = vshrl.u32 %v1552_v48, 16  ;;  %v422_v12 = vrot.slane %v420_v62, 1  ;;  %v2136_v21 = vld [vmem:[%s2030_s8 + $0x24] sm:$0x1]  ;;  %v1540_v22 = vld [vmem:[%s2030_s8 + $0x20] sm:$0xe] }
  0x2b   : > { %433 = vrot.lane.b32.xlu1 %v388_v41, %s1950_s17  ;;  %v2130_v13 = vcombine.low %v2126_v7, %v1513_v44  ;;  %v425_v15 = vshrl.u32 %v1553_v57, 16  ;;  %v740_v19 = vor.u32 %v739_v3, %v735_v0  ;;  %v429_v20 = vrot.slane %v427_v4, 1  ;;  %v1881_v23 = vld [vmem:[%s2068_s27 + $0x18] sm:$0xff]   ;;  %v1538_v25 = vld [vmem:[%s2030_s8 + $0x10] sm:$0xe]  ;;  %v1882_v37 = vld [vmem:[%s2068_s27 + $0x60] sm:$0xff]  }
  0x2c   : > { %1679 = vmatpush3.bf16.msra.mxu0 %v1879_v14  ;;  %1742 = vmatpush3.bf16.msra.mxu1 %v1879_v14  ;;  %v1539_v24 = vld [vmem:[%s2030_s8 + $0x18] sm:$0xe]  ;;  %v423_v27 = vor.u32 %v422_v12, %v418_v11  ;;  %v1604_v28 = vcombine.low %v1540_v22, %v2136_v21  ;;  %v1541_v29 = vld [vmem:[%s2030_s8 + $0x28] sm:$0xe]  ;;  %v1536_v30 = vld [vmem:[%s2030_s8 + $0x44] sm:$0x1]  ;;  %v1562_v44 = vcombine.low %v2042_v6, %v2042_v6 }
  0x2d   : > { %479 = vrot.lane.b32.xlu0 %v471_v42, %s1949_s14  ;;  %1680 = vmatprep.subr.bf16.mxu0 %v1880_v17  ;;  %v2147_v31 = vld [vmem:[%s2030_s8 + $0x4c] sm:$0x1]  ;;  %v1528_v33 = vld [vmem:[%s2030_s8 + $0x40] sm:$0xf]  ;;  %v430_v40 = vor.u32 %v429_v20, %v425_v15  ;;  %v2160_v41 = vld [vmem:[%s2030_s8 + $0x48] sm:$0xf]  ;;  %v1603_v54 = vcombine.low %v1539_v24, %v2077_v26  ;;  %v1563_v62 = vcombine.low %v2105_v51, %v2105_v51 }
  0x2e   : > { %v2150_v32 = vld [vmem:[%s2030_s8 + $0x2c] sm:$0x1]  ;;  %1735 = vmatprep.subr.bf16.mxu1 %v1880_v17  ;;  %v1544_v34 = vld [vmem:[%s2030_s8 + $0x40] sm:$0xe]  ;;  %v2154_v35 = vrot.slane %v1604_v28, 1  ;;  %v2167_v45 = vcombine.low %v1528_v33, %v1536_v30  ;;  %v2171_v46 = vcombine.low %v2160_v41, %v2147_v31  ;;  %v1592_v4 = vcombine.low %v1528_v33, %v1528_v33 }
  0x2f   : > { %481 = vrot.lane.b32.xlu1 %v472_v55, %s1949_s14  ;;  %v1605_v36 = vcombine.low %v1541_v29, %v2150_v32  ;;  %v283_v42 = vld [vmem:[%s2030_s8 + $0x30] sm:$0xe]  ;;  %v1883_v43 = vld [vmem:[%s2068_s27 + $0x20] sm:$0xff]   ;;  %v284_v47 = vld [vmem:[%s2030_s8 + $0x38] sm:$0xe]  ;;  %v1602_v55 = vcombine.low %v1538_v25, %v2058_v16  ;;  %v1608_v58 = vcombine.low %v1544_v34, %v1536_v30  ;;  %v1593_v17 = vcombine.low %v2160_v41, %v2160_v41 }
  0x30   : > { %1681 = vmatpush3.bf16.msra.mxu0 %v1881_v23  ;;  %1743 = vmatpush3.bf16.msra.mxu1 %v1881_v23  ;;  %v2175_v48 = vld [vmem:[%s2030_s8 + $0x1c] sm:$0x1]  ;;  %v2182_v56 = vld [vmem:[%s2030_s8 + $0x24] sm:$0x1]  ;;  %v2185_v6 = vld [vmem:[%s2030_s8 + $0x10] sm:$0xf]  ;;  %v1560_v63 = vcombine.low %v283_v42, %v2088_v39  ;;  %v1561_v0 = vcombine.low %v284_v47, %v2102_v50 }
  0x31   : > { %659 = vrot.lane.b32.xlu0 %v645_v59, %s1950_s17  ;;  %v2177_v53 = vrot.slane %v1605_v36, 1  ;;  %1682 = vmatprep.subr.bf16.mxu0 %v1882_v37  ;;  %v2188_v57 = vld [vmem:[%s2030_s8 + $0x18] sm:$0xf]  ;;  %v2191_v59 = vld [vmem:[%s2030_s8 + $0x14] sm:$0x1]  ;;  %v1884_v16 = vld [vmem:[%s2068_s27 + $0x68] sm:$0xff]  }
  0x32   : > { %1736 = vmatprep.subr.bf16.mxu1 %v1882_v37  ;;  %v2197_v61 = vcombine.low %v2188_v57, %v2175_v48  ;;  %v2200_v26 = vld [vmem:[%s2030_s8 + $0x20] sm:$0xf]  ;;  %v1885_v3 = vld [vmem:[%s2068_s27 + $0x28] sm:$0xff]   ;;  %v779_v11 = vshll.u32 %v2171_v46, 16  ;;  %v2218_v51 = vcombine.low %v2185_v6, %v2191_v59  ;;  %v1886_v39 = vld [vmem:[%s2068_s27 + $0x70] sm:$0xff]   ;;  %v2221_v50 = vrot.slane %v1603_v54, 1 }
  0x33   : > { %661 = vrot.lane.b32.xlu1 %v646_v2, %s1950_s17  ;;  %v1616_v60 = vcombine.low %v2154_v35, %v2177_v53  ;;  %v2210_v2 = vcombine.low %v2200_v26, %v2182_v56  ;;  %v2223_v12 = vrot.slane %v1602_v55, 1  ;;  %v2225_v14 = vrot.slane %v1608_v58, 1  ;;  %v1545_v15 = vld [vmem:[%s2030_s8 + $0x48] sm:$0xe]  ;;  %v1516_v25 = vld [vmem:[%s2030_s8 + $0x18] sm:$0xe] }
  0x34   : > { %1683 = vmatpush3.bf16.msra.mxu0 %v1883_v43  ;;  %1744 = vmatpush3.bf16.msra.mxu1 %v1883_v43  ;;  %v477_v20 = vrot.slane %v1560_v63, 1  ;;  %v478_v22 = vrot.slane %v1561_v0, 1  ;;  %v770_v23 = vshrl.u32 %v2167_v45, 16  ;;  %v777_v24 = vshrl.u32 %v2171_v46, 16  ;;  %v1517_v29 = vld [vmem:[%s2030_s8 + $0x20] sm:$0xe] }
  0x35   : > { %783 = vrot.lane.b32.xlu0 %v733_v8, %s1951_s28  ;;  %v772_v8 = vshll.u32 %v2167_v45, 16  ;;  %1684 = vmatprep.subr.bf16.mxu0 %v1884_v16  ;;  %v781_v28 = vrot.slane %v779_v11, 1  ;;  %v2238_v30 = vld [vmem:[%s2030_s8 + $0x18] sm:$0xf]  ;;  %v392_v33 = vshll.u32 %v2218_v51, 16  ;;  %v1609_v37 = vcombine.low %v1545_v15, %v2147_v31 }
  0x36   : > { %1737 = vmatprep.subr.bf16.mxu1 %v1884_v16  ;;  %v2242_v34 = vld [vmem:[%s2030_s8 + $0x1c] sm:$0x1]  ;;  %v2250_v41 = vld [vmem:[%s2030_s8 + $0x34] sm:$0x1]  ;;  %v1542_v42 = vld [vmem:[%s2030_s8 + $0x30] sm:$0xe]  ;;  %v1580_v43 = vcombine.low %v1516_v25, %v2175_v48 }
  0x37   : > { %785 = vrot.lane.b32.xlu1 %v740_v19, %s1951_s28  ;;  %v1887_v19 = vld [vmem:[%s2068_s27 + $0x30] sm:$0xff]   ;;  %v1888_v36 = vld [vmem:[%s2068_s27 + $0x78] sm:$0xff]   ;;  %v2264_v31 = vld [vmem:[%s2030_s8 + $0x28] sm:$0xf]  ;;  %v1549_v55 = vcombine.low %v2238_v30, %v2242_v34  ;;  %v2280_v16 = vrot.slane %v1609_v37, 1  ;;  %v394_v15 = vrot.slane %v392_v33, 1 }
  0x38   : > { %1685 = vmatpush3.bf16.msra.mxu0 %v1885_v3  ;;  %1745 = vmatpush3.bf16.msra.mxu1 %v1885_v3  ;;  %v2257_v45 = vld [vmem:[%s2030_s8 + $0x34] sm:$0x1]  ;;  %v2260_v46 = vld [vmem:[%s2030_s8 + $0x3c] sm:$0x1]  ;;  %v1543_v47 = vld [vmem:[%s2030_s8 + $0x38] sm:$0xe] }
  0x39   : > { %443 = vrot.lane.b32.xlu0 %v423_v27, %s1950_s17  ;;  %v774_v27 = vrot.slane %v772_v8, 1  ;;  %1686 = vmatprep.subr.bf16.mxu0 %v1886_v39  ;;  %v2270_v58 = vld [vmem:[%s2030_s8 + $0x30] sm:$0xf]  ;;  %v1606_v63 = vcombine.low %v1542_v42, %v2257_v45  ;;  %v1607_v0 = vcombine.low %v1543_v47, %v2260_v46  ;;  %v641_v3 = vrot.slane %v1580_v43, 1  ;;  %v1525_v33 = vld [vmem:[%s2030_s8 + $0x28] sm:$0xf] }
  0x3a   : > { %1738 = vmatprep.subr.bf16.mxu1 %v1886_v39  ;;  %v390_v8 = vshrl.u32 %v2218_v51, 16  ;;  %v397_v11 = vshrl.u32 %v1549_v55, 16  ;;  %v1568_v39 = vcombine.low %v2119_v1, %v2119_v1  ;;  %v1569_v51 = vcombine.low %v2126_v7, %v2126_v7  ;;  %v1524_v1 = vld [vmem:[%s2030_s8 + $0x20] sm:$0xf] }
  0x3b   : > { %445 = vrot.lane.b32.xlu1 %v430_v40, %s1950_s17  ;;  %v2247_v40 = vld [vmem:[%s2030_s8 + $0x2c] sm:$0x1]  ;;  %v775_v54 = vor.u32 %v774_v27, %v770_v23  ;;  %v1596_v27 = vcombine.low %v1524_v1, %v2136_v21  ;;  %v1597_v37 = vcombine.low %v1525_v33, %v2150_v32  ;;  %v1622_v21 = vcombine.low %v2225_v14, %v2280_v16 }
  0x3c   : > { %1687 = vmatpush3.bf16.msra.mxu0 %v1887_v19  ;;  %1746 = vmatpush3.bf16.msra.mxu1 %v1887_v19  ;;  %v2274_v48 = vcombine.low %v2264_v31, %v2247_v40  ;;  %v2289_v19 = vrot.slane %v1606_v63, 1  ;;  %v395_v25 = vor.u32 %v394_v15, %v390_v8  ;;  %v1588_v42 = vcombine.low %v1524_v1, %v1524_v1  ;;  %v2330_v15 = vld [vmem:[%s2030_s8 + $0x28] sm:$0xf] }
  0x3d   : > { %519 = vrot.lane.b32.xlu0 %v1562_v44, %s1951_s28  ;;  %v1581_v44 = vcombine.low %v1517_v29, %v2182_v56  ;;  %1688 = vmatprep.subr.bf16.mxu0 %v1888_v36  ;;  %v2278_v56 = vcombine.low %v2270_v58, %v2250_v41  ;;  %v279_v29 = vld [vmem:[%s2030_s8 + $0x10] sm:$0xe]  ;;  %v744_v47 = vshll.u32 %v1596_v27, 16  ;;  %v742_v63 = vshrl.u32 %v1596_v27, 16 }
  0x3e   : > { %1739 = vmatprep.subr.bf16.mxu1 %v1888_v36  ;;  %v1556_v43 = vcombine.low %v279_v29, %v2191_v59  ;;  %v749_v8 = vshrl.u32 %v1597_v37, 16  ;;  %v1519_v27 = vld [vmem:[%s2030_s8 + $0x30] sm:$0xe]  ;;  %vm831_vm0 = vcmask 261120   ;;  %vm873_vm1 = vcmask 785408  }
  0x3f   : > { %521 = vrot.lane.b32.xlu1 %v1563_v62, %s1951_s28  ;;  %v782_v62 = vor.u32 %v781_v28, %v777_v24  ;;  %v1889_v24 = vld [vmem:[%s2068_s27 + $0x38] sm:$0xff]   ;;  %v2305_v28 = vld [vmem:[%s2068_s27 + $0x80] sm:$0xff]   ;;  %vm856_vm2 = vcmask 523264  }
  0x40   : > { %1689 = vmatpush3.bf16.msra.mxu0 %v1889_v24  ;;  %1747 = vmatpush3.bf16.msra.mxu1 %v1889_v24  ;;  %v473_v32 = vrot.slane %v1556_v43, 1  ;;  %v1564_v24 = vcombine.low %v2188_v57, %v2188_v57 }
  0x41   : > { %699 = vrot.lane.b32.xlu0 %v1592_v4, %s1949_s14  ;;  %v642_v4 = vrot.slane %v1581_v44, 1  ;;  %1720 = vmatprep.subr.bf16.mxu1 %v2305_v28  ;;  %v280_v44 = vld [vmem:[%s2030_s8 + $0x18] sm:$0xe] }
  0x43   : > { %701 = vrot.lane.b32.xlu1 %v1593_v17, %s1949_s14  ;;  %v399_v17 = vshll.u32 %v1549_v55, 16  ;;  %v1557_v55 = vcombine.low %v280_v44, %v2242_v34 }
  0x45   : > { %491 = vrot.lane.b32.xlu0 %v477_v20, %s1949_s14  ;;  %v2291_v20 = vrot.slane %v1607_v0, 1  ;;  %v401_v23 = vrot.slane %v399_v17, 1  ;;  %v746_v0 = vrot.slane %v744_v47, 1  ;;  %v474_v59 = vrot.slane %v1557_v55, 1  ;;  %v274_v17 = vld [vmem:[%s2030_s8 + $0x2c] sm:$0x1] }
  0x47   : > { %493 = vrot.lane.b32.xlu1 %v478_v22, %s1949_s14  ;;  %v1613_v22 = vcombine.low %v2223_v12, %v2221_v50  ;;  %v1619_v7 = vcombine.low %v2289_v19, %v2291_v20  ;;  %v402_v36 = vor.u32 %v401_v23, %v397_v11  ;;  %v747_v34 = vor.u32 %v746_v0, %v742_v63 }
  0x48   : > { %v1551_v23 = vcombine.low %v2330_v15, %v274_v17 }
  0x49   : > { %795 = vrot.lane.b32.xlu0 %v775_v54, %s1951_s28  ;;  %v1589_v54 = vcombine.low %v1525_v33, %v1525_v33  ;;  %v1565_v33 = vcombine.low %v2200_v26, %v2200_v26 }
  0x4a   : > { %v411_v44 = vshrl.u32 %v1551_v23, 16 }
  0x4b   : > { %797 = vrot.lane.b32.xlu1 %v782_v62, %s1951_s28  ;;  %v751_v62 = vshll.u32 %v1597_v37, 16  ;;  %v413_v37 = vshll.u32 %v1551_v23, 16 }
  0x4d   : > { %531 = vrot.lane.b32.xlu0 %v1568_v39, %s1951_s28  ;;  %v753_v11 = vrot.slane %v751_v62, 1  ;;  %v415_v47 = vrot.slane %v413_v37, 1  ;;  %v281_v62 = vld [vmem:[%s2030_s8 + $0x20] sm:$0xe] }
  0x4f   : > { %533 = vrot.lane.b32.xlu1 %v1569_v51, %s1951_s28  ;;  %v1518_v51 = vld [vmem:[%s2030_s8 + $0x28] sm:$0xe]  ;;  %v754_v1 = vor.u32 %v753_v11, %v749_v8 }
  0x50   : > { %v282_v8 = vld [vmem:[%s2030_s8 + $0x28] sm:$0xe] }
  0x51   : > { %651 = vrot.lane.b32.xlu0 %v641_v3, %s1950_s17  ;;  %v2323_v3 = vld [vmem:[%s2030_s8 + $0x20] sm:$0xf] }
  0x53   : > { %653 = vrot.lane.b32.xlu1 %v642_v4, %s1950_s17  ;;  %v273_v4 = vld [vmem:[%s2030_s8 + $0x24] sm:$0x1] }
  0x54   : > { %v1550_v39 = vcombine.low %v2323_v3, %v273_v4 }
  0x55   : > { %435 = vrot.lane.b32.xlu0 %v395_v25, %s1950_s17  ;;  %v1582_v25 = vcombine.low %v1518_v51, %v2247_v40 }
  0x56   : > { %v406_v29 = vshll.u32 %v1550_v39, 16  ;;  %v404_v43 = vshrl.u32 %v1550_v39, 16  ;;  %v1559_v39 = vcombine.low %v282_v8, %v274_v17  ;;  %v1566_v17 = vcombine.low %v2264_v31, %v2264_v31 }
  0x57   : > { %437 = vrot.lane.b32.xlu1 %v402_v36, %s1950_s17  ;;  %v1583_v36 = vcombine.low %v1519_v27, %v2250_v41  ;;  %v1527_v41 = vld [vmem:[%s2030_s8 + $0x38] sm:$0xf]  ;;  %v560_v31 = vshrl.u32 %v2048_v9, 16 }
  0x58   : > { %v408_v57 = vrot.slane %v406_v29, 1  ;;  %v1599_v63 = vcombine.low %v1527_v41, %v2260_v46  ;;  %v1567_v29 = vcombine.low %v2270_v58, %v2270_v58 }
  0x59   : > { %691 = vrot.lane.b32.xlu0 %v1588_v42, %s1949_s14  ;;  %v643_v42 = vrot.slane %v1582_v25, 1  ;;  %v644_v40 = vrot.slane %v1583_v36, 1 }
  0x5a   : > { %v409_v55 = vor.u32 %v408_v57, %v404_v43  ;;  %v765_v51 = vshll.u32 %v1599_v63, 16  ;;  %v763_v46 = vshrl.u32 %v1599_v63, 16  ;;  %v562_v43 = vshll.u32 %v2048_v9, 16 }
  0x5b   : > { %693 = vrot.lane.b32.xlu1 %v1589_v54, %s1949_s14  ;;  %v1526_v54 = vld [vmem:[%s2030_s8 + $0x30] sm:$0xf]  ;;  %v569_v57 = vshll.u32 %v2108_v52, 16 }
  0x5c   : > { %v1598_v26 = vcombine.low %v1526_v54, %v2257_v45  ;;  %v1590_v0 = vcombine.low %v1526_v54, %v1526_v54  ;;  %v767_v25 = vrot.slane %v765_v51, 1  ;;  %v567_v54 = vshrl.u32 %v2108_v52, 16 }
  0x5d   : > { %483 = vrot.lane.b32.xlu0 %v473_v32, %s1949_s14  ;;  %v416_v32 = vor.u32 %v415_v47, %v411_v44  ;;  %v564_v47 = vrot.slane %v562_v43, 1  ;;  %v571_v58 = vrot.slane %v569_v57, 1 }
  0x5e   : > { %v758_v11 = vshll.u32 %v1598_v26, 16  ;;  %v768_v27 = vor.u32 %v767_v25, %v763_v46 }
  0x5f   : > { %485 = vrot.lane.b32.xlu1 %v474_v59, %s1949_s14  ;;  %v1558_v59 = vcombine.low %v281_v62, %v273_v4  ;;  %v565_v62 = vor.u32 %v564_v47, %v560_v31 }
  0x60   : > { %v760_v23 = vrot.slane %v758_v11, 1 }
  0x61   : > { %787 = vrot.lane.b32.xlu0 %v747_v34, %s1951_s28  ;;  %v1591_v34 = vcombine.low %v1527_v41, %v1527_v41  ;;  %v475_v45 = vrot.slane %v1558_v59, 1  ;;  %v572_v41 = vor.u32 %v571_v58, %v567_v54 }
  0x63   : > { %789 = vrot.lane.b32.xlu1 %v754_v1, %s1951_s28  ;;  %v756_v1 = vshrl.u32 %v1598_v26, 16 }
  0x65   : > { %523 = vrot.lane.b32.xlu0 %v1564_v24, %s1951_s28  ;;  %v476_v24 = vrot.slane %v1559_v39, 1  ;;  %v761_v4 = vor.u32 %v760_v23, %v756_v1  ;;  %v604_v23 = vshll.u32 %v2123_v5, 16 }
  0x67   : > { %525 = vrot.lane.b32.xlu1 %v1565_v33, %s1951_s28 }
  0x69   : > { %655 = vrot.lane.b32.xlu0 %v643_v42, %s1950_s17 }
  0x6b   : > { %657 = vrot.lane.b32.xlu1 %v644_v40, %s1950_s17 }
  0x6d   : > { %439 = vrot.lane.b32.xlu0 %v409_v55, %s1950_s17 }
  0x6f   : > { %441 = vrot.lane.b32.xlu1 %v416_v32, %s1950_s17 }
  0x71   : > { %695 = vrot.lane.b32.xlu0 %v1590_v0, %s1949_s14 }
  0x73   : > { %697 = vrot.lane.b32.xlu1 %v1591_v34, %s1949_s14 }
  0x75   : > { %487 = vrot.lane.b32.xlu0 %v475_v45, %s1949_s14 }
  0x77   : > { %489 = vrot.lane.b32.xlu1 %v476_v24, %s1949_s14 }
  0x79   : > { %791 = vrot.lane.b32.xlu0 %v761_v4, %s1951_s28  ;;  %v611_v4 = vshll.u32 %v2130_v13, 16 }
  0x7b   : > { %793 = vrot.lane.b32.xlu1 %v768_v27, %s1951_s28 }
  0x7d   : > { %527 = vrot.lane.b32.xlu0 %v1566_v17, %s1951_s28 }
  0x7f   : > { %529 = vrot.lane.b32.xlu1 %v1567_v29, %s1951_s28 }
  0x91   : > { %v690_v36 = vpop.permute.xlu1 %689 }
  0x93   : > { %v648_v33 = vpop.permute.xlu0 %647 }
  0x94   : > { %v892_v0 = vsel %vm831_vm0, %v565_v62, %v648_v33 }
  0x97   : > { %v650_v37 = vpop.permute.xlu0 %649 }
  0x98   : > { %v895_v59 = vsel %vm831_vm0, %v572_v41, %v650_v37  ;;  %v606_v37 = vrot.slane %v604_v23, 1 }
  0x99   : > { %v432_v42 = vpop.permute.xlu1 %431  ;;  %v917_v34 = vsel %vm856_vm2, %v895_v59, %v690_v36  ;;  %v602_v36 = vshrl.u32 %v2123_v5, 16 }
  0x9a   : > { %v834_v24 = vsel %vm831_vm0, %v2051_v10, %v432_v42  ;;  %v609_v42 = vshrl.u32 %v2130_v13, 16 }
  0x9b   : > { %v688_v40 = vpop.permute.xlu0 %687  ;;  %v607_v47 = vor.u32 %v606_v37, %v602_v36 }
  0x9c   : > { %v915_v9 = vsel %vm856_vm2, %v892_v0, %v688_v40  ;;  %v613_v40 = vrot.slane %v611_v4, 1 }
  0x9d   : > { %v434_v44 = vpop.permute.xlu1 %433 }
  0x9e   : > { %v837_v27 = vsel %vm831_vm0, %v2062_v18, %v434_v44  ;;  %v614_v18 = vor.u32 %v613_v40, %v609_v42 }
  0x9f   : > { %v480_v55 = vpop.permute.xlu0 %479 }
  0xa0   : > { %v858_v25 = vsel %vm856_vm2, %v834_v24, %v480_v55  ;;  %v576_v24 = vshll.u32 %v2197_v61, 16 }
  0xa1   : > { %v482_v26 = vpop.permute.xlu1 %481 }
  0xa2   : > { %v860_v29 = vsel %vm856_vm2, %v837_v27, %v482_v26  ;;  %v578_v4 = vrot.slane %v576_v24, 1 }
  0xa3   : > { %v660_v32 = vpop.permute.xlu0 %659 }
  0xa4   : > { %v910_v58 = vsel %vm831_vm0, %v607_v47, %v660_v32  ;;  %v590_v47 = vshll.u32 %v2274_v48, 16 }
  0xa5   : > { %v662_v63 = vpop.permute.xlu1 %661 }
  0xa6   : > { %v913_v5 = vsel %vm831_vm0, %v614_v18, %v662_v63  ;;  %v597_v18 = vshll.u32 %v2278_v56, 16 }
  0xa7   : > { %v784_v8 = vpop.permute.xlu0 %783 }
  0xa8   : > { %v931_v11 = vsel %vm873_vm1, %v915_v9, %v784_v8 }
  0xa9   : > { %v786_v52 = vpop.permute.xlu1 %785 }
  0xaa   : > { %v933_v51 = vsel %vm873_vm1, %v917_v34, %v786_v52 }
  0xab   : > { %v444_v39 = vpop.permute.xlu0 %443  ;;  %v1612_v45 = vcombine.low %v931_v11, %v933_v51 }
  0xac   : > { %v852_v0 = vsel %vm831_vm0, %v2085_v38, %v444_v39  ;;  %v1891_v38 = vld [vmem:[%s2068_s27 + $0x88] sm:$0xff]  }
  0xad   : > { %1205 = vmatprep.mubr.bf16.mxu0 %v1612_v45  ;;  %v446_v1 = vpop.permute.xlu1 %445 }
  0xae   : > { %v855_v11 = vsel %vm831_vm0, %v2099_v49, %v446_v1  ;;  %v583_v49 = vshll.u32 %v2210_v2, 16 }
  0xaf   : > { %v520_v46 = vpop.permute.xlu0 %519 }
  0xb0   : > { %v875_v17 = vsel %vm873_vm1, %v858_v25, %v520_v46  ;;  %v574_v25 = vshrl.u32 %v2197_v61, 16 }
  0xb1   : > { %v522_v33 = vpop.permute.xlu1 %521 }
  0xb2   : > { %v877_v43 = vsel %vm873_vm1, %v860_v29, %v522_v33  ;;  %v585_v29 = vrot.slane %v583_v49, 1  ;;  %v579_v12 = vor.u32 %v578_v4, %v574_v25 }
  0xb3   : > { %v700_v57 = vpop.permute.xlu0 %699  ;;  %v1611_v10 = vcombine.low %v875_v17, %v877_v43  ;;  %v581_v17 = vshrl.u32 %v2210_v2, 16 }
  0xb4   : > { %v927_v26 = vsel %vm856_vm2, %v910_v58, %v700_v57  ;;  %v592_v58 = vrot.slane %v590_v47, 1 }
  0xb5   : > { %1206 = vmatmul.mubr.bf16.vlgmr.msra.gmra.mrb[0].mxu0 %v1611_v10  ;;  %v702_v31 = vpop.permute.xlu1 %701  ;;  %v586_v61 = vor.u32 %v585_v29, %v581_v17 }
  0xb6   : > { %v929_v41 = vsel %vm856_vm2, %v913_v5, %v702_v31  ;;  %v599_v5 = vrot.slane %v597_v18, 1 }
  0xb7   : > { %v492_v54 = vpop.permute.xlu0 %491 }
  0xb8   : > { %v870_v9 = vsel %vm856_vm2, %v852_v0, %v492_v54 }
  0xb9   : > { %v494_v44 = vpop.permute.xlu1 %493 }
  0xba   : > { %v872_v52 = vsel %vm856_vm2, %v855_v11, %v494_v44 }
  0xbb   : > { %v796_v55 = vpop.permute.xlu0 %795 }
  0xbc   : > { %v943_v62 = vsel %vm873_vm1, %v927_v26, %v796_v55  ;;  %v595_v26 = vshrl.u32 %v2278_v56, 16 }
  0xbd   : > { %v798_v13 = vpop.permute.xlu1 %797 }
  0xbe   : > { %v945_v8 = vsel %vm873_vm1, %v929_v41, %v798_v13  ;;  %v600_v0 = vor.u32 %v599_v5, %v595_v26  ;;  %v989_v5 = vld [vmem:[#allocation2 + $0x18] sm:$0xff] }
  0xbf   : > { %v532_v59 = vpop.permute.xlu0 %531  ;;  %v1621_v32 = vcombine.low %v943_v62, %v945_v8 }
  0xc0   : > { %v887_v63 = vsel %vm873_vm1, %v870_v9, %v532_v59 }
  0xc1   : > { %1229 = vmatprep.mubr.bf16.mxu1 %v1621_v32  ;;  %v534_v34 = vpop.permute.xlu1 %533 }
  0xc2   : > { %v889_v51 = vsel %vm873_vm1, %v872_v52, %v534_v34 }
  0xc3   : > { %v652_v45 = vpop.permute.xlu0 %651  ;;  %v1620_v23 = vcombine.low %v887_v63, %v889_v51 }
  0xc4   : > { %v898_v33 = vsel %vm831_vm0, %v579_v12, %v652_v45 }
  0xc5   : > { %1230 = vmatmul.mubr.bf16.vlgmr.msra.gmra.mrb[0].mxu1 %v1620_v23  ;;  %v654_v39 = vpop.permute.xlu1 %653 }
  0xc6   : > { %1721 = vmatpush3.bf16.msra.mxu1 %v2305_v28  ;;  %1724 = vmatprep.mubr.msk.bf16.mxu1 %vm831_vm0, %v1613_v22  ;;  %v901_v37 = vsel %vm831_vm0, %v586_v61, %v654_v39 }
  0xc7   : > { %v436_v46 = vpop.permute.xlu0 %435  ;;  %1722 = vmatprep.subr.bf16.mxu1 %v1891_v38 }
  0xc8   : > { %v840_v19 = vsel %vm831_vm0, %v2185_v6, %v436_v46 }
  0xc9   : > { %v438_v1 = vpop.permute.xlu1 %437 }
  0xca   : > { %1723 = vmatpush3.bf16.msra.mxu1 %v1891_v38  ;;  %v843_v10 = vsel %vm831_vm0, %v2238_v30, %v438_v1  ;;  %v588_v30 = vshrl.u32 %v2274_v48, 16 }
  0xcb   : > { %v692_v27 = vpop.permute.xlu0 %691 }
  0xcc   : > { %v919_v2 = vsel %vm856_vm2, %v898_v33, %v692_v27  ;;  %v593_v41 = vor.u32 %v592_v58, %v588_v30  ;;  %v988_v30 = vld [vmem:[#allocation2 + $0x10] sm:$0xff] }
  0xcd   : > { %1725 = vmatmul.mubr.msk.bf16.vlgmr.msra.gmra.mrb[4].mxu1 %vm831_vm0, %v1616_v60  ;;  %v694_v50 = vpop.permute.xlu1 %693 }
  0xce   : > { %1728 = vmatprep.mubr.msk.bf16.mxu1 %vm831_vm0, %v1619_v7  ;;  %v921_v53 = vsel %vm856_vm2, %v901_v37, %v694_v50 }
  0xcf   : > { %v484_v22 = vpop.permute.xlu0 %483 }
  0xd0   : > { %v862_v43 = vsel %vm856_vm2, %v840_v19, %v484_v22 }
  0xd1   : > { %v486_v28 = vpop.permute.xlu1 %485 }
  0xd2   : > { %v864_v40 = vsel %vm856_vm2, %v843_v10, %v486_v28 }
  0xd3   : > { %v788_v36 = vpop.permute.xlu0 %787 }
  0xd4   : > { %v935_v35 = vsel %vm873_vm1, %v919_v2, %v788_v36  ;;  %v986_v36 = vld [vmem:[#allocation2] sm:$0xff] }
  0xd5   : > { %1729 = vmatmul.mubr.msk.bf16.gmra.mrb[8].mxu1 %vm831_vm0, %v1622_v21  ;;  %v790_v60 = vpop.permute.xlu1 %789 }
  0xd6   : > { %v937_v20 = vsel %vm873_vm1, %v921_v53, %v790_v60  ;;  %v987_v53 = vld [vmem:[#allocation2 + $0x8] sm:$0xff] }
  0xd7   : > { %v524_v7 = vpop.permute.xlu0 %523  ;;  %v1615_v57 = vcombine.low %v935_v35, %v937_v20 }
  0xd8   : > { %v879_v42 = vsel %vm873_vm1, %v862_v43, %v524_v7  ;;  %v992_v43 = vld [vmem:[#allocation2 + $0x30] sm:$0xff] }
  0xd9   : > { %1213 = vmatprep.mubr.bf16.mxu0 %v1615_v57  ;;  %v526_v14 = vpop.permute.xlu1 %525 }
  0xda   : > { %v881_v16 = vsel %vm873_vm1, %v864_v40, %v526_v14  ;;  %v993_v40 = vld [vmem:[#allocation2 + $0x38] sm:$0xff] }
  0xdb   : > { %v656_v21 = vpop.permute.xlu0 %655  ;;  %v1614_v31 = vcombine.low %v879_v42, %v881_v16 }
  0xdc   : > { %v904_v8 = vsel %vm831_vm0, %v593_v41, %v656_v21 }
  0xdd   : > { %1214 = vmatmul.mubr.bf16.gmra.mrb[4].mxu0 %v1614_v31  ;;  %v658_v6 = vpop.permute.xlu1 %657 }
  0xde   : > { %v907_v11 = vsel %vm831_vm0, %v600_v0, %v658_v6 }
  0xdf   : > { %v440_v54 = vpop.permute.xlu0 %439 }
  0xe0   : > { %v846_v56 = vsel %vm831_vm0, %v2323_v3, %v440_v54 }
  0xe1   : > { %v442_v44 = vpop.permute.xlu1 %441 }
  0xe2   : > { %v849_v38 = vsel %vm831_vm0, %v2330_v15, %v442_v44 }
  0xe3   : > { %v696_v55 = vpop.permute.xlu0 %695 }
  0xe4   : > { %v923_v32 = vsel %vm856_vm2, %v904_v8, %v696_v55 }
  0xe5   : > { %v698_v62 = vpop.permute.xlu1 %697 }
  0xe6   : > { %v925_v48 = vsel %vm856_vm2, %v907_v11, %v698_v62 }
  0xe7   : > { %v488_v13 = vpop.permute.xlu0 %487 }
  0xe8   : > { %v866_v45 = vsel %vm856_vm2, %v846_v56, %v488_v13 }
  0xe9   : > { %v490_v59 = vpop.permute.xlu1 %489 }
  0xea   : > { %v868_v24 = vsel %vm856_vm2, %v849_v38, %v490_v59  ;;  %v1646_v38 = vld [vmem:[%s2493_s2] ss:$0 sm:$0xff] (!%p1645_p10) }
  0xeb   : > { %v792_v9 = vpop.permute.xlu0 %791 }
  0xec   : > { %v939_v63 = vsel %vm873_vm1, %v923_v32, %v792_v9  ;;  %v990_v32 = vld [vmem:[#allocation2 + $0x20] sm:$0xff] }
  0xed   : > { %v794_v52 = vpop.permute.xlu1 %793 }
  0xee   : > { %v941_v34 = vsel %vm873_vm1, %v925_v48, %v794_v52  ;;  %v991_v52 = vld [vmem:[#allocation2 + $0x28] sm:$0xff] }
  0xef   : > { %v528_v51 = vpop.permute.xlu0 %527  ;;  %v1618_v23 = vcombine.low %v939_v63, %v941_v34 }
  0xf0   : > { %v883_v39 = vsel %vm873_vm1, %v866_v45, %v528_v51 }
  0xf1   : > { %1221 = vmatprep.mubr.bf16.mxu0 %v1618_v23  ;;  %v530_v46 = vpop.permute.xlu1 %529 }
  0xf2   : > { %v885_v49 = vsel %vm873_vm1, %v868_v24, %v530_v46  ;;  %v1647_v46 = vld [vmem:[%s2494_s3] ss:$0 sm:$0xff] (!%p1645_p10) }
  0xf3   : > { %v1617_v1 = vcombine.low %v883_v39, %v885_v49 }
  0xf5   : > { %1222 = vmatmul.mubr.bf16.gmra.mrb[8].mxu0 %v1617_v1 }
 0x188   : > { %v1690_v3 = vpop.f32.mrb[0].mxu0 }
 0x189   : > { %v1691_v25 = vpop.f32.mrb[1].mxu0 }
 0x18a   : > { %v1692_v4 = vadd.f32 %v1691_v25, %v1690_v3  ;;  %v1693_v27 = vpop.f32.mrb[2].mxu0 }
 0x18b   : > { %v1694_v17 = vpop.f32.mrb[3].mxu0 }
 0x18c   : > { %v1695_v29 = vadd.f32 %v1694_v17, %v1693_v27 }
 0x198   : > { %v1708_v50 = vpop.f32.mrb[0].mxu1 }
 0x199   : > { %v1709_v12 = vpop.f32.mrb[1].mxu1 }
 0x19a   : > { %v1710_v22 = vadd.f32 %v1709_v12, %v1708_v50  ;;  %v1711_v15 = vpop.f32.mrb[2].mxu1 }
 0x19b   : > { %v1712_v61 = vpop.f32.mrb[3].mxu1 }
 0x19c   : > { %v1713_v28 = vadd.f32 %v1712_v61, %v1711_v15 }
 0x1a0   : > { %v1726_v33 = vpop.f32.mrb[4].mxu1 }
 0x1a1   : > { %v1272_v2 = vpop.f32.mrb[5].mxu1 }
 0x1a2   : > { %v1273_v37 = vadd.f32 %v1692_v4, %v1272_v2  ;;  %v1727_v35 = vpop.f32.mrb[6].mxu1 }
 0x1a3   : > { %v1275_v60 = vpop.f32.mrb[7].mxu1 }
 0x1a4   : > { %v1303_v19 = vadd.f32 %v1273_v37, %v986_v36  ;;  %v1276_v20 = vadd.f32 %v1695_v29, %v1275_v60 }
 0x1a6   : > { %1311 = vst [vmem:[#allocation2] sm:$0xff] %v1303_v19  ;;  %v1304_v7 = vadd.f32 %v1276_v20, %v987_v53 }
 0x1a8   : > { %1312 = vst [vmem:[#allocation2 + $0x8] sm:$0xff] %v1304_v7  ;;  %v1730_v57 = vpop.f32.mrb[8].mxu1 }
 0x1a9   : > { %v1297_v10 = vadd.f32 %v1730_v57, %v1710_v22  ;;  %v1288_v42 = vpop.f32.mrb[9].mxu1 }
 0x1aa   : > { %v1731_v14 = vpop.f32.mrb[10].mxu1 }
 0x1ab   : > { %v1309_v16 = vadd.f32 %v1297_v10, %v992_v43  ;;  %v1300_v21 = vadd.f32 %v1731_v14, %v1713_v28  ;;  %v1291_v31 = vpop.f32.mrb[11].mxu1 }
 0x1ad   : > { %1317 = vst [vmem:[#allocation2 + $0x30] sm:$0xff] %v1309_v16  ;;  %v1310_v6 = vadd.f32 %v1300_v21, %v993_v40  ;;  %v1323_v45 = vld [vmem:[#allocation2] sm:$0xff] (!%p1645_p10) }
 0x1ae   : > { %v1338_v39 = vmul.f32 (!%p1645_p10), %v1646_v38, %v1323_v45 }
 0x1af   : > { %1318 = vst [vmem:[#allocation2 + $0x38] sm:$0xff] %v1310_v6  ;;  %v1324_v23 = vld [vmem:[#allocation2 + $0x8] sm:$0xff] (!%p1645_p10) }
 0x1b0   : > { %v1696_v47 = vpop.f32.mrb[4].mxu0  ;;  %v1339_v24 = vmul.f32 (!%p1645_p10), %v1646_v38, %v1324_v23  ;;  %v1353_v29 = vadd.f32 (!%p1645_p10), %v1647_v46, %v1338_v39 }
 0x1b1   : > { %v1697_v54 = vpop.f32.mrb[5].mxu0 }
 0x1b2   : > { %v1698_v18 = vadd.f32 %v1697_v54, %v1696_v47  ;;  %v1699_v44 = vpop.f32.mrb[6].mxu0  ;;  %v1354_v50 = vadd.f32 (!%p1645_p10), %v1647_v46, %v1339_v24  ;;  %v1361_v2 = vmax.f32 (!%p1645_p10), %v1353_v29, 0.0 }
 0x1b3   : > { %v1700_v58 = vpop.f32.mrb[7].mxu0 }
 0x1b4   : > { %v1281_v55 = vadd.f32 %v1726_v33, %v1698_v18  ;;  %v1701_v26 = vadd.f32 %v1700_v58, %v1699_v44  ;;  %v1329_v17 = vld [vmem:[#allocation2 + $0x30] sm:$0xff] (!%p1645_p10)  ;;  %v1362_v37 = vmax.f32 (!%p1645_p10), %v1354_v50, 0.0 }
 0x1b5   : > { %v1344_v33 = vmul.f32 (!%p1645_p10), %v1646_v38, %v1329_v17 }
 0x1b6   : > { %v1305_v62 = vadd.f32 %v1281_v55, %v988_v30  ;;  %v1284_v41 = vadd.f32 %v1727_v35, %v1701_v26  ;;  %v1330_v15 = vld [vmem:[#allocation2 + $0x38] sm:$0xff] (!%p1645_p10)  ;;  %v1654_v43 = vpack.c.bf16 (!%p1645_p10), %v1362_v37, %v1361_v2 }
 0x1b7   : > { %v1345_v36 = vmul.f32 (!%p1645_p10), %v1646_v38, %v1330_v15  ;;  %v1359_v20 = vadd.f32 (!%p1645_p10), %v1647_v46, %v1344_v33 }
 0x1b8   : > { %1313 = vst [vmem:[#allocation2 + $0x10] sm:$0xff] %v1305_v62  ;;  %v1306_v13 = vadd.f32 %v1284_v41, %v989_v5  ;;  %1655 = vst [vmem:[%s2035_s13] sm:$0xff] (!%p1645_p10), %v1654_v43  }
 0x1b9   : > { %v1360_v7 = vadd.f32 (!%p1645_p10), %v1647_v46, %v1345_v36  ;;  %v1367_v40 = vmax.f32 (!%p1645_p10), %v1359_v20, 0.0 }
 0x1ba   : > { %1314 = vst [vmem:[#allocation2 + $0x18] sm:$0xff] %v1306_v13 }
 0x1bb   : > { %v1368_v14 = vmax.f32 (!%p1645_p10), %v1360_v7, 0.0 }
 0x1bd   : > { %v1669_v21 = vpack.c.bf16 (!%p1645_p10), %v1368_v14, %v1367_v40 }
 0x1bf   : > { %v1325_v49 = vld [vmem:[#allocation2 + $0x10] sm:$0xff] (!%p1645_p10)  ;;  %1673 = vst [vmem:[%s2035_s13 + $0x18] sm:$0xff] (!%p1645_p10), %v1669_v21  }
 0x1c0   : > { %v1340_v3 = vmul.f32 (!%p1645_p10), %v1646_v38, %v1325_v49 }
 0x1c1   : > { %v1326_v1 = vld [vmem:[#allocation2 + $0x18] sm:$0xff] (!%p1645_p10) }
 0x1c2   : > { %v1341_v25 = vmul.f32 (!%p1645_p10), %v1646_v38, %v1326_v1  ;;  %v1355_v61 = vadd.f32 (!%p1645_p10), %v1647_v46, %v1340_v3 }
 0x1c4   : > { %v1356_v28 = vadd.f32 (!%p1645_p10), %v1647_v46, %v1341_v25  ;;  %v1363_v60 = vmax.f32 (!%p1645_p10), %v1355_v61, 0.0 }
 0x1c6   : > { %v1364_v19 = vmax.f32 (!%p1645_p10), %v1356_v28, 0.0 }
 0x1c8   : > { %v1702_v0 = vpop.f32.mrb[8].mxu0 }
 0x1c9   : > { %v1703_v59 = vpop.f32.mrb[9].mxu0 }
 0x1ca   : > { %v1704_v8 = vadd.f32 %v1703_v59, %v1702_v0  ;;  %v1705_v9 = vpop.f32.mrb[10].mxu0 }
 0x1cb   : > { %v1706_v11 = vpop.f32.mrb[11].mxu0 }
 0x1cc   : > { %v1289_v63 = vadd.f32 %v1704_v8, %v1288_v42  ;;  %v1707_v48 = vadd.f32 %v1706_v11, %v1705_v9  ;;  %1322 = sbr.rel (%p1645_p10) target bundleno = 483 (0x1e3), region = 44  ;;  %v1659_v42 = vpack.c.bf16 (!%p1645_p10), %v1364_v19, %v1363_v60 }
 0x1ce   : > { %v1307_v56 = vadd.f32 %v1289_v63, %v990_v32  ;;  %v1292_v34 = vadd.f32 %v1707_v48, %v1291_v31  ;;  %1671 = vst [vmem:[%s2035_s13 + $0x8] sm:$0xff] (!%p1645_p10), %v1659_v42  }
 0x1d0   : > { %1315 = vst [vmem:[#allocation2 + $0x20] sm:$0xff] %v1307_v56  ;;  %v1308_v51 = vadd.f32 %v1292_v34, %v991_v52 }
 0x1d2   : > { %1316 = vst [vmem:[#allocation2 + $0x28] sm:$0xff] %v1308_v51 }
 0x1d7   : > { %v1327_v4 = vld [vmem:[#allocation2 + $0x20] sm:$0xff] }
 0x1d8   : > { %v1342_v12 = vmul.f32 %v1646_v38, %v1327_v4 }
 0x1d9   : > { %v1328_v27 = vld [vmem:[#allocation2 + $0x28] sm:$0xff] }
 0x1da   : > { %v1343_v22 = vmul.f32 %v1646_v38, %v1328_v27  ;;  %v1357_v35 = vadd.f32 %v1647_v46, %v1342_v12 }
 0x1dc   : > { %v1358_v53 = vadd.f32 %v1647_v46, %v1343_v22  ;;  %v1365_v57 = vmax.f32 %v1357_v35, 0.0 }
 0x1de   : > { %v1366_v10 = vmax.f32 %v1358_v53, 0.0 }
 0x1e0   : > { %v1664_v16 = vpack.c.bf16 %v1366_v10, %v1365_v57 }
 0x1e2   : > { %1672 = vst [vmem:[%s2035_s13 + $0x10] sm:$0xff] %v1664_v16  }
 0x1e3 PF: > { %s14_s21 = sadd.s32 1, %s1946_s21   ;;  %s2496_s15 = smov %s1934_s18 }
 0x1e4   : > { %p11_p11 = scmp.ge.s32.totalorder %s14_s21, 26   ;;  %s2497_s16 = smov %s1938_s19 }
 0x1e5   : > { %s2498_s17 = smov %s1942_s20  ;;  %s2499_s18 = smov %s2503_s22 }
 0x1e6   : > { %s2500_s19 = smov %s2507_s23  ;;  %s2501_s20 = smov %s2511_s24 }
 0x1e7   :  { %13 = sbr.rel (!%p11_p11) target bundleno = 4 (0x4), region = 77 }

// kernel: mixed_3c_forward.5
= control target key start
LH: loop header
LB: loop body
LE: loop exit
PB: predicated region body
PF: predicated region fallthrough
CT: control target
= control target key end

     0   :  { %s3205_s15 = smov 0   ;;  %s3207_s16 = smov 0   ;;  %s3764_s0 = inlined_call_operand.vmem [shape: bf16[2,6,10,10,128], index: 0, kind: input, shape index: {}]   ;;  %s3765_s1 = inlined_call_operand.vmem [shape: bf16[3,1152,192], index: 1, kind: input, shape index: {}]   ;;  %s3766_s2 = inlined_call_operand.vmem [shape: f32[1,192], index: 2, kind: input, shape index: {}]   ;;  %s3767_s3 = inlined_call_operand.vmem [shape: f32[1,192], index: 3, kind: input, shape index: {}]   ;;  %s3768_s4 = inlined_call_operand.vmem [shape: bf16[2,4,8,8,192], index: 4, kind: output, shape index: {}]  }
   0x1   :  { %s3209_s17 = smov 0   ;;  %s3211_s18 = smov 0  }
   0x2   :  { %s3213_s19 = smov 0   ;;  %s3215_s20 = smov 0  }
   0x3   :  { %s3217_s21 = smov 0  }
   0x4 LB: > { %s26_s22 = sadd.s32 1, %s3164_s18  ;;  %s29_s23 = sadd.s32 1, %s3168_s19  ;;  %s3176_s21 = sphi %s3217_s21, %s14_s21   ;;  %s3172_s20 = sphi %s3215_s20, %s3776_s20   ;;  %s3168_s19 = sphi %s3213_s19, %s3775_s19   ;;  %s3164_s18 = sphi %s3211_s18, %s3774_s18   ;;  %s3160_s17 = sphi %s3209_s17, %s3773_s17   ;;  %s3156_s16 = sphi %s3207_s16, %s3772_s16   ;;  %s3152_s15 = sphi %s3205_s15, %s3771_s15  }
   0x5   : > { %p27_p0 = scmp.ge.s32.totalorder %s26_s22, 3  ;;  %p2403_p1 = scmp.ge.s32.totalorder %s3176_s21, 1 }
   0x6   : > { %p193_p2 = scmp.lt.s32.totalorder %s3176_s21, 25  ;;  %s33_s24 = sadd.s32 1, %s3172_s20 }
   0x7   : > { %s3778_s22 = smov (%p27_p0, %s26_s22), 0  ;;  %s3780_s23 = smov (!%p27_p0, %s29_s23), %s3168_s19 }
   0x8   : > { %p194_p3 = pnand %p2403_p1, %p193_p2  ;;  %p31_p4 = scmp.ge.s32.totalorder %s3780_s23, 4 }
   0x9   : > { %s228_s25 = sadd.s32 (!%p194_p3), %s3152_s15, %s3156_s16  ;;  %p229_p6 = scmp.lt.s32.totalorder (!%p194_p3), %s3160_s17, 1 }
   0xa   : > { %s3782_s23 = smov (%p31_p4, %s3780_s23), 0  ;;  %s3784_s24 = smov (!%p31_p4, %s33_s24), %s3172_s20 }
   0xb   : > { %p35_p5 = scmp.ge.s32.totalorder %s3784_s24, 2  ;;  %197 = sbr.rel (%p194_p3) target bundleno = 442 (0x1ba), region = 36 }
   0xc   : > { %p231_p7 = scmp.lt.s32.totalorder (!%p194_p3), %s228_s25, 5  ;;  %p241_p8 = scmp.lt.s32.totalorder (!%p194_p3), %s3156_s16, 3 }
   0xd   : > { %s3786_s24 = smov (%p35_p5, %s3784_s24), 0  ;;  %p2408_p9 = scmp.ne.s32.totalorder (!%p194_p3), %s3152_s15, 0 }
  0x12   : > { %s3788_s17 = smov (!%p229_p6, %s3160_s17), 1  ;;  %s3790_s25 = smov (!%p231_p7, %s228_s25), 5 }
  0x13   : > { %s2787_s26 = smul.u32 120, %s3788_s17  ;;  %s2406_s28 = sshll.u32 %s3788_s17, 6  ;;  %vm254_vm0 = vcmask (!%p2408_p9), 523264   ;;  %v3178_v0 = vmov (!%p2408_p9), 0.0  }
  0x14   : > { %s2786_s27 = smul.u32 20, %s3790_s25  ;;  %s3792_s16 = smov (!%p241_p8, %s3156_s16), 3  ;;  %253 = vst [vmem:[#allocation2] sm:$0xff] (!%p2408_p9), %v3178_v0  ;;  %256 = vst [vmem:[#allocation2 + $0x10] sm:$0xff] (!%p2408_p9), %v3178_v0 }
  0x15   : > { %s2405_s5 = sshll.u32 %s3792_s16, 4  ;;  %252 = sbr.rel (%p2408_p9) target bundleno = 28 (0x1c), region = 40  ;;  %258 = vst [vmem:[#allocation2 + $0x20] sm:$0xff] (!%p2408_p9), %v3178_v0  ;;  %260 = vst [vmem:[#allocation2 + $0x30] sm:$0xff] (!%p2408_p9), %v3178_v0 }
  0x16   : > { %s235_s29 = sadd.s32 %s2787_s26, %s2786_s27  ;;  %s245_s9 = sadd.s32 %s2406_s28, %s2405_s5  ;;  %262 = vst [vmem:[#allocation2 + $0x40] sm:$0xff] (!%p2408_p9), %v3178_v0  ;;  %264 = vst [vmem:[#allocation2 + $0x50] sm:$0xff] (!%p2408_p9), %v3178_v0 }
  0x17   : > { %s2404_s30 = sshll.u32 %s235_s29, 2  ;;  %s2407_s10 = sshll.u32 %s245_s9, 2  ;;  %266 = vst [vmem:[#allocation2 + $0x60] sm:$0xff] (!%p2408_p9), %v3178_v0  ;;  %268 = vst [vmem:[#allocation2 + $0x70] sm:$0xff] (!%p2408_p9), %v3178_v0 }
  0x18   : > { %s3258_s8 = scalar_lea.vmem %s3764_s0, %s2404_s30  ;;  %s3263_s13 = scalar_lea.vmem %s3768_s4, %s2407_s10  ;;  %255 = vst.msk [vmem:[#allocation2 + $0x8] sm:$0xff] (!%p2408_p9), %vm254_vm0, %v3178_v0  ;;  %257 = vst.msk [vmem:[#allocation2 + $0x18] sm:$0xff] (!%p2408_p9), %vm254_vm0, %v3178_v0 }
  0x19   : > { %259 = vst.msk [vmem:[#allocation2 + $0x28] sm:$0xff] (!%p2408_p9), %vm254_vm0, %v3178_v0  ;;  %261 = vst.msk [vmem:[#allocation2 + $0x38] sm:$0xff] (!%p2408_p9), %vm254_vm0, %v3178_v0 }
  0x1a   : > { %263 = vst.msk [vmem:[#allocation2 + $0x48] sm:$0xff] (!%p2408_p9), %vm254_vm0, %v3178_v0  ;;  %265 = vst.msk [vmem:[#allocation2 + $0x58] sm:$0xff] (!%p2408_p9), %vm254_vm0, %v3178_v0 }
  0x1b   : > { %267 = vst.msk [vmem:[#allocation2 + $0x68] sm:$0xff] (!%p2408_p9), %vm254_vm0, %v3178_v0  ;;  %269 = vst.msk [vmem:[#allocation2 + $0x78] sm:$0xff] (!%p2408_p9), %vm254_vm0, %v3178_v0 }
  0x1c PF: > { %s2697_s14 = smul.u32 1152, %s3152_s15  ;;  %v3276_v1 = vld [vmem:[%s3258_s8] sm:$0xf]  ;;  %v3279_v2 = vld [vmem:[%s3258_s8 + $0x8] sm:$0xf]  ;;  %vm2113_vm1 = vcmask 523264  }
  0x1d   : > { %v278_v3 = vld [vmem:[%s3258_s8 + $0x4] sm:$0x1]  ;;  %v279_v4 = vld [vmem:[%s3258_s8 + $0xc] sm:$0x1]  ;;  %v286_v5 = vld [vmem:[%s3258_s8] sm:$0xe]  ;;  %v2506_v6 = vcombine.low %v3276_v1, %v3279_v2 }
  0x1e   : > { %s3289_s25 = scalar_lea.vmem %s3765_s1, %s2697_s14  ;;  %v287_v7 = vld [vmem:[%s3258_s8 + $0x8] sm:$0xe]  ;;  %v2457_v8 = vcombine.low %v3276_v1, %v278_v3  ;;  %v2458_v9 = vcombine.low %v3279_v2, %v279_v4  ;;  %v2465_v11 = vcombine.low %v286_v5, %v278_v3  ;;  %p2686_p10 = scmp.ne.s32.totalorder %s3152_s15, 2 }
  0x1f   : > { %v2846_v10 = vld [vmem:[%s3289_s25 + $0x4] ss:$8 sps:$4 sm:$0xff]   ;;  %v2466_v15 = vcombine.low %v287_v7, %v279_v4  ;;  %v2850_v16 = vld [vmem:[%s3289_s25] ss:$8 sps:$4 sm:$0xff]   ;;  %v2852_v19 = vld [vmem:[%s3289_s25 + $0x14] ss:$8 sps:$4 sm:$0xff]  }
  0x20   : > { %v2848_v12 = vld [vmem:[%s3289_s25 + $0x204] ss:$8 sps:$4 sm:$0xff]   ;;  %v385_v13 = vshrl.u32 %v2457_v8, 16  ;;  %v387_v14 = vshll.u32 %v2457_v8, 16  ;;  %1731 = vmatprep.subr.bf16.mxu1 %v2846_v10  ;;  %v2851_v17 = vld [vmem:[%s3289_s25 + $0x200] ss:$8 sps:$4 sm:$0xff]  }
  0x21   : > { %v392_v18 = vshrl.u32 %v2458_v9, 16  ;;  %1877 = vmatprep.subr.bf16.mxu0 %v2848_v12  ;;  %v394_v21 = vshll.u32 %v2458_v9, 16  ;;  %1732 = vmatpush1.bf16.msra.mxu1 %v2850_v16  ;;  %v2854_v22 = vld [vmem:[%s3289_s25 + $0x214] ss:$8 sps:$4 sm:$0xff]   ;;  %v2856_v23 = vld [vmem:[%s3289_s25 + $0x10] ss:$8 sps:$4 sm:$0xff]  }
  0x22   : > { %v389_v20 = vrot.slane %v387_v14, 1  ;;  %1878 = vmatpush1.bf16.msra.mxu0 %v2851_v17  ;;  %v3301_v24 = vrot.slane %v2465_v11, 1  ;;  %1733 = vmatprep.subr.bf16.mxu1 %v2852_v19  ;;  %v2857_v25 = vld [vmem:[%s3289_s25 + $0x210] ss:$8 sps:$4 sm:$0xff]   ;;  %v3304_v28 = vrot.slane %v2466_v15, 1  ;;  %vm2285_vm2 = vcmask (!%p2686_p10), 1043456  }
  0x23   : > { %v396_v27 = vrot.slane %v394_v21, 1  ;;  %1879 = vmatprep.subr.bf16.mxu0 %v2854_v22  ;;  %v2858_v29 = vld [vmem:[%s3289_s25 + $0x24] ss:$8 sps:$4 sm:$0xff]   ;;  %v2862_v31 = vld [vmem:[%s3289_s25 + $0x20] ss:$8 sps:$4 sm:$0xff]   ;;  %vm2286_vm3 = vcmask (!%p2686_p10), 523268  }
  0x24   : > { %v390_v26 = vor.u32 %v389_v20, %v385_v13  ;;  %v2860_v30 = vld [vmem:[%s3289_s25 + $0x224] ss:$8 sps:$4 sm:$0xff]   ;;  %v2863_v32 = vld [vmem:[%s3289_s25 + $0x220] ss:$8 sps:$4 sm:$0xff]   ;;  %v2508_v34 = vcombine.low %v3301_v24, %v3304_v28  ;;  %v2864_v35 = vld [vmem:[%s3289_s25 + $0x34] ss:$8 sps:$4 sm:$0xff]  }
  0x25   : > { %v397_v33 = vor.u32 %v396_v27, %v392_v18  ;;  %1734 = vmatpush1.bf16.msra.mxu1 %v2856_v23  ;;  %v2866_v36 = vld [vmem:[%s3289_s25 + $0x234] ss:$8 sps:$4 sm:$0xff]   ;;  %v2868_v38 = vld [vmem:[%s3289_s25 + $0x30] ss:$8 sps:$4 sm:$0xff]   ;;  %v2870_v40 = vld [vmem:[%s3289_s25 + $0x44] ss:$8 sps:$4 sm:$0xff]  }
  0x26   : > { %1880 = vmatpush1.bf16.msra.mxu0 %v2857_v25  ;;  %1735 = vmatprep.subr.bf16.mxu1 %v2858_v29  ;;  %v2869_v39 = vld [vmem:[%s3289_s25 + $0x230] ss:$8 sps:$4 sm:$0xff]   ;;  %v2872_v41 = vld [vmem:[%s3289_s25 + $0x244] ss:$8 sps:$4 sm:$0xff]   ;;  %v2874_v42 = vld [vmem:[%s3289_s25 + $0x40] ss:$8 sps:$4 sm:$0xff]  }
  0x27   : > { %1881 = vmatprep.subr.bf16.mxu0 %v2860_v30  ;;  %v2507_v37 = vcombine.low %v390_v26, %v397_v33  ;;  %v2875_v43 = vld [vmem:[%s3289_s25 + $0x240] ss:$8 sps:$4 sm:$0xff]   ;;  %v2876_v44 = vld [vmem:[%s3289_s25 + $0x54] ss:$8 sps:$4 sm:$0xff]   ;;  %v2880_v46 = vld [vmem:[%s3289_s25 + $0x50] ss:$8 sps:$4 sm:$0xff]  }
  0x28   : > { %v2878_v45 = vld [vmem:[%s3289_s25 + $0x254] ss:$8 sps:$4 sm:$0xff]   ;;  %v2881_v47 = vld [vmem:[%s3289_s25 + $0x250] ss:$8 sps:$4 sm:$0xff]   ;;  %v2882_v48 = vld [vmem:[%s3289_s25 + $0x64] ss:$8 sps:$4 sm:$0xff]  }
  0x29   : > { %1763 = vmatprep.mubr.bf16.mxu1 %v2507_v37  ;;  %1736 = vmatpush1.bf16.msra.mxu1 %v2862_v31  ;;  %v2884_v49 = vld [vmem:[%s3289_s25 + $0x264] ss:$8 sps:$4 sm:$0xff]   ;;  %v2886_v50 = vld [vmem:[%s3289_s25 + $0x60] ss:$8 sps:$4 sm:$0xff]   ;;  %v2888_v52 = vld [vmem:[%s3289_s25 + $0x74] ss:$8 sps:$4 sm:$0xff]  }
  0x2a   : > { %1882 = vmatpush1.bf16.msra.mxu0 %v2863_v32  ;;  %1737 = vmatprep.subr.bf16.mxu1 %v2864_v35  ;;  %v2887_v51 = vld [vmem:[%s3289_s25 + $0x260] ss:$8 sps:$4 sm:$0xff]   ;;  %v2890_v53 = vld [vmem:[%s3289_s25 + $0x274] ss:$8 sps:$4 sm:$0xff]   ;;  %v2892_v54 = vld [vmem:[%s3289_s25 + $0x70] ss:$8 sps:$4 sm:$0xff]  }
  0x2b   : > { %1883 = vmatprep.subr.bf16.mxu0 %v2866_v36  ;;  %v2893_v55 = vld [vmem:[%s3289_s25 + $0x270] ss:$8 sps:$4 sm:$0xff]   ;;  %v2894_v56 = vld [vmem:[%s3289_s25 + $0x84] ss:$8 sps:$4 sm:$0xff]   ;;  %v2898_v58 = vld [vmem:[%s3289_s25 + $0x80] ss:$8 sps:$4 sm:$0xff]  }
  0x2c   : > { %v2896_v57 = vld [vmem:[%s3289_s25 + $0x284] ss:$8 sps:$4 sm:$0xff]   ;;  %v2899_v59 = vld [vmem:[%s3289_s25 + $0x280] ss:$8 sps:$4 sm:$0xff]   ;;  %v2900_v60 = vld [vmem:[%s3289_s25 + $0x94] ss:$8 sps:$4 sm:$0xff]  }
  0x2d   : > { %1738 = vmatpush1.bf16.msra.mxu1 %v2868_v38  ;;  %v2902_v61 = vld [vmem:[%s3289_s25 + $0x294] ss:$8 sps:$4 sm:$0xff]   ;;  %v2904_v62 = vld [vmem:[%s3289_s25 + $0x90] ss:$8 sps:$4 sm:$0xff]   ;;  %v2906_v0 = vld [vmem:[%s3289_s25 + $0xa4] ss:$8 sps:$4 sm:$0xff]  }
  0x2e   : > { %1884 = vmatpush1.bf16.msra.mxu0 %v2869_v39  ;;  %1739 = vmatprep.subr.bf16.mxu1 %v2870_v40  ;;  %v2905_v63 = vld [vmem:[%s3289_s25 + $0x290] ss:$8 sps:$4 sm:$0xff]   ;;  %v2908_v3 = vld [vmem:[%s3289_s25 + $0x2a4] ss:$8 sps:$4 sm:$0xff]   ;;  %v2910_v4 = vld [vmem:[%s3289_s25 + $0xa0] ss:$8 sps:$4 sm:$0xff]  }
  0x2f   : > { %1885 = vmatprep.subr.bf16.mxu0 %v2872_v41  ;;  %v2911_v5 = vld [vmem:[%s3289_s25 + $0x2a0] ss:$8 sps:$4 sm:$0xff]   ;;  %v2912_v7 = vld [vmem:[%s3289_s25 + $0xb4] ss:$8 sps:$4 sm:$0xff]   ;;  %v2916_v9 = vld [vmem:[%s3289_s25 + $0xb0] ss:$8 sps:$4 sm:$0xff]  }
  0x30   : > { %v2914_v8 = vld [vmem:[%s3289_s25 + $0x2b4] ss:$8 sps:$4 sm:$0xff]   ;;  %v2917_v10 = vld [vmem:[%s3289_s25 + $0x2b0] ss:$8 sps:$4 sm:$0xff]   ;;  %v3349_v11 = vld [vmem:[%s3258_s8 + $0x8] sm:$0xf] }
  0x31   : > { %1740 = vmatpush1.bf16.msra.mxu1 %v2874_v42  ;;  %v3352_v12 = vld [vmem:[%s3258_s8 + $0x10] sm:$0xf]  ;;  %v2918_v13 = vld [vmem:[%s3289_s25 + $0xc4] ss:$8 sps:$4 sm:$0xff]   ;;  %v2418_v16 = vld [vmem:[%s3258_s8 + $0x14] sm:$0x1] }
  0x32   : > { %1886 = vmatpush1.bf16.msra.mxu0 %v2875_v43  ;;  %1741 = vmatprep.subr.bf16.mxu1 %v2876_v44  ;;  %v2920_v14 = vld [vmem:[%s3289_s25 + $0x2c4] ss:$8 sps:$4 sm:$0xff]   ;;  %v2425_v17 = vld [vmem:[%s3258_s8 + $0x8] sm:$0xe]  ;;  %v2426_v18 = vld [vmem:[%s3258_s8 + $0x10] sm:$0xe]  ;;  %v2474_v23 = vcombine.low %v3352_v12, %v2418_v16 }
  0x33   : > { %1887 = vmatprep.subr.bf16.mxu0 %v2878_v45  ;;  %v2417_v15 = vld [vmem:[%s3258_s8 + $0xc] sm:$0x1]  ;;  %v2482_v20 = vcombine.low %v2426_v18, %v2418_v16  ;;  %v2922_v21 = vld [vmem:[%s3289_s25 + $0xc0] ss:$8 sps:$4 sm:$0xff]   ;;  %v2924_v26 = vld [vmem:[%s3289_s25 + $0xd4] ss:$8 sps:$4 sm:$0xff]  }
  0x34   : > { %v2481_v19 = vcombine.low %v2425_v17, %v2417_v15  ;;  %v2473_v22 = vcombine.low %v3349_v11, %v2417_v15  ;;  %v2923_v25 = vld [vmem:[%s3289_s25 + $0x2c0] ss:$8 sps:$4 sm:$0xff]   ;;  %v2926_v30 = vld [vmem:[%s3289_s25 + $0x2d4] ss:$8 sps:$4 sm:$0xff]   ;;  %v522_v33 = vshll.u32 %v2474_v23, 16  ;;  %v520_v41 = vshrl.u32 %v2474_v23, 16  ;;  %vm3707_vm4 = vmor (!%p2686_p10), %vm2286_vm3, %vm2285_vm2 }
  0x35   : > { %1742 = vmatpush1.bf16.msra.mxu1 %v2880_v46  ;;  %v593_v29 = vrot.slane %v2482_v20, 1  ;;  %v2928_v35 = vld [vmem:[%s3289_s25 + $0xd0] ss:$8 sps:$4 sm:$0xff]   ;;  %v2930_v37 = vld [vmem:[%s3289_s25 + $0xe4] ss:$8 sps:$4 sm:$0xff]  }
  0x36   : > { %1888 = vmatpush1.bf16.msra.mxu0 %v2881_v47  ;;  %1743 = vmatprep.subr.bf16.mxu1 %v2882_v48  ;;  %v592_v27 = vrot.slane %v2481_v19, 1  ;;  %v515_v32 = vshll.u32 %v2473_v22, 16  ;;  %v2929_v36 = vld [vmem:[%s3289_s25 + $0x2d0] ss:$8 sps:$4 sm:$0xff]   ;;  %v2932_v38 = vld [vmem:[%s3289_s25 + $0x2e4] ss:$8 sps:$4 sm:$0xff]  }
  0x37   : > { %1889 = vmatprep.subr.bf16.mxu0 %v2884_v49  ;;  %v513_v39 = vshrl.u32 %v2473_v22, 16  ;;  %v524_v42 = vrot.slane %v522_v33, 1  ;;  %v2934_v43 = vld [vmem:[%s3289_s25 + $0xe0] ss:$8 sps:$4 sm:$0xff]   ;;  %v2936_v45 = vld [vmem:[%s3289_s25 + $0xf4] ss:$8 sps:$4 sm:$0xff]  }
  0x38   : > { %v2511_v31 = vcombine.low %v592_v27, %v593_v29  ;;  %v517_v40 = vrot.slane %v515_v32, 1  ;;  %v2935_v44 = vld [vmem:[%s3289_s25 + $0x2e0] ss:$8 sps:$4 sm:$0xff]   ;;  %v2938_v46 = vld [vmem:[%s3289_s25 + $0x2f4] ss:$8 sps:$4 sm:$0xff]  }
  0x39   : > { %1744 = vmatpush1.bf16.msra.mxu1 %v2886_v50  ;;  %v525_v48 = vor.u32 %v524_v42, %v520_v41  ;;  %v2940_v49 = vld [vmem:[%s3289_s25 + $0xf0] ss:$8 sps:$4 sm:$0xff]   ;;  %v2971_v1 = vld [vmem:[%s3289_s25 + $0x134] ss:$8 sps:$4 sm:$0xff]   ;;  %v2428_v17 = vld [vmem:[%s3258_s8 + $0x20] sm:$0xe] }
  0x3a   : > { %1890 = vmatpush1.bf16.msra.mxu0 %v2887_v51  ;;  %1745 = vmatprep.subr.bf16.mxu1 %v2888_v52  ;;  %v518_v47 = vor.u32 %v517_v40, %v513_v39  ;;  %v2941_v50 = vld [vmem:[%s3289_s25 + $0x2f0] ss:$8 sps:$4 sm:$0xff]   ;;  %v2948_v51 = vld [vmem:[%s3289_s25 + $0x104] ss:$8 sps:$4 sm:$0xff]   ;;  %v2974_v2 = vld [vmem:[%s3289_s25 + $0x334] ss:$8 sps:$4 sm:$0xff]  }
  0x3b   : > { %1891 = vmatprep.subr.bf16.mxu0 %v2890_v53  ;;  %1909 = vmatprep.mubr.bf16.mxu0 %v2511_v31  ;;  %v2955_v52 = vld [vmem:[%s3289_s25 + $0x304] ss:$8 sps:$4 sm:$0xff]   ;;  %v2972_v15 = vld [vmem:[%s3289_s25 + $0x330] ss:$8 sps:$4 sm:$0xff]   ;;  %v2975_v40 = vld [vmem:[%s3289_s25 + $0x140] ss:$8 sps:$4 sm:$0xff]  }
  0x3c   : > { %v2510_v53 = vcombine.low %v518_v47, %v525_v48  ;;  %v2427_v16 = vld [vmem:[%s3258_s8 + $0x18] sm:$0xe]  ;;  %v2986_v48 = vld [vmem:[%s3289_s25 + $0x354] ss:$8 sps:$4 sm:$0xff]  }
  0x3d   : > { %1746 = vmatpush1.bf16.msra.mxu1 %v2892_v54  ;;  %v2946_v54 = vld [vmem:[%s3289_s25 + $0x100] ss:$8 sps:$4 sm:$0xff]  }
  0x3e   : > { %1892 = vmatpush1.bf16.msra.mxu0 %v2893_v55  ;;  %1747 = vmatprep.subr.bf16.mxu1 %v2894_v56  ;;  %v2953_v55 = vld [vmem:[%s3289_s25 + $0x300] ss:$8 sps:$4 sm:$0xff]   ;;  %v2959_v56 = vld [vmem:[%s3289_s25 + $0x114] ss:$8 sps:$4 sm:$0xff]  }
  0x3f   : > { %1893 = vmatprep.subr.bf16.mxu0 %v2896_v57  ;;  %v2962_v57 = vld [vmem:[%s3289_s25 + $0x314] ss:$8 sps:$4 sm:$0xff]  }
  0x41   : > { %1748 = vmatpush1.bf16.msra.mxu1 %v2898_v58  ;;  %v2957_v58 = vld [vmem:[%s3289_s25 + $0x110] ss:$8 sps:$4 sm:$0xff]  }
  0x42   : > { %1894 = vmatpush1.bf16.msra.mxu0 %v2899_v59  ;;  %1749 = vmatprep.subr.bf16.mxu1 %v2900_v60  ;;  %v2960_v59 = vld [vmem:[%s3289_s25 + $0x310] ss:$8 sps:$4 sm:$0xff]   ;;  %v2965_v60 = vld [vmem:[%s3289_s25 + $0x124] ss:$8 sps:$4 sm:$0xff]  }
  0x43   : > { %1895 = vmatprep.subr.bf16.mxu0 %v2902_v61  ;;  %v2968_v61 = vld [vmem:[%s3289_s25 + $0x324] ss:$8 sps:$4 sm:$0xff]  }
  0x45   : > { %1750 = vmatpush1.bf16.msra.mxu1 %v2904_v62  ;;  %v2963_v62 = vld [vmem:[%s3289_s25 + $0x120] ss:$8 sps:$4 sm:$0xff]  }
  0x46   : > { %1896 = vmatpush1.bf16.msra.mxu0 %v2905_v63  ;;  %1751 = vmatprep.subr.bf16.mxu1 %v2906_v0  ;;  %v2966_v63 = vld [vmem:[%s3289_s25 + $0x320] ss:$8 sps:$4 sm:$0xff]   ;;  %v3397_v0 = vld [vmem:[%s3258_s8 + $0x18] sm:$0xf] }
  0x47   : > { %1897 = vmatprep.subr.bf16.mxu0 %v2908_v3  ;;  %v3400_v3 = vld [vmem:[%s3258_s8 + $0x14] sm:$0x1] }
  0x49   : > { %1752 = vmatpush1.bf16.msra.mxu1 %v2910_v4  ;;  %v3403_v4 = vld [vmem:[%s3258_s8 + $0x1c] sm:$0x1] }
  0x4a   : > { %1898 = vmatpush1.bf16.msra.mxu0 %v2911_v5  ;;  %1753 = vmatprep.subr.bf16.mxu1 %v2912_v7  ;;  %v3406_v5 = vld [vmem:[%s3258_s8 + $0x18] sm:$0xf] }
  0x4b   : > { %1899 = vmatprep.subr.bf16.mxu0 %v2914_v8  ;;  %v2460_v8 = vcombine.low %v3397_v0, %v3403_v4 }
  0x4d   : > { %1754 = vmatpush1.bf16.msra.mxu1 %v2916_v9  ;;  %v3413_v9 = vld [vmem:[%s3258_s8 + $0x20] sm:$0xf]  ;;  %v406_v22 = vshrl.u32 %v2460_v8, 16  ;;  %v408_v23 = vshll.u32 %v2460_v8, 16 }
  0x4e   : > { %1900 = vmatpush1.bf16.msra.mxu0 %v2917_v10  ;;  %1755 = vmatprep.subr.bf16.mxu1 %v2918_v13  ;;  %v2419_v10 = vld [vmem:[%s3258_s8 + $0x1c] sm:$0x1]  ;;  %v2420_v13 = vld [vmem:[%s3258_s8 + $0x24] sm:$0x1] }
  0x4f   : > { %1901 = vmatprep.subr.bf16.mxu0 %v2920_v14  ;;  %v2969_v14 = vld [vmem:[%s3289_s25 + $0x130] ss:$8 sps:$4 sm:$0xff]   ;;  %v2475_v18 = vcombine.low %v3406_v5, %v2419_v10  ;;  %v2476_v19 = vcombine.low %v3413_v9, %v2420_v13  ;;  %v2483_v27 = vcombine.low %v2427_v16, %v2419_v10  ;;  %v2484_v29 = vcombine.low %v2428_v17, %v2420_v13  ;;  %v2987_v17 = vld [vmem:[%s3289_s25 + $0x160] ss:$8 sps:$4 sm:$0xff]  }
  0x50   : > { %v410_v33 = vrot.slane %v408_v23, 1 }
  0x51   : > { %1756 = vmatpush1.bf16.msra.mxu1 %v2922_v21  ;;  %v529_v31 = vshll.u32 %v2475_v18, 16 }
  0x52   : > { %1902 = vmatpush1.bf16.msra.mxu0 %v2923_v25  ;;  %1757 = vmatprep.subr.bf16.mxu1 %v2924_v26  ;;  %v2977_v25 = vld [vmem:[%s3289_s25 + $0x144] ss:$8 sps:$4 sm:$0xff]   ;;  %v411_v42 = vor.u32 %v410_v33, %v406_v22  ;;  %v2998_v33 = vld [vmem:[%s3289_s25 + $0x374] ss:$8 sps:$4 sm:$0xff]  }
  0x53   : > { %1903 = vmatprep.subr.bf16.mxu0 %v2926_v30  ;;  %v2980_v26 = vld [vmem:[%s3289_s25 + $0x344] ss:$8 sps:$4 sm:$0xff]   ;;  %v527_v30 = vshrl.u32 %v2475_v18, 16  ;;  %v531_v39 = vrot.slane %v529_v31, 1 }
  0x55   : > { %1758 = vmatpush1.bf16.msra.mxu1 %v2928_v35  ;;  %v534_v35 = vshrl.u32 %v2476_v19, 16  ;;  %v532_v47 = vor.u32 %v531_v39, %v527_v30  ;;  %v2996_v39 = vld [vmem:[%s3289_s25 + $0x370] ss:$8 sps:$4 sm:$0xff]  }
  0x56   : > { %1904 = vmatpush1.bf16.msra.mxu0 %v2929_v36  ;;  %1759 = vmatprep.subr.bf16.mxu1 %v2930_v37  ;;  %v536_v36 = vshll.u32 %v2476_v19, 16  ;;  %v594_v37 = vrot.slane %v2483_v27, 1  ;;  %v2990_v27 = vld [vmem:[%s3289_s25 + $0x360] ss:$8 sps:$4 sm:$0xff]  }
  0x57   : > { %1905 = vmatprep.subr.bf16.mxu0 %v2932_v38  ;;  %v595_v38 = vrot.slane %v2484_v29, 1 }
  0x59   : > { %1760 = vmatpush1.bf16.msra.mxu1 %v2934_v43  ;;  %v538_v43 = vrot.slane %v536_v36, 1 }
  0x5a   : > { %1906 = vmatpush1.bf16.msra.mxu0 %v2935_v44  ;;  %1761 = vmatprep.subr.bf16.mxu1 %v2936_v45  ;;  %v2978_v44 = vld [vmem:[%s3289_s25 + $0x340] ss:$8 sps:$4 sm:$0xff]   ;;  %v2983_v45 = vld [vmem:[%s3289_s25 + $0x154] ss:$8 sps:$4 sm:$0xff]  }
  0x5b   : > { %1907 = vmatprep.subr.bf16.mxu0 %v2938_v46  ;;  %v2520_v46 = vcombine.low %v594_v37, %v595_v38  ;;  %v2993_v38 = vld [vmem:[%s3289_s25 + $0x170] ss:$8 sps:$4 sm:$0xff]  }
  0x5d   : > { %1762 = vmatpush1.bf16.msra.mxu1 %v2940_v49 }
  0x5e   : > { %1908 = vmatpush1.bf16.msra.mxu0 %v2941_v50  ;;  %1804 = vmatprep.subr.bf16.mxu1 %v2948_v51  ;;  %v539_v50 = vor.u32 %v538_v43, %v534_v35  ;;  %v3430_v51 = vld [vmem:[%s3258_s8 + $0x20] sm:$0xf]  ;;  %v3004_v43 = vld [vmem:[%s3289_s25 + $0x384] ss:$8 sps:$4 sm:$0xff]  }
  0x5f   : > { %1950 = vmatprep.subr.bf16.mxu0 %v2955_v52  ;;  %v3433_v52 = vld [vmem:[%s3258_s8 + $0x28] sm:$0xf] }
  0x60   : > { %1764 = vmatmul.mubr.bf16.vlgmr.msra.gmra.mrb[0].mxu1 %v2506_v6  ;;  %v3394_v6 = vld [vmem:[%s3258_s8 + $0x10] sm:$0xf] }
  0x61   : > { %1910 = vmatmul.mubr.bf16.vlgmr.msra.gmra.mrb[0].mxu0 %v2510_v53  ;;  %1805 = vmatpush1.bf16.msra.mxu1 %v2946_v54  ;;  %v2459_v7 = vcombine.low %v3394_v6, %v3400_v3  ;;  %v2981_v53 = vld [vmem:[%s3289_s25 + $0x150] ss:$8 sps:$4 sm:$0xff]  }
  0x62   : > { %1951 = vmatpush1.bf16.msra.mxu0 %v2953_v55  ;;  %1806 = vmatprep.subr.bf16.mxu1 %v2959_v56  ;;  %v2984_v54 = vld [vmem:[%s3289_s25 + $0x350] ss:$8 sps:$4 sm:$0xff]   ;;  %v2515_v55 = vcombine.low %v3394_v6, %v3397_v0  ;;  %v3440_v56 = vld [vmem:[%s3258_s8 + $0x24] sm:$0x1]  ;;  %v2422_v6 = vld [vmem:[%s3258_s8 + $0x34] sm:$0x1] }
  0x63   : > { %1952 = vmatprep.subr.bf16.mxu0 %v2962_v57  ;;  %v399_v20 = vshrl.u32 %v2459_v7, 16  ;;  %v401_v21 = vshll.u32 %v2459_v7, 16  ;;  %1919 = vmatprep.mubr.bf16.mxu0 %v2520_v46  ;;  %v3443_v57 = vld [vmem:[%s3258_s8 + $0x2c] sm:$0x1]  ;;  %v2429_v0 = vld [vmem:[%s3258_s8 + $0x28] sm:$0xe] }
  0x64   : > { %v2430_v7 = vld [vmem:[%s3258_s8 + $0x30] sm:$0xe] }
  0x65   : > { %1807 = vmatpush1.bf16.msra.mxu1 %v2957_v58  ;;  %v403_v32 = vrot.slane %v401_v21, 1  ;;  %v3446_v58 = vld [vmem:[%s3258_s8 + $0x28] sm:$0xf]  ;;  %v2486_v19 = vcombine.low %v2430_v7, %v2422_v6 }
  0x66   : > { %1953 = vmatpush1.bf16.msra.mxu0 %v2960_v59  ;;  %1808 = vmatprep.subr.bf16.mxu1 %v2965_v60  ;;  %v2989_v59 = vld [vmem:[%s3289_s25 + $0x164] ss:$8 sps:$4 sm:$0xff]  }
  0x67   : > { %1954 = vmatprep.subr.bf16.mxu0 %v2968_v61  ;;  %v404_v41 = vor.u32 %v403_v32, %v399_v20  ;;  %v2992_v60 = vld [vmem:[%s3289_s25 + $0x364] ss:$8 sps:$4 sm:$0xff]   ;;  %v2519_v61 = vcombine.low %v532_v47, %v539_v50  ;;  %v597_v30 = vrot.slane %v2486_v19, 1  ;;  %v2995_v32 = vld [vmem:[%s3289_s25 + $0x174] ss:$8 sps:$4 sm:$0xff]  }
  0x68   : > { %v3474_v47 = vld [vmem:[%s3258_s8 + $0x30] sm:$0xf]  ;;  %v3483_v50 = vld [vmem:[%s3258_s8 + $0x3c] sm:$0x1] }
  0x69   : > { %1809 = vmatpush1.bf16.msra.mxu1 %v2963_v62  ;;  %v2516_v49 = vcombine.low %v404_v41, %v411_v42  ;;  %v2461_v62 = vcombine.low %v3430_v51, %v3440_v56  ;;  %1920 = vmatmul.mubr.bf16.gmra.mrb[4].mxu0 %v2519_v61  ;;  %v3001_v42 = vld [vmem:[%s3289_s25 + $0x184] ss:$8 sps:$4 sm:$0xff]   ;;  %v2999_v61 = vld [vmem:[%s3289_s25 + $0x180] ss:$8 sps:$4 sm:$0xff]  }
  0x6a   : > { %1955 = vmatpush1.bf16.msra.mxu0 %v2966_v63  ;;  %1810 = vmatprep.subr.bf16.mxu1 %v2971_v1  ;;  %v2462_v63 = vcombine.low %v3433_v52, %v3443_v57  ;;  %v3455_v1 = vld [vmem:[%s3258_s8 + $0x30] sm:$0xf] }
  0x6b   : > { %1956 = vmatprep.subr.bf16.mxu0 %v2974_v2  ;;  %1773 = vmatprep.mubr.bf16.mxu1 %v2516_v49  ;;  %v2421_v2 = vld [vmem:[%s3258_s8 + $0x2c] sm:$0x1]  ;;  %v2478_v10 = vcombine.low %v3455_v1, %v2422_v6  ;;  %v413_v13 = vshrl.u32 %v2461_v62, 16  ;;  %v3480_v49 = vld [vmem:[%s3258_s8 + $0x34] sm:$0x1] }
  0x6c   : > { %v2477_v8 = vcombine.low %v3446_v58, %v2421_v2  ;;  %v422_v16 = vshll.u32 %v2462_v63, 16  ;;  %1774 = vmatmul.mubr.bf16.gmra.mrb[4].mxu1 %v2515_v55  ;;  %v2485_v18 = vcombine.low %v2429_v0, %v2421_v2  ;;  %v3493_v55 = vld [vmem:[%s3258_s8 + $0x40] sm:$0xf] }
  0x6d   : > { %1811 = vmatpush1.bf16.msra.mxu1 %v2969_v14  ;;  %v415_v14 = vshll.u32 %v2461_v62, 16  ;;  %v3002_v62 = vld [vmem:[%s3289_s25 + $0x380] ss:$8 sps:$4 sm:$0xff]  }
  0x6e   : > { %1957 = vmatpush1.bf16.msra.mxu0 %v2972_v15  ;;  %1812 = vmatprep.subr.bf16.mxu1 %v2977_v25  ;;  %v420_v15 = vshrl.u32 %v2462_v63, 16  ;;  %v541_v20 = vshrl.u32 %v2477_v8, 16  ;;  %v543_v21 = vshll.u32 %v2477_v8, 16  ;;  %v424_v23 = vrot.slane %v422_v16, 1  ;;  %v2431_v63 = vld [vmem:[%s3258_s8 + $0x38] sm:$0xe] }
  0x6f   : > { %1958 = vmatprep.subr.bf16.mxu0 %v2980_v26  ;;  %v417_v22 = vrot.slane %v415_v14, 1  ;;  %v548_v25 = vshrl.u32 %v2478_v10, 16  ;;  %v550_v26 = vshll.u32 %v2478_v10, 16  ;;  %v596_v29 = vrot.slane %v2485_v18, 1  ;;  %v2432_v2 = vld [vmem:[%s3258_s8 + $0x40] sm:$0xe] }
  0x70   : > { %v545_v31 = vrot.slane %v543_v21, 1  ;;  %v425_v36 = vor.u32 %v424_v23, %v420_v15  ;;  %v3007_v14 = vld [vmem:[%s3289_s25 + $0x194] ss:$8 sps:$4 sm:$0xff]  }
  0x71   : > { %1813 = vmatpush1.bf16.msra.mxu1 %v2975_v40  ;;  %v418_v35 = vor.u32 %v417_v22, %v413_v13  ;;  %v552_v37 = vrot.slane %v550_v26, 1  ;;  %v2529_v40 = vcombine.low %v596_v29, %v597_v30  ;;  %v3010_v15 = vld [vmem:[%s3289_s25 + $0x394] ss:$8 sps:$4 sm:$0xff]   ;;  %v3005_v29 = vld [vmem:[%s3289_s25 + $0x190] ss:$8 sps:$4 sm:$0xff]  }
  0x72   : > { %1959 = vmatpush1.bf16.msra.mxu0 %v2978_v44  ;;  %1814 = vmatprep.subr.bf16.mxu1 %v2983_v45  ;;  %v546_v41 = vor.u32 %v545_v31, %v541_v20  ;;  %v2524_v45 = vcombine.low %v3430_v51, %v3433_v52  ;;  %v2463_v52 = vcombine.low %v3474_v47, %v3480_v49 }
  0x73   : > { %1960 = vmatprep.subr.bf16.mxu0 %v2986_v48  ;;  %v2525_v44 = vcombine.low %v418_v35, %v425_v36  ;;  %v553_v46 = vor.u32 %v552_v37, %v548_v25  ;;  %v3477_v48 = vld [vmem:[%s3258_s8 + $0x38] sm:$0xf]  ;;  %1929 = vmatprep.mubr.bf16.mxu0 %v2529_v40  ;;  %v3020_v35 = vld [vmem:[%s3289_s25 + $0x1a4] ss:$8 sps:$4 sm:$0xff]  }
  0x74   : > { %v427_v7 = vshrl.u32 %v2463_v52, 16  ;;  %v429_v8 = vshll.u32 %v2463_v52, 16 }
  0x75   : > { %1815 = vmatpush1.bf16.msra.mxu1 %v2981_v53  ;;  %v3486_v53 = vld [vmem:[%s3258_s8 + $0x38] sm:$0xf]  ;;  %v2528_v51 = vcombine.low %v546_v41, %v553_v46  ;;  %1783 = vmatprep.mubr.bf16.mxu1 %v2525_v44  ;;  %v3510_v41 = vld [vmem:[%s3258_s8 + $0x10] sm:$0xf]  ;;  %v2533_v44 = vcombine.low %v3474_v47, %v3477_v48  ;;  %v3522_v46 = vld [vmem:[%s3258_s8 + $0x1c] sm:$0x1] }
  0x76   : > { %1961 = vmatpush1.bf16.msra.mxu0 %v2984_v54  ;;  %1816 = vmatprep.subr.bf16.mxu1 %v2989_v59  ;;  %v2464_v54 = vcombine.low %v3477_v48, %v3483_v50  ;;  %v2423_v59 = vld [vmem:[%s3258_s8 + $0x3c] sm:$0x1]  ;;  %v431_v20 = vrot.slane %v429_v8, 1  ;;  %v3042_v8 = vld [vmem:[%s3289_s25 + $0x3c4] ss:$8 sps:$4 sm:$0xff]  }
  0x77   : > { %1962 = vmatprep.subr.bf16.mxu0 %v2992_v60  ;;  %v2424_v60 = vld [vmem:[%s3258_s8 + $0x44] sm:$0x1]  ;;  %v2479_v6 = vcombine.low %v3486_v53, %v2423_v59  ;;  %1784 = vmatmul.mubr.bf16.gmra.mrb[8].mxu1 %v2524_v45  ;;  %v2487_v16 = vcombine.low %v2431_v63, %v2423_v59  ;;  %v3519_v45 = vld [vmem:[%s3258_s8 + $0x14] sm:$0x1] }
  0x78   : > { %v2480_v0 = vcombine.low %v3493_v55, %v2424_v60  ;;  %1930 = vmatmul.mubr.bf16.gmra.mrb[8].mxu0 %v2528_v51  ;;  %v434_v10 = vshrl.u32 %v2464_v54, 16  ;;  %v436_v13 = vshll.u32 %v2464_v54, 16  ;;  %v432_v30 = vor.u32 %v431_v20, %v427_v7  ;;  %v3021_v51 = vld [vmem:[%s3289_s25 + $0x3a0] ss:$8 sps:$4 sm:$0xff]   ;;  %v3026_v47 = vld [vmem:[%s3289_s25 + $0x1b4] ss:$8 sps:$4 sm:$0xff]  }
  0x79   : > { %1817 = vmatpush1.bf16.msra.mxu1 %v2987_v17  ;;  %v2488_v17 = vcombine.low %v2432_v2, %v2424_v60  ;;  %v555_v18 = vshrl.u32 %v2479_v6, 16  ;;  %v557_v19 = vshll.u32 %v2479_v6, 16  ;;  %v598_v25 = vrot.slane %v2487_v16, 1  ;;  %v3029_v48 = vld [vmem:[%s3289_s25 + $0x3b4] ss:$8 sps:$4 sm:$0xff]  }
  0x7a   : > { %1963 = vmatpush1.bf16.msra.mxu0 %v2990_v27  ;;  %1818 = vmatprep.subr.bf16.mxu1 %v2995_v32  ;;  %v438_v21 = vrot.slane %v436_v13, 1  ;;  %v562_v22 = vshrl.u32 %v2480_v0, 16  ;;  %v564_v23 = vshll.u32 %v2480_v0, 16  ;;  %v2509_v54 = vcombine.low %v3349_v11, %v3352_v12  ;;  %v3024_v12 = vld [vmem:[%s3289_s25 + $0x1b0] ss:$8 sps:$4 sm:$0xff]  }
  0x7b   : > { %1964 = vmatprep.subr.bf16.mxu0 %v2998_v33  ;;  %v599_v26 = vrot.slane %v2488_v17, 1  ;;  %v559_v27 = vrot.slane %v557_v19, 1  ;;  %v3008_v33 = vld [vmem:[%s3289_s25 + $0x390] ss:$8 sps:$4 sm:$0xff]   ;;  %v2489_v59 = vcombine.low %v3510_v41, %v3519_v45  ;;  %v3039_v7 = vld [vmem:[%s3289_s25 + $0x1c4] ss:$8 sps:$4 sm:$0xff]  }
  0x7c   : > { %v439_v31 = vor.u32 %v438_v21, %v434_v10  ;;  %v566_v32 = vrot.slane %v564_v23, 1  ;;  %v3027_v2 = vld [vmem:[%s3289_s25 + $0x3b0] ss:$8 sps:$4 sm:$0xff]   ;;  %v3538_v10 = vld [vmem:[%s3258_s8 + $0x20] sm:$0xf] }
  0x7d   : > { %1819 = vmatpush1.bf16.msra.mxu1 %v2993_v38  ;;  %v2538_v36 = vcombine.low %v598_v25, %v599_v26  ;;  %v560_v37 = vor.u32 %v559_v27, %v555_v18  ;;  %v3023_v38 = vld [vmem:[%s3289_s25 + $0x3a4] ss:$8 sps:$4 sm:$0xff]   ;;  %v3037_v19 = vld [vmem:[%s3289_s25 + $0x1c0] ss:$8 sps:$4 sm:$0xff]   ;;  %v3045_v21 = vld [vmem:[%s3289_s25 + $0x1d4] ss:$8 sps:$4 sm:$0xff]  }
  0x7e   : > { %1965 = vmatpush1.bf16.msra.mxu0 %v2996_v39  ;;  %1820 = vmatprep.subr.bf16.mxu1 %v3001_v42  ;;  %v2534_v39 = vcombine.low %v432_v30, %v439_v31  ;;  %v567_v40 = vor.u32 %v566_v32, %v562_v22  ;;  %v3513_v42 = vld [vmem:[%s3258_s8 + $0x18] sm:$0xf]  ;;  %v3544_v16 = vld [vmem:[%s3258_s8 + $0x24] sm:$0x1]  ;;  %v3547_v17 = vld [vmem:[%s3258_s8 + $0x2c] sm:$0x1] }
  0x7f   : > { %1966 = vmatprep.subr.bf16.mxu0 %v3004_v43  ;;  %v3018_v43 = vld [vmem:[%s3289_s25 + $0x1a0] ss:$8 sps:$4 sm:$0xff]   ;;  %1939 = vmatprep.mubr.bf16.mxu0 %v2538_v36  ;;  %v2490_v60 = vcombine.low %v3513_v42, %v3522_v46  ;;  %v3048_v22 = vld [vmem:[%s3289_s25 + $0x3d4] ss:$8 sps:$4 sm:$0xff]   ;;  %v2491_v23 = vcombine.low %v3538_v10, %v3544_v16  ;;  %v3043_v26 = vld [vmem:[%s3289_s25 + $0x1d0] ss:$8 sps:$4 sm:$0xff]  }
  0x80   : > { %1793 = vmatprep.mubr.bf16.mxu1 %v2534_v39  ;;  %v2537_v52 = vcombine.low %v560_v37, %v567_v40  ;;  %v3040_v20 = vld [vmem:[%s3289_s25 + $0x3c0] ss:$8 sps:$4 sm:$0xff]   ;;  %v3046_v27 = vld [vmem:[%s3289_s25 + $0x3d0] ss:$8 sps:$4 sm:$0xff]   ;;  %v3061_v30 = vld [vmem:[%s3289_s25 + $0x3e4] ss:$8 sps:$4 sm:$0xff]  }
  0x81   : > { %1821 = vmatpush1.bf16.msra.mxu1 %v2999_v61  ;;  %v641_v61 = vshrl.u32 %v2489_v59, 16  ;;  %v648_v63 = vshrl.u32 %v2490_v60, 16  ;;  %v650_v11 = vshll.u32 %v2490_v60, 16  ;;  %v3562_v31 = vld [vmem:[%s3258_s8 + $0x30] sm:$0xf]  ;;  %v657_v32 = vshll.u32 %v2491_v23, 16 }
  0x82   : > { %1967 = vmatpush1.bf16.msra.mxu0 %v3002_v62  ;;  %1822 = vmatprep.subr.bf16.mxu1 %v3007_v14  ;;  %v643_v62 = vshll.u32 %v2489_v59, 16  ;;  %v3568_v36 = vld [vmem:[%s3258_s8 + $0x34] sm:$0x1]  ;;  %v3571_v37 = vld [vmem:[%s3258_s8 + $0x3c] sm:$0x1] }
  0x83   : > { %1968 = vmatprep.subr.bf16.mxu0 %v3010_v15  ;;  %1794 = vmatmul.mubr.bf16.gmra.mrb[12].mxu1 %v2533_v44  ;;  %v652_v0 = vrot.slane %v650_v11, 1  ;;  %v3541_v15 = vld [vmem:[%s3258_s8 + $0x28] sm:$0xf]  ;;  %v3064_v40 = vld [vmem:[%s3289_s25 + $0x1f4] ss:$8 sps:$4 sm:$0xff]   ;;  %v2493_v44 = vcombine.low %v3562_v31, %v3568_v36 }
  0x84   : > { %1940 = vmatmul.mubr.bf16.gmra.mrb[12].mxu0 %v2537_v52  ;;  %1836 = vmatprep.mubr.bf16.mxu1 %v2509_v54  ;;  %v645_v6 = vrot.slane %v643_v62, 1  ;;  %v2492_v25 = vcombine.low %v3541_v15, %v3547_v17  ;;  %v3059_v39 = vld [vmem:[%s3289_s25 + $0x3e0] ss:$8 sps:$4 sm:$0xff]   ;;  %v655_v52 = vshrl.u32 %v2491_v23, 16  ;;  %v659_v54 = vrot.slane %v657_v32, 1 }
  0x85   : > { %1823 = vmatpush1.bf16.msra.mxu1 %v3005_v29  ;;  %v653_v14 = vor.u32 %v652_v0, %v648_v63  ;;  %v3058_v29 = vld [vmem:[%s3289_s25 + $0x1e4] ss:$8 sps:$4 sm:$0xff]   ;;  %v289_v62 = vld [vmem:[%s3258_s8 + $0x18] sm:$0xe]  ;;  %v671_v11 = vshll.u32 %v2493_v44, 16 }
  0x86   : > { %1969 = vmatpush1.bf16.msra.mxu0 %v3008_v33  ;;  %1824 = vmatprep.subr.bf16.mxu1 %v3020_v35  ;;  %v646_v13 = vor.u32 %v645_v6, %v641_v61  ;;  %v664_v33 = vshll.u32 %v2492_v25, 16  ;;  %v3565_v35 = vld [vmem:[%s3258_s8 + $0x38] sm:$0xf]  ;;  %v662_v59 = vshrl.u32 %v2492_v25, 16  ;;  %v288_v61 = vld [vmem:[%s3258_s8 + $0x10] sm:$0xe] }
  0x87   : > { %1970 = vmatprep.subr.bf16.mxu0 %v3023_v38  ;;  %v3056_v38 = vld [vmem:[%s3289_s25 + $0x1e0] ss:$8 sps:$4 sm:$0xff]   ;;  %v3076_v63 = vld [vmem:[%s3289_s25 + $0x404] ss:$8 sps:$4 sm:$0xff]  }
  0x88   : > { %v2513_v18 = vcombine.low %v646_v13, %v653_v14  ;;  %v666_v60 = vrot.slane %v664_v33, 1  ;;  %v3587_v0 = vld [vmem:[%s3258_s8 + $0x40] sm:$0xf]  ;;  %v2468_v13 = vcombine.low %v289_v62, %v3403_v4  ;;  %v3594_v14 = vld [vmem:[%s3258_s8 + $0x48] sm:$0xf]  ;;  %v2518_v4 = vcombine.low %v3406_v5, %v3413_v9 }
  0x89   : > { %1825 = vmatpush1.bf16.msra.mxu1 %v3018_v43  ;;  %v3067_v43 = vld [vmem:[%s3289_s25 + $0x3f4] ss:$8 sps:$4 sm:$0xff]   ;;  %v290_v32 = vld [vmem:[%s3258_s8 + $0x20] sm:$0xe]  ;;  %v291_v33 = vld [vmem:[%s3258_s8 + $0x28] sm:$0xe] }
  0x8a   : > { %1971 = vmatpush1.bf16.msra.mxu0 %v3021_v51  ;;  %1826 = vmatprep.subr.bf16.mxu1 %v3026_v47  ;;  %v2494_v51 = vcombine.low %v3565_v35, %v3571_v37  ;;  %v3062_v47 = vld [vmem:[%s3289_s25 + $0x1f0] ss:$8 sps:$4 sm:$0xff]   ;;  %v667_v6 = vor.u32 %v666_v60, %v662_v59  ;;  %v3088_v5 = vld [vmem:[%s3289_s25 + $0x424] ss:$8 sps:$4 sm:$0xff]  }
  0x8b   : > { %1972 = vmatprep.subr.bf16.mxu0 %v3029_v48  ;;  %1982 = vmatprep.mubr.bf16.mxu0 %v2513_v18  ;;  %v3065_v48 = vld [vmem:[%s3289_s25 + $0x3f0] ss:$8 sps:$4 sm:$0xff]   ;;  %v3597_v18 = vld [vmem:[%s3258_s8 + $0x44] sm:$0x1] }
  0x8c   : > { %v2495_v25 = vcombine.low %v3587_v0, %v3597_v18 }
  0x8d   : > { %1827 = vmatpush1.bf16.msra.mxu1 %v3024_v12  ;;  %v678_v12 = vshll.u32 %v2494_v51, 16 }
  0x8e   : > { %1973 = vmatpush1.bf16.msra.mxu0 %v3027_v2  ;;  %1828 = vmatprep.subr.bf16.mxu1 %v3039_v7  ;;  %v660_v2 = vor.u32 %v659_v54, %v655_v52  ;;  %v2512_v7 = vcombine.low %v3510_v41, %v3513_v42  ;;  %v673_v41 = vrot.slane %v671_v11, 1  ;;  %v2527_v52 = vcombine.low %v3446_v58, %v3455_v1  ;;  %v3102_v58 = vld [vmem:[%s3289_s25 + $0x444] ss:$8 sps:$4 sm:$0xff]  }
  0x8f   : > { %1974 = vmatprep.subr.bf16.mxu0 %v3042_v8  ;;  %v2467_v8 = vcombine.low %v288_v61, %v3400_v3  ;;  %v676_v3 = vshrl.u32 %v2494_v51, 16  ;;  %v680_v42 = vrot.slane %v678_v12, 1  ;;  %v3091_v51 = vld [vmem:[%s3289_s25 + $0x434] ss:$8 sps:$4 sm:$0xff]   ;;  %v683_v59 = vshrl.u32 %v2495_v25, 16 }
  0x90   : > { %v2522_v23 = vcombine.low %v660_v2, %v667_v6  ;;  %v293_v61 = vld [vmem:[%s3258_s8 + $0x38] sm:$0xe]  ;;  %v2530_v11 = vcombine.low %v3562_v31, %v3565_v35  ;;  %v3100_v6 = vld [vmem:[%s3289_s25 + $0x440] ss:$8 sps:$4 sm:$0xff]  }
  0x91   : > { %1829 = vmatpush1.bf16.msra.mxu1 %v3037_v19  ;;  %v3600_v19 = vld [vmem:[%s3258_s8 + $0x4c] sm:$0x1]  ;;  %v2472_v2 = vcombine.low %v293_v61, %v3483_v50  ;;  %v2454_v31 = vld [vmem:[%s3258_s8 + $0x38] sm:$0xe] }
  0x92   : > { %1975 = vmatpush1.bf16.msra.mxu0 %v3040_v20  ;;  %1830 = vmatprep.subr.bf16.mxu1 %v3045_v21  ;;  %v3074_v20 = vld [vmem:[%s3289_s25 + $0x400] ss:$8 sps:$4 sm:$0xff]   ;;  %v3079_v21 = vld [vmem:[%s3289_s25 + $0x414] ss:$8 sps:$4 sm:$0xff]   ;;  %v3103_v35 = vld [vmem:[%s3289_s25 + $0x450] ss:$8 sps:$4 sm:$0xff]  }
  0x93   : > { %1976 = vmatprep.subr.bf16.mxu0 %v3048_v22  ;;  %v669_v22 = vshrl.u32 %v2493_v44, 16  ;;  %v3086_v44 = vld [vmem:[%s3289_s25 + $0x420] ss:$8 sps:$4 sm:$0xff]   ;;  %v471_v50 = vrot.slane %v2472_v2, 1 }
  0x95   : > { %1831 = vmatpush1.bf16.msra.mxu1 %v3043_v26  ;;  %v2496_v26 = vcombine.low %v3594_v14, %v3600_v19  ;;  %v674_v9 = vor.u32 %v673_v41, %v669_v22  ;;  %v2453_v22 = vld [vmem:[%s3258_s8 + $0x30] sm:$0xe] }
  0x96   : > { %1977 = vmatpush1.bf16.msra.mxu0 %v3046_v27  ;;  %1832 = vmatprep.subr.bf16.mxu1 %v3058_v29  ;;  %v466_v27 = vrot.slane %v2467_v8, 1  ;;  %v467_v29 = vrot.slane %v2468_v13, 1  ;;  %v2449_v8 = vld [vmem:[%s3258_s8 + $0x10] sm:$0xe]  ;;  %v2450_v13 = vld [vmem:[%s3258_s8 + $0x18] sm:$0xe] }
  0x97   : > { %1978 = vmatprep.subr.bf16.mxu0 %v3061_v30  ;;  %v3077_v30 = vld [vmem:[%s3289_s25 + $0x410] ss:$8 sps:$4 sm:$0xff]   ;;  %v692_v24 = vshll.u32 %v2496_v26, 16  ;;  %v2497_v41 = vcombine.low %v2449_v8, %v3519_v45  ;;  %v3112_v45 = vld [vmem:[%s3289_s25 + $0x460] ss:$8 sps:$4 sm:$0xff]  }
  0x98   : > { %v2517_v28 = vcombine.low %v466_v27, %v467_v29  ;;  %v3115_v27 = vld [vmem:[%s3289_s25 + $0x470] ss:$8 sps:$4 sm:$0xff]   ;;  %v2451_v29 = vld [vmem:[%s3258_s8 + $0x20] sm:$0xe] }
  0x99   : > { %1833 = vmatpush1.bf16.msra.mxu1 %v3056_v38  ;;  %v681_v38 = vor.u32 %v680_v42, %v676_v3  ;;  %v3114_v3 = vld [vmem:[%s3289_s25 + $0x464] ss:$8 sps:$4 sm:$0xff]   ;;  %v2498_v42 = vcombine.low %v2450_v13, %v3522_v46  ;;  %v3117_v46 = vld [vmem:[%s3289_s25 + $0x474] ss:$8 sps:$4 sm:$0xff]  }
  0x9a   : > { %1979 = vmatpush1.bf16.msra.mxu0 %v3059_v39  ;;  %1834 = vmatprep.subr.bf16.mxu1 %v3064_v40  ;;  %v685_v39 = vshll.u32 %v2495_v25, 16  ;;  %v2469_v40 = vcombine.low %v290_v32, %v3440_v56  ;;  %v694_v56 = vrot.slane %v692_v24, 1  ;;  %v3179_v32 = vmov 0  }
  0x9b   : > { %1980 = vmatprep.subr.bf16.mxu0 %v3067_v43  ;;  %v2470_v43 = vcombine.low %v291_v33, %v3443_v57  ;;  %v2531_v54 = vcombine.low %v674_v9, %v681_v38  ;;  %v721_v25 = vrot.slane %v2498_v42, 1  ;;  %v2499_v9 = vcombine.low %v2451_v29, %v3544_v16 }
  0x9c   : > { %v468_v57 = vrot.slane %v2469_v40, 1 }
  0x9d   : > { %1835 = vmatpush1.bf16.msra.mxu1 %v3062_v47  ;;  %v469_v60 = vrot.slane %v2470_v43, 1  ;;  %v3089_v47 = vld [vmem:[%s3289_s25 + $0x430] ss:$8 sps:$4 sm:$0xff]  }
  0x9e   : > { %1981 = vmatpush1.bf16.msra.mxu0 %v3065_v48  ;;  %2706 = vmatprep.subr.bf16.mxu1 %v3076_v63  ;;  %v292_v48 = vld [vmem:[%s3258_s8 + $0x30] sm:$0xe] }
  0x9f   : > { %2023 = vmatprep.subr.bf16.mxu0 %v3076_v63  ;;  %v2526_v63 = vcombine.low %v468_v57, %v469_v60  ;;  %v2471_v12 = vcombine.low %v292_v48, %v3480_v49 }
  0xa0   : > { %1837 = vmatmul.mubr.bf16.vlgmr.msra.gmra.mrb[0].mxu1 %v2508_v34  ;;  %v2521_v34 = vcombine.low %v3538_v10, %v3541_v15  ;;  %v687_v10 = vrot.slane %v685_v39, 1  ;;  %v690_v15 = vshrl.u32 %v2496_v26, 16 }
  0xa1   : > { %1983 = vmatmul.mubr.bf16.vlgmr.msra.gmra.mrb[0].mxu0 %v2512_v7  ;;  %2714 = vmatpush1.bf16.msra.mxu1 %v3074_v20  ;;  %v3105_v7 = vld [vmem:[%s3289_s25 + $0x454] ss:$8 sps:$4 sm:$0xff]   ;;  %v470_v49 = vrot.slane %v2471_v12, 1 }
  0xa2   : > { %2024 = vmatpush1.bf16.msra.mxu0 %v3074_v20  ;;  %2707 = vmatprep.subr.bf16.mxu1 %v3079_v21  ;;  %v688_v1 = vor.u32 %v687_v10, %v683_v59  ;;  %v695_v62 = vor.u32 %v694_v56, %v690_v15  ;;  %v2536_v20 = vcombine.low %v3486_v53, %v3493_v55 }
  0xa3   : > { %2025 = vmatprep.subr.bf16.mxu0 %v3079_v21  ;;  %1846 = vmatprep.mubr.bf16.mxu1 %v2518_v4  ;;  %v2501_v53 = vcombine.low %v2453_v22, %v3568_v36  ;;  %v2502_v55 = vcombine.low %v2454_v31, %v3571_v37  ;;  %v2535_v4 = vcombine.low %v470_v49, %v471_v50  ;;  %v720_v36 = vrot.slane %v2497_v41, 1 }
  0xa4   : > { %1992 = vmatprep.mubr.bf16.mxu0 %v2522_v23  ;;  %v2540_v21 = vcombine.low %v688_v1, %v695_v62  ;;  %v2539_v23 = vcombine.low %v3587_v0, %v3594_v14  ;;  %v2452_v0 = vld [vmem:[%s3258_s8 + $0x28] sm:$0xe]  ;;  %v2455_v14 = vld [vmem:[%s3258_s8 + $0x40] sm:$0xe] }
  0xa5   : > { %2715 = vmatpush1.bf16.msra.mxu1 %v3077_v30  ;;  %v724_v37 = vrot.slane %v2501_v53, 1  ;;  %v725_v26 = vrot.slane %v2502_v55, 1  ;;  %v2514_v33 = vcombine.low %v720_v36, %v721_v25  ;;  %v2500_v38 = vcombine.low %v2452_v0, %v3547_v17 }
  0xa6   : > { %2026 = vmatpush1.bf16.msra.mxu0 %v3077_v30  ;;  %2708 = vmatprep.subr.bf16.mxu1 %v3088_v5  ;;  %v2456_v30 = vld [vmem:[%s3258_s8 + $0x48] sm:$0xe]  ;;  %v2503_v39 = vcombine.low %v2455_v14, %v3597_v18 }
  0xa7   : > { %2027 = vmatprep.subr.bf16.mxu0 %v3088_v5  ;;  %v2532_v5 = vcombine.low %v724_v37, %v725_v26  ;;  %v2504_v24 = vcombine.low %v2456_v30, %v3600_v19  ;;  %v778_v37 = vld [vmem:[#allocation2 + $0x10] sm:$0xff] }
  0xa8   : > { %1847 = vmatmul.mubr.bf16.gmra.mrb[4].mxu1 %v2517_v28  ;;  %v722_v28 = vrot.slane %v2499_v9, 1  ;;  %v726_v40 = vrot.slane %v2503_v39, 1  ;;  %v787_v9 = vld [vmem:[#allocation2 + $0x58] sm:$0xff] }
  0xa9   : > { %1993 = vmatmul.mubr.bf16.gmra.mrb[4].mxu0 %v2521_v34  ;;  %2716 = vmatpush1.bf16.msra.mxu1 %v3086_v44  ;;  %v723_v34 = vrot.slane %v2500_v38, 1  ;;  %v727_v43 = vrot.slane %v2504_v24, 1 }
  0xaa   : > { %2028 = vmatpush1.bf16.msra.mxu0 %v3086_v44  ;;  %2709 = vmatprep.subr.bf16.mxu1 %v3091_v51 }
  0xab   : > { %2029 = vmatprep.subr.bf16.mxu0 %v3091_v51  ;;  %1856 = vmatprep.mubr.bf16.mxu1 %v2527_v52  ;;  %v2523_v44 = vcombine.low %v722_v28, %v723_v34  ;;  %v2541_v51 = vcombine.low %v726_v40, %v727_v43 }
  0xac   : > { %2002 = vmatprep.mubr.bf16.mxu0 %v2531_v54 }
  0xad   : > { %2717 = vmatpush1.bf16.msra.mxu1 %v3089_v47 }
  0xae   : > { %2030 = vmatpush1.bf16.msra.mxu0 %v3089_v47  ;;  %2710 = vmatprep.subr.bf16.mxu1 %v3102_v58 }
  0xaf   : > { %2031 = vmatprep.subr.bf16.mxu0 %v3102_v58 }
  0xb0   : > { %1857 = vmatmul.mubr.bf16.gmra.mrb[8].mxu1 %v2526_v63 }
  0xb1   : > { %2003 = vmatmul.mubr.bf16.gmra.mrb[8].mxu0 %v2530_v11  ;;  %2718 = vmatpush1.bf16.msra.mxu1 %v3100_v6 }
  0xb2   : > { %2032 = vmatpush1.bf16.msra.mxu0 %v3100_v6  ;;  %2711 = vmatprep.subr.bf16.mxu1 %v3105_v7 }
  0xb3   : > { %2033 = vmatprep.subr.bf16.mxu0 %v3105_v7  ;;  %1866 = vmatprep.mubr.bf16.mxu1 %v2536_v20 }
  0xb4   : > { %2012 = vmatprep.mubr.bf16.mxu0 %v2540_v21 }
  0xb5   : > { %2719 = vmatpush1.bf16.msra.mxu1 %v3103_v35 }
  0xb6   : > { %2034 = vmatpush1.bf16.msra.mxu0 %v3103_v35  ;;  %2712 = vmatprep.subr.bf16.mxu1 %v3114_v3  ;;  %v776_v35 = vld [vmem:[#allocation2] sm:$0xff] }
  0xb7   : > { %2035 = vmatprep.subr.bf16.mxu0 %v3114_v3  ;;  %v784_v3 = vld [vmem:[#allocation2 + $0x40] sm:$0xff] }
  0xb8   : > { %1867 = vmatmul.mubr.bf16.gmra.mrb[12].mxu1 %v2535_v4  ;;  %v777_v4 = vld [vmem:[#allocation2 + $0x8] sm:$0xff] }
  0xb9   : > { %2013 = vmatmul.mubr.bf16.gmra.mrb[12].mxu0 %v2539_v23  ;;  %2720 = vmatpush1.bf16.msra.mxu1 %v3112_v45 }
  0xba   : > { %2036 = vmatpush1.bf16.msra.mxu0 %v3112_v45  ;;  %2713 = vmatprep.subr.bf16.mxu1 %v3117_v46  ;;  %v785_v45 = vld [vmem:[#allocation2 + $0x48] sm:$0xff] }
  0xbb   : > { %2037 = vmatprep.subr.bf16.mxu0 %v3117_v46  ;;  %2055 = vmatprep.mubr.bf16.mxu0 %v3179_v32 }
  0xbc   : > { %2075 = vmatprep.mubr.bf16.mxu1 %v3179_v32 }
  0xbd   : > { %2721 = vmatpush1.bf16.msra.mxu1 %v3115_v27 }
  0xbe   : > { %2038 = vmatpush1.bf16.msra.mxu0 %v3115_v27  ;;  %v786_v27 = vld [vmem:[#allocation2 + $0x50] sm:$0xff] }
  0xc0   : > { %2076 = vmatmul.mubr.bf16.vlgmr.msra.gmra.mrb[16].mxu1 %v2532_v5 }
  0xc1   : > { %2056 = vmatmul.mubr.bf16.vlgmr.msra.gmra.mrb[0].mxu0 %v2514_v33  ;;  %2085 = vmatprep.mubr.bf16.mxu1 %v3179_v32  ;;  %v779_v33 = vld [vmem:[#allocation2 + $0x18] sm:$0xff] }
  0xc2   : > { %2065 = vmatprep.mubr.bf16.mxu0 %v3179_v32 }
  0xc8   : > { %2086 = vmatmul.mubr.bf16.gmra.mrb[20].mxu1 %v2541_v51 }
  0xc9   : > { %2066 = vmatmul.mubr.bf16.gmra.mrb[4].mxu0 %v2523_v44 }
 0x173   : > { %v1838_v16 = vpop.f32.mrb[0].mxu1 }
 0x174   : > { %v1840_v17 = vpop.f32.mrb[1].mxu1 }
 0x175   : > { %v1842_v52 = vpop.f32.mrb[2].mxu1 }
 0x176   : > { %v1844_v18 = vpop.f32.mrb[3].mxu1 }
 0x17b   : > { %v3660_v54 = vpop.f32.mrb[4].mxu1 }
 0x17c   : > { %v3662_v19 = vpop.f32.mrb[5].mxu1 }
 0x17d   : > { %v3664_v59 = vpop.f32.mrb[6].mxu1 }
 0x17e   : > { %v3666_v10 = vpop.f32.mrb[7].mxu1 }
 0x183   : > { %v1858_v15 = vpop.f32.mrb[8].mxu1 }
 0x184   : > { %v2004_v56 = vpop.f32.mrb[8].mxu0  ;;  %v1860_v60 = vpop.f32.mrb[9].mxu1 }
 0x185   : > { %v2730_v57 = vadd.f32 %v2004_v56, %v1858_v15  ;;  %v2006_v47 = vpop.f32.mrb[9].mxu0  ;;  %v1862_v61 = vpop.f32.mrb[10].mxu1 }
 0x186   : > { %v2732_v48 = vadd.f32 %v2006_v47, %v1860_v60  ;;  %v2008_v58 = vpop.f32.mrb[10].mxu0  ;;  %v1864_v62 = vpop.f32.mrb[11].mxu1  ;;  %v789_v47 = vld [vmem:[#allocation2 + $0x68] sm:$0xff] }
 0x187   : > { %v2734_v1 = vadd.f32 %v2008_v58, %v1862_v61  ;;  %v2010_v63 = vpop.f32.mrb[11].mxu0 }
 0x188   : > { %v2736_v11 = vadd.f32 %v2010_v63, %v1864_v62  ;;  %v790_v63 = vld [vmem:[#allocation2 + $0x70] sm:$0xff] }
 0x18b   : > { %v1868_v12 = vpop.f32.mrb[12].mxu1 }
 0x18c   : > { %v2014_v2 = vpop.f32.mrb[12].mxu0  ;;  %v1870_v7 = vpop.f32.mrb[13].mxu1 }
 0x18d   : > { %v2738_v6 = vadd.f32 %v2014_v2, %v1868_v12  ;;  %v2016_v8 = vpop.f32.mrb[13].mxu0  ;;  %v1872_v20 = vpop.f32.mrb[14].mxu1 }
 0x18e   : > { %v2740_v13 = vadd.f32 %v2016_v8, %v1870_v7  ;;  %v2018_v21 = vpop.f32.mrb[14].mxu0  ;;  %v1874_v31 = vpop.f32.mrb[15].mxu1 }
 0x18f   : > { %v3668_v22 = vadd.f32 %v2018_v21, %v1872_v20  ;;  %v2020_v49 = vpop.f32.mrb[15].mxu0  ;;  %v783_v20 = vld [vmem:[#allocation2 + $0x38] sm:$0xff] }
 0x190   : > { %v3670_v50 = vadd.f32 %v2020_v49, %v1874_v31 }
 0x193   : > { %v2077_v42 = vpop.f32.mrb[16].mxu1 }
 0x194   : > { %v2057_v41 = vpop.f32.mrb[0].mxu0  ;;  %v2731_v55 = vadd.f32 %v2730_v57, %v2077_v42  ;;  %v2079_v46 = vpop.f32.mrb[17].mxu1  ;;  %v781_v57 = vld [vmem:[#allocation2 + $0x28] sm:$0xff]  ;;  %v2177_v42 = vld [vmem:[%s3767_s3] sm:$0x3] (!%p2686_p10) }
 0x195   : > { %v2722_v53 = vadd.f32 %v2057_v41, %v1838_v16  ;;  %v2059_v23 = vpop.f32.mrb[1].mxu0  ;;  %v2733_v25 = vadd.f32 %v2732_v48, %v2079_v46  ;;  %v2081_v29 = vpop.f32.mrb[18].mxu1  ;;  %v780_v16 = vld [vmem:[#allocation2 + $0x20] sm:$0xff] }
 0x196   : > { %v2723_v36 = vadd.f32 %v2059_v23, %v1840_v17  ;;  %v2061_v26 = vpop.f32.mrb[2].mxu0  ;;  %v2104_v14 = vadd.f32 %v2731_v55, %v784_v3  ;;  %v2735_v32 = vadd.f32 %v2734_v1, %v2081_v29  ;;  %v2083_v38 = vpop.f32.mrb[19].mxu1  ;;  %v782_v1 = vld [vmem:[#allocation2 + $0x30] sm:$0xff]  ;;  %v2149_v3 = vld [vmem:[%s3766_s2] sm:$0x3] (!%p2686_p10) }
 0x197   : > { %v2096_v0 = vadd.f32 %v2722_v53, %v776_v35  ;;  %v2724_v30 = vadd.f32 %v2061_v26, %v1842_v52  ;;  %v2063_v5 = vpop.f32.mrb[3].mxu0  ;;  %v2105_v24 = vadd.f32 %v2733_v25, %v785_v45  ;;  %v2737_v34 = vadd.f32 %v2736_v11, %v2083_v38  ;;  %v788_v52 = vld [vmem:[#allocation2 + $0x60] sm:$0xff] }
 0x198   : > { %v2097_v39 = vadd.f32 %v2723_v36, %v777_v4  ;;  %v2725_v28 = vadd.f32 %v2063_v5, %v1844_v18  ;;  %2121 = vst [vmem:[#allocation2 + $0x40] sm:$0xff] %v2104_v14  ;;  %v2106_v43 = vadd.f32 %v2735_v32, %v786_v27 }
 0x199   : > { %2112 = vst [vmem:[#allocation2] sm:$0xff] %v2096_v0  ;;  %v2098_v40 = vadd.f32 %v2724_v30, %v778_v37  ;;  %2122 = vst.msk [vmem:[#allocation2 + $0x48] sm:$0xff] %vm2113_vm1, %v2105_v24  ;;  %v2107_v51 = vadd.f32 %v2737_v34, %v787_v9 }
 0x19a   : > { %2114 = vst.msk [vmem:[#allocation2 + $0x8] sm:$0xff] %vm2113_vm1, %v2097_v39  ;;  %v2099_v44 = vadd.f32 %v2725_v28, %v779_v33  ;;  %2123 = vst [vmem:[#allocation2 + $0x50] sm:$0xff] %v2106_v43 }
 0x19b   : > { %2115 = vst [vmem:[#allocation2 + $0x10] sm:$0xff] %v2098_v40  ;;  %2124 = vst.msk [vmem:[#allocation2 + $0x58] sm:$0xff] %vm2113_vm1, %v2107_v51  ;;  %v2087_v18 = vpop.f32.mrb[20].mxu1 }
 0x19c   : > { %2116 = vst.msk [vmem:[#allocation2 + $0x18] sm:$0xff] %vm2113_vm1, %v2099_v44  ;;  %v2067_v17 = vpop.f32.mrb[4].mxu0  ;;  %v2739_v56 = vadd.f32 %v2738_v6, %v2087_v18  ;;  %v2089_v48 = vpop.f32.mrb[21].mxu1  ;;  %v791_v6 = vld [vmem:[#allocation2 + $0x78] sm:$0xff] }
 0x19d   : > { %v2726_v15 = vadd.f32 %v2067_v17, %v3660_v54  ;;  %v2069_v60 = vpop.f32.mrb[5].mxu0  ;;  %v2741_v58 = vadd.f32 %v2740_v13, %v2089_v48  ;;  %v2091_v11 = vpop.f32.mrb[22].mxu1 }
 0x19e   : > { %v2727_v61 = vadd.f32 %v2069_v60, %v3662_v19  ;;  %v2071_v62 = vpop.f32.mrb[6].mxu0  ;;  %v2108_v2 = vadd.f32 %v2739_v56, %v788_v52  ;;  %v2743_v8 = vadd.f32 %v3668_v22, %v2091_v11  ;;  %v2093_v21 = vpop.f32.mrb[23].mxu1  ;;  %2132 = sbr.rel (%p2686_p10) target bundleno = 442 (0x1ba), region = 44 }
 0x19f   : > { %v2100_v12 = vadd.f32 %v2726_v15, %v780_v16  ;;  %v2728_v7 = vadd.f32 %v2071_v62, %v3664_v59  ;;  %v2073_v54 = vpop.f32.mrb[7].mxu0  ;;  %v2109_v49 = vadd.f32 %v2741_v58, %v789_v47  ;;  %v2745_v19 = vadd.f32 %v3670_v50, %v2093_v21  ;;  %v2141_v52 = vld [vmem:[#allocation2 + $0x40] sm:$0xff] (!%p2686_p10) }
 0x1a0   : > { %v2101_v31 = vadd.f32 %v2727_v61, %v781_v57  ;;  %v2729_v35 = vadd.f32 %v2073_v54, %v3666_v10  ;;  %2125 = vst [vmem:[#allocation2 + $0x60] sm:$0xff] %v2108_v2  ;;  %v2110_v41 = vadd.f32 %v2743_v8, %v790_v63  ;;  %v2151_v10 = vlaneseq (!%p2686_p10)  ;;  %v2133_v53 = vld [vmem:[#allocation2] sm:$0xff] (!%p2686_p10)  ;;  %v2142_v18 = vld [vmem:[#allocation2 + $0x48] sm:$0xff] (!%p2686_p10) }
 0x1a1   : > { %2117 = vst [vmem:[#allocation2 + $0x20] sm:$0xff] %v2100_v12  ;;  %v2102_v13 = vadd.f32 %v2728_v7, %v782_v1  ;;  %2126 = vst.msk [vmem:[#allocation2 + $0x68] sm:$0xff] %vm2113_vm1, %v2109_v49  ;;  %v2111_v22 = vadd.f32 %v2745_v19, %v791_v6  ;;  %v2134_v55 = vld [vmem:[#allocation2 + $0x8] sm:$0xff] (!%p2686_p10)  ;;  %v2143_v47 = vld [vmem:[#allocation2 + $0x50] sm:$0xff] (!%p2686_p10) }
 0x1a2   : > { %2118 = vst.msk [vmem:[#allocation2 + $0x28] sm:$0xff] %vm2113_vm1, %v2101_v31  ;;  %v2103_v59 = vadd.f32 %v2729_v35, %v783_v20  ;;  %2127 = vst [vmem:[#allocation2 + $0x70] sm:$0xff] %v2110_v41  ;;  %v2152_v50 = vshrl.u32 (!%p2686_p10), %v2151_v10, 7  ;;  %v2135_v45 = vld [vmem:[#allocation2 + $0x10] sm:$0xff] (!%p2686_p10)  ;;  %v2144_v48 = vld [vmem:[#allocation2 + $0x58] sm:$0xff] (!%p2686_p10) }
 0x1a3   : > { %2119 = vst [vmem:[#allocation2 + $0x30] sm:$0xff] %v2102_v13  ;;  %2128 = vst.msk [vmem:[#allocation2 + $0x78] sm:$0xff] %vm2113_vm1, %v2111_v22  ;;  %v2136_v46 = vld [vmem:[#allocation2 + $0x18] sm:$0xff] (!%p2686_p10) }
 0x1a4   : > { %2120 = vst.msk [vmem:[#allocation2 + $0x38] sm:$0xff] %vm2113_vm1, %v2103_v59  ;;  %v2153_v4 = vsub.s32 (!%p2686_p10), 0, %v2152_v50  ;;  %v2157_v23 = vsub.s32 (!%p2686_p10), 1, %v2152_v50 }
 0x1a6   : > { %v2154_v25 = vrot.slane %v2149_v3, %v2153_v4  ;;  %v2158_v37 = vrot.slane %v2149_v3, %v2157_v23  ;;  %v3693_v26 = vrot.slane %v2177_v42, %v2153_v4  ;;  %v3695_v27 = vrot.slane %v2177_v42, %v2157_v23 }
 0x1a7   : > { %v2145_v11 = vld [vmem:[#allocation2 + $0x60] sm:$0xff] }
 0x1a8   : > { %v2137_v36 = vld [vmem:[#allocation2 + $0x20] sm:$0xff]  ;;  %v2161_v30 = vmul.f32 %v2154_v25, %v2133_v53  ;;  %v2162_v32 = vmul.f32 %v2158_v37, %v2134_v55  ;;  %v2163_v33 = vmul.f32 %v2154_v25, %v2135_v45  ;;  %v2164_v5 = vmul.f32 %v2158_v37, %v2136_v46  ;;  %v2146_v12 = vld [vmem:[#allocation2 + $0x68] sm:$0xff] }
 0x1a9   : > { %v2138_v29 = vld [vmem:[#allocation2 + $0x28] sm:$0xff]  ;;  %v2165_v9 = vmul.f32 %v2154_v25, %v2137_v36  ;;  %v2169_v8 = vmul.f32 %v2154_v25, %v2141_v52  ;;  %v2170_v20 = vmul.f32 %v2158_v37, %v2142_v18  ;;  %v2147_v54 = vld [vmem:[#allocation2 + $0x70] sm:$0xff]  ;;  %v2171_v49 = vmul.f32 %v2154_v25, %v2143_v47 }
 0x1aa   : > { %v2139_v0 = vld [vmem:[#allocation2 + $0x30] sm:$0xff]  ;;  %v2166_v38 = vmul.f32 %v2158_v37, %v2138_v29  ;;  %v2189_v28 = vadd.f32 %v3693_v26, %v2161_v30  ;;  %v2190_v34 = vadd.f32 %v3695_v27, %v2162_v32  ;;  %v2191_v40 = vadd.f32 %v3693_v26, %v2163_v33  ;;  %v2148_v6 = vld [vmem:[#allocation2 + $0x78] sm:$0xff] }
 0x1ab   : > { %v2140_v14 = vld [vmem:[#allocation2 + $0x38] sm:$0xff]  ;;  %v2167_v39 = vmul.f32 %v2154_v25, %v2139_v0  ;;  %v2192_v43 = vadd.f32 %v3695_v27, %v2164_v5  ;;  %v2193_v44 = vadd.f32 %v3693_v26, %v2165_v9  ;;  %v2172_v35 = vmul.f32 %v2158_v37, %v2144_v48 }
 0x1ac   : > { %v2168_v24 = vmul.f32 %v2158_v37, %v2140_v14  ;;  %v2194_v51 = vadd.f32 %v3695_v27, %v2166_v38  ;;  %v2205_v15 = vmax.f32 %v2189_v28, 0.0  ;;  %v2206_v56 = vmax.f32 %v2190_v34, 0.0 }
 0x1ad   : > { %v2195_v16 = vadd.f32 %v3693_v26, %v2167_v39  ;;  %v2207_v57 = vmax.f32 %v2191_v40, 0.0  ;;  %v2208_v60 = vmax.f32 %v2192_v43, 0.0  ;;  %v2209_v58 = vmax.f32 %v2193_v44, 0.0 }
 0x1ae   : > { %v2196_v17 = vadd.f32 %v3695_v27, %v2168_v24  ;;  %v2210_v1 = vmax.f32 %v2194_v51, 0.0  ;;  %v2698_v2 = vpack.c.bf16 %v2206_v56, %v2205_v15  ;;  %v2197_v19 = vadd.f32 %v3693_v26, %v2169_v8 }
 0x1af   : > { %v2211_v62 = vmax.f32 %v2195_v16, 0.0  ;;  %v2699_v7 = vpack.c.bf16 %v2208_v60, %v2207_v57  ;;  %v2198_v13 = vadd.f32 %v3695_v27, %v2170_v20  ;;  %v2173_v41 = vmul.f32 %v2154_v25, %v2145_v11 }
 0x1b0   : > { %v2212_v63 = vmax.f32 %v2196_v17, 0.0  ;;  %v2700_v21 = vpack.c.bf16 %v2210_v1, %v2209_v58  ;;  %2288 = vst.msk [vmem:[%s3263_s13] sm:$0xff] %vm3707_vm4, %v2698_v2  ;;  %v2174_v59 = vmul.f32 %v2158_v37, %v2146_v12  ;;  %v2199_v22 = vadd.f32 %v3693_v26, %v2171_v49 }
 0x1b1   : > { %2289 = vst.msk [vmem:[%s3263_s13 + $0x8] sm:$0xff] %vm3707_vm4, %v2699_v7  ;;  %v2200_v10 = vadd.f32 %v3695_v27, %v2172_v35  ;;  %v2175_v50 = vmul.f32 %v2154_v25, %v2147_v54  ;;  %v2176_v3 = vmul.f32 %v2158_v37, %v2148_v6  ;;  %v2213_v42 = vmax.f32 %v2197_v19, 0.0 }
 0x1b2   : > { %v2701_v31 = vpack.c.bf16 %v2212_v63, %v2211_v62  ;;  %2290 = vst.msk [vmem:[%s3263_s13 + $0x10] sm:$0xff] %vm3707_vm4, %v2700_v21  ;;  %v2214_v53 = vmax.f32 %v2198_v13, 0.0  ;;  %v2201_v55 = vadd.f32 %v3693_v26, %v2173_v41  ;;  %v2202_v4 = vadd.f32 %v3695_v27, %v2174_v59 }
 0x1b3   : > { %v2215_v23 = vmax.f32 %v2199_v22, 0.0  ;;  %v2216_v45 = vmax.f32 %v2200_v10, 0.0  ;;  %v2203_v46 = vadd.f32 %v3693_v26, %v2175_v50  ;;  %v2204_v36 = vadd.f32 %v3695_v27, %v2176_v3 }
 0x1b4   : > { %2291 = vst.msk [vmem:[%s3263_s13 + $0x18] sm:$0xff] %vm3707_vm4, %v2701_v31  ;;  %v2702_v29 = vpack.c.bf16 %v2214_v53, %v2213_v42  ;;  %v2217_v0 = vmax.f32 %v2201_v55, 0.0  ;;  %v2218_v25 = vmax.f32 %v2202_v4, 0.0 }
 0x1b5   : > { %v2703_v14 = vpack.c.bf16 %v2216_v45, %v2215_v23  ;;  %v2219_v37 = vmax.f32 %v2203_v46, 0.0  ;;  %v2220_v30 = vmax.f32 %v2204_v36, 0.0 }
 0x1b6   : > { %2292 = vst.msk [vmem:[%s3263_s13 + $0x20] sm:$0xff] %vm3707_vm4, %v2702_v29  ;;  %v2704_v32 = vpack.c.bf16 %v2218_v25, %v2217_v0 }
 0x1b7   : > { %2293 = vst.msk [vmem:[%s3263_s13 + $0x28] sm:$0xff] %vm3707_vm4, %v2703_v14  ;;  %v2705_v33 = vpack.c.bf16 %v2220_v30, %v2219_v37 }
 0x1b8   : > { %2294 = vst.msk [vmem:[%s3263_s13 + $0x30] sm:$0xff] %vm3707_vm4, %v2704_v32 }
 0x1b9   : > { %2295 = vst.msk [vmem:[%s3263_s13 + $0x38] sm:$0xff] %vm3707_vm4, %v2705_v33 }
 0x1ba PF: > { %s14_s21 = sadd.s32 1, %s3176_s21   ;;  %s3771_s15 = smov %s3164_s18 }
 0x1bb   : > { %p11_p11 = scmp.ge.s32.totalorder %s14_s21, 26   ;;  %s3772_s16 = smov %s3168_s19 }
 0x1bc   : > { %s3773_s17 = smov %s3172_s20  ;;  %s3774_s18 = smov %s3778_s22 }
 0x1bd   : > { %s3775_s19 = smov %s3782_s23  ;;  %s3776_s20 = smov %s3786_s24 }
 0x1be   :  { %13 = sbr.rel (!%p11_p11) target bundleno = 4 (0x4), region = 77 }

// kernel: mixed_3c_forward.7
= control target key start
LH: loop header
LB: loop body
LE: loop exit
PB: predicated region body
PF: predicated region fallthrough
CT: control target
= control target key end

     0   :  { %s1281_s15 = smov 0   ;;  %s1283_s16 = smov 0   ;;  %s1638_s0 = inlined_call_operand.vmem [shape: bf16[2,6,10,10,256], index: 0, kind: input, shape index: {}]   ;;  %s1639_s1 = inlined_call_operand.vmem [shape: bf16[256,128], index: 1, kind: input, shape index: {}]   ;;  %s1640_s2 = inlined_call_operand.vmem [shape: f32[1,128], index: 2, kind: input, shape index: {}]   ;;  %s1641_s3 = inlined_call_operand.vmem [shape: f32[1,128], index: 3, kind: input, shape index: {}]   ;;  %s1642_s4 = inlined_call_operand.vmem [shape: bf16[2,4,8,8,128], index: 4, kind: output, shape index: {}]  }
   0x1   :  { %s1285_s17 = smov 0   ;;  %s1287_s18 = smov 0  }
   0x2   :  { %s1289_s19 = smov 0   ;;  %s1291_s20 = smov 0  }
   0x3   :  { %s1293_s21 = smov 0  }
   0x4 LB: > { %s26_s22 = sadd.s32 1, %s1242_s18  ;;  %s29_s23 = sadd.s32 1, %s1246_s19  ;;  %s1254_s21 = sphi %s1293_s21, %s14_s21   ;;  %s1250_s20 = sphi %s1291_s20, %s1652_s20   ;;  %s1246_s19 = sphi %s1289_s19, %s1651_s19   ;;  %s1242_s18 = sphi %s1287_s18, %s1650_s18   ;;  %s1238_s17 = sphi %s1285_s17, %s1649_s17   ;;  %s1234_s16 = sphi %s1283_s16, %s1648_s16   ;;  %s1230_s15 = sphi %s1281_s15, %s1647_s15  }
   0x5   : > { %p27_p0 = scmp.ge.s32.totalorder %s26_s22, 3  ;;  %p1009_p1 = scmp.ge.s32.totalorder %s1254_s21, 1 }
   0x6   : > { %p193_p2 = scmp.lt.s32.totalorder %s1254_s21, 25  ;;  %s33_s24 = sadd.s32 1, %s1250_s20 }
   0x7   : > { %s1654_s22 = smov (%p27_p0, %s26_s22), 0  ;;  %s1656_s23 = smov (!%p27_p0, %s29_s23), %s1246_s19 }
   0x8   : > { %p194_p3 = pnand %p1009_p1, %p193_p2  ;;  %p31_p4 = scmp.ge.s32.totalorder %s1656_s23, 4 }
   0x9   : > { %s228_s25 = sadd.s32 (!%p194_p3), %s1230_s15, %s1234_s16  ;;  %p229_p6 = scmp.lt.s32.totalorder (!%p194_p3), %s1238_s17, 1  ;;  %vm269_vm0 = vsmask.f32 (!%p194_p3), 3328  ;;  %vm270_vm1 = vsmask.f32 (!%p194_p3), 7440  ;;  %vm462_vm3 = vcmask (!%p194_p3), 1042432  }
   0xa   : > { %s1658_s23 = smov (%p31_p4, %s1656_s23), 0  ;;  %s1660_s24 = smov (!%p31_p4, %s33_s24), %s1250_s20 }
   0xb   : > { %p35_p5 = scmp.ge.s32.totalorder %s1660_s24, 2  ;;  %197 = sbr.rel (%p194_p3) target bundleno = 359 (0x167), region = 36  ;;  %vm1380_vm2 = vmor (!%p194_p3), %vm269_vm0, %vm270_vm1  ;;  %vm463_vm4 = vcmask (!%p194_p3), 1046532  }
   0xc   : > { %p231_p7 = scmp.lt.s32.totalorder (!%p194_p3), %s228_s25, 5  ;;  %p241_p8 = scmp.lt.s32.totalorder (!%p194_p3), %s1234_s16, 3  ;;  %vm1486_vm5 = vmor (!%p194_p3), %vm462_vm3, %vm463_vm4 }
   0xd   : > { %s1662_s24 = smov (%p35_p5, %s1660_s24), 0  ;;  %p1024_p9 = scmp.ne.s32.totalorder (!%p194_p3), %s1230_s15, 0 }
  0x12   : > { %s1664_s17 = smov (!%p229_p6, %s1238_s17), 1  ;;  %s1666_s25 = smov (!%p231_p7, %s228_s25), 5 }
  0x13   : > { %s1127_s26 = smul.u32 240, %s1664_s17  ;;  %s1012_s28 = sshll.u32 %s1664_s17, 5 }
  0x14   : > { %s1126_s27 = smul.u32 40, %s1666_s25  ;;  %s1668_s16 = smov (!%p241_p8, %s1234_s16), 3 }
  0x15   : > { %s1011_s5 = sshll.u32 %s1668_s16, 3 }
  0x16   : > { %s235_s29 = sadd.s32 %s1127_s26, %s1126_s27  ;;  %s245_s9 = sadd.s32 %s1012_s28, %s1011_s5 }
  0x17   : > { %s1010_s30 = sshll.u32 %s235_s29, 2  ;;  %s1013_s10 = sshll.u32 %s245_s9, 2 }
  0x18   : > { %s1334_s8 = scalar_lea.vmem %s1638_s0, %s1010_s30  ;;  %s1348_s13 = scalar_lea.vmem %s1642_s4, %s1013_s10 }
  0x19   : > { %v1337_v0 = vld [vmem:[%s1334_s8] sm:$0xff]  ;;  %v1340_v1 = vld [vmem:[%s1334_s8 + $0x10] sm:$0xff]  ;;  %v1353_v5 = vld [vmem:[%s1334_s8 + $0x8] sm:$0x11] }
  0x1a   : > { %v1343_v2 = vld [vmem:[%s1334_s8 + $0x20] sm:$0xff]  ;;  %v273_v3 = vshrl.u32 %v1337_v0, 16  ;;  %v276_v4 = vshll.u32 %v1337_v0, 16  ;;  %v287_v6 = vshrl.u32 %v1340_v1, 16  ;;  %v290_v7 = vshll.u32 %v1340_v1, 16  ;;  %v1366_v13 = vld [vmem:[%s1334_s8 + $0x30] sm:$0xff] }
  0x1b   : > { %v301_v8 = vshrl.u32 %v1343_v2, 16  ;;  %v1359_v9 = vld [vmem:[%s1334_s8 + $0x18] sm:$0x11]  ;;  %v304_v11 = vshll.u32 %v1343_v2, 16  ;;  %v1363_v12 = vld [vmem:[%s1334_s8 + $0x28] sm:$0x11] }
  0x1c   : > { %v275_v10 = vrot.slane %v273_v3, 4  ;;  %v278_v14 = vrot.slane %v276_v4, 5  ;;  %v282_v15 = vshll.u32 %v1353_v5, 16  ;;  %v1370_v16 = vld [vmem:[%s1334_s8 + $0x38] sm:$0x11]  ;;  %v289_v17 = vrot.slane %v287_v6, 4 }
  0x1d   : > { %v292_v18 = vrot.slane %v290_v7, 5  ;;  %v296_v19 = vshll.u32 %v1359_v9, 16  ;;  %v303_v20 = vrot.slane %v301_v8, 4  ;;  %v1374_v21 = vld [vmem:[%s1334_s8 + $0x40] sm:$0xff]  ;;  %v306_v24 = vrot.slane %v304_v11, 5  ;;  %v1397_v36 = vld [vmem:[%s1334_s8 + $0x50] sm:$0xff] }
  0x1e   : > { %v279_v22 = vor.u32 %v278_v14, %v275_v10  ;;  %v1376_v23 = vrot.slane %v282_v15, 5  ;;  %v310_v25 = vshll.u32 %v1363_v12, 16  ;;  %v315_v29 = vshrl.u32 %v1366_v13, 16  ;;  %v1389_v31 = vld [vmem:[%s1334_s8 + $0x48] sm:$0x11]  ;;  %v1403_v41 = vld [vmem:[%s1334_s8 + $0x60] sm:$0xff] }
  0x1f   : > { %v293_v27 = vor.u32 %v292_v18, %v289_v17  ;;  %v1384_v28 = vrot.slane %v296_v19, 5  ;;  %v318_v30 = vshll.u32 %v1366_v13, 16  ;;  %v307_v33 = vor.u32 %v306_v24, %v303_v20  ;;  %v1406_v42 = vld [vmem:[%s1334_s8 + $0x58] sm:$0x11]  ;;  %v1423_v51 = vld [vmem:[%s1334_s8 + $0x68] sm:$0x11] }
  0x20   : > { %v1391_v32 = vrot.slane %v279_v22, 4  ;;  %v1393_v34 = vrot.slane %v310_v25, 5  ;;  %v324_v35 = vshll.u32 %v1370_v16, 16  ;;  %v317_v38 = vrot.slane %v315_v29, 4  ;;  %v1432_v56 = vld [vmem:[%s1334_s8 + $0x70] sm:$0xff]  ;;  %v1437_v61 = vld [vmem:[%s1334_s8 + $0x80] sm:$0xff] }
  0x21   : > { %v1399_v37 = vrot.slane %v293_v27, 4  ;;  %v320_v39 = vrot.slane %v318_v30, 5  ;;  %v329_v40 = vshrl.u32 %v1374_v21, 16  ;;  %v1412_v44 = vrot.slane %v307_v33, 4  ;;  %v1440_v62 = vld [vmem:[%s1334_s8 + $0x78] sm:$0x11] }
  0x22   : > { %v285_v43 = vsel %vm1380_vm2, %v1391_v32, %v1376_v23  ;;  %v1414_v45 = vrot.slane %v324_v35, 5  ;;  %v332_v46 = vshll.u32 %v1374_v21, 16  ;;  %v338_v50 = vshll.u32 %v1389_v31, 16  ;;  %v1448_v14 = vld [vmem:[%s1334_s8 + $0x90] sm:$0xff]  ;;  %v1452_v20 = vld [vmem:[%s1334_s8 + $0x88] sm:$0x11] }
  0x23   : > { %v299_v47 = vsel %vm1380_vm2, %v1399_v37, %v1384_v28  ;;  %v321_v48 = vor.u32 %v320_v39, %v317_v38  ;;  %v331_v49 = vrot.slane %v329_v40, 4  ;;  %v313_v52 = vsel %vm1380_vm2, %v1412_v44, %v1393_v34  ;;  %v1458_v27 = vld [vmem:[%s1334_s8 + $0x98] sm:$0x11] }
  0x24   : > { %v334_v53 = vrot.slane %v332_v46, 5  ;;  %v343_v54 = vshrl.u32 %v1397_v36, 16  ;;  %v346_v55 = vshll.u32 %v1397_v36, 16  ;;  %v340_v58 = vrot.slane %v338_v50, 5 }
  0x25   : > { %v322_v57 = vrot.slane %v321_v48, 4  ;;  %v352_v59 = vshll.u32 %v1406_v42, 16  ;;  %v357_v60 = vshrl.u32 %v1403_v41, 16  ;;  %v360_v6 = vshll.u32 %v1403_v41, 16 }
  0x26   : > { %v335_v63 = vor.u32 %v334_v53, %v331_v49  ;;  %v345_v3 = vrot.slane %v343_v54, 4  ;;  %v348_v4 = vrot.slane %v346_v55, 5  ;;  %v366_v11 = vshll.u32 %v1423_v51, 16 }
  0x27   : > { %v327_v7 = vsel %vm1380_vm2, %v322_v57, %v1414_v45  ;;  %v354_v8 = vrot.slane %v352_v59, 5  ;;  %v359_v10 = vrot.slane %v357_v60, 4  ;;  %v362_v18 = vrot.slane %v360_v6, 5 }
  0x28   : > { %v336_v15 = vrot.slane %v335_v63, 4  ;;  %v349_v17 = vor.u32 %v348_v4, %v345_v3  ;;  %v371_v19 = vshrl.u32 %v1432_v56, 16  ;;  %v368_v22 = vrot.slane %v366_v11, 5  ;;  %v432_v63 = vld [vmem:[%s1334_s8] sm:$0xee] }
  0x29   : > { %v374_v23 = vshll.u32 %v1432_v56, 16  ;;  %v380_v24 = vshll.u32 %v1440_v62, 16  ;;  %v385_v25 = vshrl.u32 %v1437_v61, 16  ;;  %v363_v30 = vor.u32 %v362_v18, %v359_v10  ;;  %v433_v10 = vld [vmem:[%s1334_s8 + $0x10] sm:$0xee] }
  0x2a   : > { %v341_v28 = vsel %vm1380_vm2, %v336_v15, %v340_v58  ;;  %v350_v29 = vrot.slane %v349_v17, 4  ;;  %v373_v32 = vrot.slane %v371_v19, 4  ;;  %v388_v37 = vshll.u32 %v1437_v61, 16  ;;  %v434_v17 = vld [vmem:[%s1334_s8 + $0x20] sm:$0xee] }
  0x2b   : > { %v376_v33 = vrot.slane %v374_v23, 5  ;;  %v382_v34 = vrot.slane %v380_v24, 5  ;;  %v387_v35 = vrot.slane %v385_v25, 4  ;;  %v364_v39 = vrot.slane %v363_v30, 4  ;;  %v436_v18 = vld [vmem:[%s1334_s8 + $0x40] sm:$0xee] }
  0x2c   : > { %v355_v38 = vsel %vm1380_vm2, %v350_v29, %v354_v8  ;;  %v394_v40 = vshll.u32 %v1452_v20, 16  ;;  %v399_v44 = vshrl.u32 %v1448_v14, 16  ;;  %v390_v46 = vrot.slane %v388_v37, 5  ;;  %v438_v24 = vld [vmem:[%s1334_s8 + $0x60] sm:$0xee] }
  0x2d   : > { %v377_v45 = vor.u32 %v376_v33, %v373_v32  ;;  %v402_v48 = vshll.u32 %v1448_v14, 16  ;;  %v408_v49 = vshll.u32 %v1458_v27, 16  ;;  %v369_v50 = vsel %vm1380_vm2, %v364_v39, %v368_v22  ;;  %v439_v29 = vld [vmem:[%s1334_s8 + $0x70] sm:$0xee]  ;;  %v440_v33 = vld [vmem:[%s1334_s8 + $0x80] sm:$0xee] }
  0x2e   : > { %v396_v53 = vrot.slane %v394_v40, 5  ;;  %v401_v54 = vrot.slane %v399_v44, 4  ;;  %v1472_v55 = vmax.bf16 %v285_v43, %v1337_v0  ;;  %v391_v58 = vor.u32 %v390_v46, %v387_v35 }
  0x2f   : > { %v378_v57 = vrot.slane %v377_v45, 4  ;;  %v404_v59 = vrot.slane %v402_v48, 5  ;;  %v410_v60 = vrot.slane %v408_v49, 5  ;;  %v423_v3 = vmax.bf16 %v299_v47, %v1340_v1 }
  0x30   : > { %v424_v4 = vmax.bf16 %v313_v52, %v1343_v2  ;;  %v425_v6 = vmax.bf16 %v327_v7, %v1366_v13  ;;  %v426_v8 = vmax.bf16 %v341_v28, %v1374_v21  ;;  %v392_v43 = vrot.slane %v391_v58, 4  ;;  %v435_v21 = vld [vmem:[%s1334_s8 + $0x30] sm:$0xee] }
  0x31   : > { %v383_v0 = vsel %vm1380_vm2, %v378_v57, %v382_v34  ;;  %v405_v11 = vor.u32 %v404_v59, %v401_v54  ;;  %v427_v15 = vmax.bf16 %v355_v38, %v1397_v36  ;;  %v428_v2 = vmax.bf16 %v369_v50, %v1403_v41  ;;  %v437_v41 = vld [vmem:[%s1334_s8 + $0x50] sm:$0xee] }
  0x32   : > { %v429_v13 = vmax.bf16 %v383_v0, %v1432_v56  ;;  %v1014_v47 = vrot.slane %v432_v63, 9  ;;  %v467_v52 = vrot.slane %v1353_v5, 5  ;;  %v397_v7 = vsel %vm1380_vm2, %v392_v43, %v396_v53  ;;  %v441_v34 = vld [vmem:[%s1334_s8 + $0x90] sm:$0xee] }
  0x33   : > { %v406_v36 = vrot.slane %v405_v11, 4  ;;  %v1015_v19 = vrot.slane %v433_v10, 9  ;;  %v471_v22 = vrot.slane %v1359_v9, 5  ;;  %v430_v23 = vmax.bf16 %v397_v7, %v1437_v61 }
  0x34   : > { %v468_v56 = vsel %vm1486_vm5, %v1014_v47, %v467_v52  ;;  %v1016_v25 = vrot.slane %v434_v17, 9  ;;  %v475_v5 = vrot.slane %v1363_v12, 5  ;;  %v1017_v32 = vrot.slane %v435_v21, 9 }
  0x35   : > { %v411_v28 = vsel %vm1380_vm2, %v406_v36, %v410_v60  ;;  %v472_v30 = vsel %vm1486_vm5, %v1015_v19, %v471_v22  ;;  %v479_v9 = vrot.slane %v1370_v16, 5  ;;  %v1018_v37 = vrot.slane %v436_v18, 9 }
  0x36   : > { %v431_v61 = vmax.bf16 %v411_v28, %v1448_v14  ;;  %v476_v35 = vsel %vm1486_vm5, %v1016_v25, %v475_v5  ;;  %v483_v12 = vrot.slane %v1389_v31, 5  ;;  %v1019_v38 = vrot.slane %v437_v41, 9 }
  0x37   : > { %v480_v26 = vsel %vm1486_vm5, %v1017_v32, %v479_v9  ;;  %v487_v39 = vrot.slane %v1406_v42, 5  ;;  %v1020_v40 = vrot.slane %v438_v24, 9  ;;  %v491_v14 = vrot.slane %v1423_v51, 5 }
  0x38   : > { %v484_v16 = vsel %vm1486_vm5, %v1018_v37, %v483_v12  ;;  %v1021_v44 = vrot.slane %v439_v29, 9  ;;  %v495_v45 = vrot.slane %v1440_v62, 5  ;;  %v1022_v48 = vrot.slane %v440_v33, 9 }
  0x39   : > { %v488_v46 = vsel %vm1486_vm5, %v1019_v38, %v487_v39  ;;  %v499_v31 = vrot.slane %v1452_v20, 5  ;;  %v1023_v49 = vrot.slane %v441_v34, 9  ;;  %v492_v50 = vsel %vm1486_vm5, %v1020_v40, %v491_v14 }
  0x3a   : > { %v496_v42 = vsel %vm1486_vm5, %v1021_v44, %v495_v45  ;;  %v503_v53 = vrot.slane %v1458_v27, 5  ;;  %v515_v51 = vmax.bf16 %v468_v56, %v1472_v55  ;;  %v516_v54 = vmax.bf16 %v472_v30, %v423_v3 }
  0x3b   : > { %v500_v62 = vsel %vm1486_vm5, %v1022_v48, %v499_v31  ;;  %v517_v57 = vmax.bf16 %v476_v35, %v424_v4  ;;  %v518_v58 = vmax.bf16 %v480_v26, %v425_v6  ;;  %v519_v59 = vmax.bf16 %v484_v16, %v426_v8 }
  0x3c   : > { %v504_v20 = vsel %vm1486_vm5, %v1023_v49, %v503_v53  ;;  %v520_v60 = vmax.bf16 %v488_v46, %v427_v15  ;;  %v521_v63 = vmax.bf16 %v492_v50, %v428_v2  ;;  %v522_v10 = vmax.bf16 %v496_v42, %v429_v13 }
  0x3d   : > { %v523_v0 = vmax.bf16 %v500_v62, %v430_v23  ;;  %v524_v43 = vmax.bf16 %v504_v20, %v431_v61  ;;  %v525_v11 = vmax.bf16 %v516_v54, %v515_v51  ;;  %v526_v17 = vmax.bf16 %v517_v57, %v516_v54 }
  0x3e   : > { %v527_v27 = vmax.bf16 %v518_v58, %v517_v57  ;;  %v528_v21 = vmax.bf16 %v519_v59, %v518_v58  ;;  %v529_v55 = vmax.bf16 %v520_v60, %v519_v59  ;;  %v530_v47 = vmax.bf16 %v521_v63, %v520_v60 }
  0x3f   : > { %v531_v52 = vmax.bf16 %v522_v10, %v521_v63  ;;  %v532_v7 = vmax.bf16 %v523_v0, %v522_v10  ;;  %v533_v3 = vmax.bf16 %v525_v11, %v517_v57  ;;  %v534_v4 = vmax.bf16 %v526_v17, %v518_v58  ;;  %560 = sbr.rel (%p1024_p9) target bundleno = 75 (0x4b), region = 40 }
  0x40   : > { %v535_v6 = vmax.bf16 %v527_v27, %v519_v59  ;;  %v536_v36 = vmax.bf16 %v528_v21, %v520_v60  ;;  %v1536_v1 = vmax.bf16 %v529_v55, %v521_v63  ;;  %v1538_v8 = vmax.bf16 %v530_v47, %v522_v10 }
  0x41   : > { %v1540_v15 = vmax.bf16 %v531_v52, %v523_v0  ;;  %v1542_v2 = vmax.bf16 %v532_v7, %v524_v43  ;;  %v541_v13 = vunpack.c.l.bf16 %v533_v3  ;;  %v542_v18 = vunpack.c.h.bf16 %v533_v3 }
  0x42   : > { %v543_v19 = vunpack.c.l.bf16 %v534_v4  ;;  %v544_v22 = vunpack.c.h.bf16 %v534_v4  ;;  %v545_v23 = vunpack.c.l.bf16 %v535_v6  ;;  %v546_v41 = vunpack.c.h.bf16 %v535_v6 }
  0x43   : > { %v547_v24 = vunpack.c.l.bf16 %v536_v36  ;;  %v548_v56 = vunpack.c.h.bf16 %v536_v36  ;;  %v549_v25 = vunpack.c.l.bf16 %v1536_v1  ;;  %v550_v5 = vunpack.c.h.bf16 %v1536_v1  ;;  %561 = vst [vmem:[#allocation2] sm:$0xff] (!%p1024_p9), %v541_v13  ;;  %562 = vst [vmem:[#allocation2 + $0x8] sm:$0xff] (!%p1024_p9), %v542_v18 }
  0x44   : > { %v551_v28 = vunpack.c.l.bf16 %v1538_v8  ;;  %v552_v29 = vunpack.c.h.bf16 %v1538_v8  ;;  %v553_v30 = vunpack.c.l.bf16 %v1540_v15  ;;  %v554_v32 = vunpack.c.h.bf16 %v1540_v15  ;;  %563 = vst [vmem:[#allocation2 + $0x10] sm:$0xff] (!%p1024_p9), %v543_v19  ;;  %564 = vst [vmem:[#allocation2 + $0x18] sm:$0xff] (!%p1024_p9), %v544_v22 }
  0x45   : > { %v555_v9 = vunpack.c.l.bf16 %v1542_v2  ;;  %v556_v61 = vunpack.c.h.bf16 %v1542_v2  ;;  %565 = vst [vmem:[#allocation2 + $0x20] sm:$0xff] (!%p1024_p9), %v545_v23  ;;  %566 = vst [vmem:[#allocation2 + $0x28] sm:$0xff] (!%p1024_p9), %v546_v41 }
  0x46   : > { %567 = vst [vmem:[#allocation2 + $0x30] sm:$0xff] %v547_v24  ;;  %568 = vst [vmem:[#allocation2 + $0x38] sm:$0xff] %v548_v56 }
  0x47   : > { %569 = vst [vmem:[#allocation2 + $0x40] sm:$0xff] %v549_v25  ;;  %570 = vst [vmem:[#allocation2 + $0x48] sm:$0xff] %v550_v5 }
  0x48   : > { %571 = vst [vmem:[#allocation2 + $0x50] sm:$0xff] %v551_v28  ;;  %572 = vst [vmem:[#allocation2 + $0x58] sm:$0xff] %v552_v29 }
  0x49   : > { %573 = vst [vmem:[#allocation2 + $0x60] sm:$0xff] %v553_v30  ;;  %574 = vst [vmem:[#allocation2 + $0x68] sm:$0xff] %v554_v32 }
  0x4a   : > { %575 = vst [vmem:[#allocation2 + $0x70] sm:$0xff] %v555_v9  ;;  %576 = vst [vmem:[#allocation2 + $0x78] sm:$0xff] %v556_v61 }
  0x4b PF: > { %p1025_p10 = scmp.eq.s32.totalorder %s1230_s15, 0 }
  0x4d   : > { %580 = sbr.rel (%p1025_p10) target bundleno = 90 (0x5a), region = 44 }
  0x4e   : > { %v589_v48 = vld [vmem:[#allocation2 + $0x40] sm:$0xff] (!%p1025_p10)  ;;  %v590_v42 = vld [vmem:[#allocation2 + $0x48] sm:$0xff] (!%p1025_p10) }
  0x4f   : > { %v581_v33 = vld [vmem:[#allocation2] sm:$0xff] (!%p1025_p10)  ;;  %v582_v34 = vld [vmem:[#allocation2 + $0x8] sm:$0xff] (!%p1025_p10)  ;;  %v605_v50 = vmax.f32 (!%p1025_p10), %v589_v48, %v549_v25  ;;  %v591_v53 = vld [vmem:[#allocation2 + $0x50] sm:$0xff] (!%p1025_p10)  ;;  %v606_v62 = vmax.f32 (!%p1025_p10), %v590_v42, %v550_v5 }
  0x50   : > { %v583_v35 = vld [vmem:[#allocation2 + $0x10] sm:$0xff] (!%p1025_p10)  ;;  %v597_v37 = vmax.f32 (!%p1025_p10), %v581_v33, %v541_v13  ;;  %v598_v12 = vmax.f32 (!%p1025_p10), %v582_v34, %v542_v18  ;;  %v584_v38 = vld [vmem:[#allocation2 + $0x18] sm:$0xff] (!%p1025_p10)  ;;  %v607_v54 = vmax.f32 (!%p1025_p10), %v591_v53, %v551_v28  ;;  %v593_v58 = vld [vmem:[#allocation2 + $0x60] sm:$0xff] (!%p1025_p10) }
  0x51   : > { %v599_v26 = vmax.f32 (!%p1025_p10), %v583_v35, %v543_v19  ;;  %v585_v39 = vld [vmem:[#allocation2 + $0x20] sm:$0xff] (!%p1025_p10)  ;;  %v586_v40 = vld [vmem:[#allocation2 + $0x28] sm:$0xff] (!%p1025_p10)  ;;  %v600_v16 = vmax.f32 (!%p1025_p10), %v584_v38, %v544_v22  ;;  %v592_v51 = vld [vmem:[#allocation2 + $0x58] sm:$0xff] (!%p1025_p10)  ;;  %621 = vst [vmem:[#allocation2 + $0x40] sm:$0xff] (!%p1025_p10), %v605_v50  ;;  %v609_v60 = vmax.f32 (!%p1025_p10), %v593_v58, %v553_v30 }
  0x52   : > { %v601_v14 = vmax.f32 (!%p1025_p10), %v585_v39, %v545_v23  ;;  %v602_v44 = vmax.f32 (!%p1025_p10), %v586_v40, %v546_v41  ;;  %v587_v45 = vld [vmem:[#allocation2 + $0x30] sm:$0xff] (!%p1025_p10)  ;;  %v588_v46 = vld [vmem:[#allocation2 + $0x38] sm:$0xff] (!%p1025_p10)  ;;  %613 = vst [vmem:[#allocation2] sm:$0xff] (!%p1025_p10), %v597_v37  ;;  %614 = vst [vmem:[#allocation2 + $0x8] sm:$0xff] (!%p1025_p10), %v598_v12  ;;  %v608_v57 = vmax.f32 (!%p1025_p10), %v592_v51, %v552_v29 }
  0x53   : > { %615 = vst [vmem:[#allocation2 + $0x10] sm:$0xff] (!%p1025_p10), %v599_v26  ;;  %v603_v31 = vmax.f32 (!%p1025_p10), %v587_v45, %v547_v24  ;;  %v604_v49 = vmax.f32 (!%p1025_p10), %v588_v46, %v548_v56  ;;  %616 = vst [vmem:[#allocation2 + $0x18] sm:$0xff] (!%p1025_p10), %v600_v16  ;;  %v594_v20 = vld [vmem:[#allocation2 + $0x68] sm:$0xff] (!%p1025_p10)  ;;  %v595_v59 = vld [vmem:[#allocation2 + $0x70] sm:$0xff] (!%p1025_p10) }
  0x54   : > { %617 = vst [vmem:[#allocation2 + $0x20] sm:$0xff] %v601_v14  ;;  %618 = vst [vmem:[#allocation2 + $0x28] sm:$0xff] %v602_v44  ;;  %v610_v63 = vmax.f32 %v594_v20, %v554_v32  ;;  %v611_v10 = vmax.f32 %v595_v59, %v555_v9  ;;  %v596_v0 = vld [vmem:[#allocation2 + $0x78] sm:$0xff] }
  0x55   : > { %619 = vst [vmem:[#allocation2 + $0x30] sm:$0xff] %v603_v31  ;;  %620 = vst [vmem:[#allocation2 + $0x38] sm:$0xff] %v604_v49  ;;  %v612_v43 = vmax.f32 %v596_v0, %v556_v61 }
  0x56   : > { %622 = vst [vmem:[#allocation2 + $0x48] sm:$0xff] %v606_v62  ;;  %623 = vst [vmem:[#allocation2 + $0x50] sm:$0xff] %v607_v54 }
  0x57   : > { %624 = vst [vmem:[#allocation2 + $0x58] sm:$0xff] %v608_v57  ;;  %625 = vst [vmem:[#allocation2 + $0x60] sm:$0xff] %v609_v60 }
  0x58   : > { %626 = vst [vmem:[#allocation2 + $0x68] sm:$0xff] %v610_v63  ;;  %627 = vst [vmem:[#allocation2 + $0x70] sm:$0xff] %v611_v10 }
  0x59   : > { %628 = vst [vmem:[#allocation2 + $0x78] sm:$0xff] %v612_v43 }
  0x5a PF: > { %p1026_p11 = scmp.ne.s32.totalorder %s1230_s15, 2 }
  0x5b   : > { %v1184_v11 = vld [vmem:[%s1639_s1 + $0x40] sm:$0xff] (!%p1026_p11)   ;;  %v1186_v27 = vld [vmem:[%s1639_s1 + $0x48] sm:$0xff] (!%p1026_p11)   ;;  %v1188_v55 = vld [vmem:[%s1639_s1 + $0x50] sm:$0xff] (!%p1026_p11)  }
  0x5c   : > { %632 = sbr.rel (%p1026_p11) target bundleno = 359 (0x167), region = 48  ;;  %v1185_v17 = vld [vmem:[%s1639_s1] sm:$0xff] (!%p1026_p11)   ;;  %1070 = vmatprep.subr.bf16.mxu0 (!%p1026_p11), %v1184_v11  ;;  %1110 = vmatprep.subr.bf16.mxu1 (!%p1026_p11), %v1184_v11  ;;  %v1187_v21 = vld [vmem:[%s1639_s1 + $0x8] sm:$0xff] (!%p1026_p11)   ;;  %v1189_v47 = vld [vmem:[%s1639_s1 + $0x10] sm:$0xff] (!%p1026_p11)  }
  0x5d   : > { %1071 = vmatpush3.bf16.msra.mxu0 (!%p1026_p11), %v1185_v17  ;;  %1118 = vmatpush3.bf16.msra.mxu1 (!%p1026_p11), %v1185_v17  ;;  %v1190_v52 = vld [vmem:[%s1639_s1 + $0x58] sm:$0xff] (!%p1026_p11)   ;;  %v1192_v3 = vld [vmem:[%s1639_s1 + $0x60] sm:$0xff] (!%p1026_p11)   ;;  %v1194_v6 = vld [vmem:[%s1639_s1 + $0x68] sm:$0xff] (!%p1026_p11)  }
  0x5e   : > { %1072 = vmatprep.subr.bf16.mxu0 (!%p1026_p11), %v1186_v27  ;;  %1111 = vmatprep.subr.bf16.mxu1 (!%p1026_p11), %v1186_v27  ;;  %v1191_v7 = vld [vmem:[%s1639_s1 + $0x18] sm:$0xff] (!%p1026_p11)   ;;  %v1193_v4 = vld [vmem:[%s1639_s1 + $0x20] sm:$0xff] (!%p1026_p11)   ;;  %v642_v8 = vld [vmem:[#allocation2 + $0x48] sm:$0xff] (!%p1026_p11) }
  0x5f   : > { %v634_v36 = vld [vmem:[#allocation2 + $0x8] sm:$0xff] (!%p1026_p11)  ;;  %v644_v2 = vld [vmem:[#allocation2 + $0x58] sm:$0xff] (!%p1026_p11)  ;;  %v1196_v19 = vld [vmem:[%s1639_s1 + $0x70] sm:$0xff] (!%p1026_p11)  }
  0x60   : > { %v636_v1 = vld [vmem:[#allocation2 + $0x18] sm:$0xff] (!%p1026_p11)  ;;  %v654_v13 = vpack.c.bf16 (!%p1026_p11), %v644_v2, %v642_v8  ;;  %v1195_v18 = vld [vmem:[%s1639_s1 + $0x28] sm:$0xff] (!%p1026_p11)   ;;  %v1197_v22 = vld [vmem:[%s1639_s1 + $0x30] sm:$0xff] (!%p1026_p11)  }
  0x61   : > { %1073 = vmatpush3.bf16.msra.mxu0 (!%p1026_p11), %v1187_v21  ;;  %1119 = vmatpush3.bf16.msra.mxu1 (!%p1026_p11), %v1187_v21  ;;  %v650_v15 = vpack.c.bf16 (!%p1026_p11), %v636_v1, %v634_v36  ;;  %v1198_v23 = vld [vmem:[%s1639_s1 + $0x78] sm:$0xff] (!%p1026_p11)   ;;  %v633_v24 = vld [vmem:[#allocation2] sm:$0xff] (!%p1026_p11)  ;;  %v635_v56 = vld [vmem:[#allocation2 + $0x10] sm:$0xff] (!%p1026_p11) }
  0x62   : > { %1074 = vmatprep.subr.bf16.mxu0 (!%p1026_p11), %v1188_v55  ;;  %1112 = vmatprep.subr.bf16.mxu1 (!%p1026_p11), %v1188_v55  ;;  %v1199_v41 = vld [vmem:[%s1639_s1 + $0x38] sm:$0xff] (!%p1026_p11)   ;;  %v641_v25 = vld [vmem:[#allocation2 + $0x40] sm:$0xff] (!%p1026_p11)  ;;  %v643_v5 = vld [vmem:[#allocation2 + $0x50] sm:$0xff] (!%p1026_p11)  ;;  %v649_v9 = vpack.c.bf16 (!%p1026_p11), %v635_v56, %v633_v24 }
  0x63   : > { %817 = vmatprep.mubr.bf16.mxu0 %v650_v15  ;;  %833 = vmatprep.mubr.bf16.mxu1 %v654_v13  ;;  %v638_v28 = vld [vmem:[#allocation2 + $0x28] sm:$0xff]  ;;  %v640_v29 = vld [vmem:[#allocation2 + $0x38] sm:$0xff]  ;;  %v653_v61 = vpack.c.bf16 %v643_v5, %v641_v25  ;;  %v637_v35 = vld [vmem:[#allocation2 + $0x20] sm:$0xff] }
  0x64   : > { %v646_v30 = vld [vmem:[#allocation2 + $0x68] sm:$0xff]  ;;  %v648_v32 = vld [vmem:[#allocation2 + $0x78] sm:$0xff]  ;;  %v652_v33 = vpack.c.bf16 %v640_v29, %v638_v28  ;;  %v639_v37 = vld [vmem:[#allocation2 + $0x30] sm:$0xff] }
  0x65   : > { %1075 = vmatpush3.bf16.msra.mxu0 %v1189_v47  ;;  %1120 = vmatpush3.bf16.msra.mxu1 %v1189_v47  ;;  %v656_v34 = vpack.c.bf16 %v648_v32, %v646_v30  ;;  %v645_v12 = vld [vmem:[#allocation2 + $0x60] sm:$0xff]  ;;  %v647_v26 = vld [vmem:[#allocation2 + $0x70] sm:$0xff]  ;;  %v651_v38 = vpack.c.bf16 %v639_v37, %v637_v35 }
  0x66   : > { %1076 = vmatprep.subr.bf16.mxu0 %v1190_v52  ;;  %1113 = vmatprep.subr.bf16.mxu1 %v1190_v52  ;;  %v655_v39 = vpack.c.bf16 %v647_v26, %v645_v12  ;;  %v1043_v44 = vld [vmem:[%s1640_s2] ss:$0 sm:$0xff] }
  0x67   : > { %v1044_v50 = vld [vmem:[%s1641_s3] ss:$0 sm:$0xff] }
  0x69   : > { %1077 = vmatpush3.bf16.msra.mxu0 %v1191_v7  ;;  %1121 = vmatpush3.bf16.msra.mxu1 %v1191_v7 }
  0x6a   : > { %1078 = vmatprep.subr.bf16.mxu0 %v1192_v3  ;;  %1114 = vmatprep.subr.bf16.mxu1 %v1192_v3 }
  0x6d   : > { %1079 = vmatpush3.bf16.msra.mxu0 %v1193_v4  ;;  %1122 = vmatpush3.bf16.msra.mxu1 %v1193_v4 }
  0x6e   : > { %1080 = vmatprep.subr.bf16.mxu0 %v1194_v6  ;;  %1115 = vmatprep.subr.bf16.mxu1 %v1194_v6 }
  0x71   : > { %1081 = vmatpush3.bf16.msra.mxu0 %v1195_v18  ;;  %1123 = vmatpush3.bf16.msra.mxu1 %v1195_v18 }
  0x72   : > { %1082 = vmatprep.subr.bf16.mxu0 %v1196_v19  ;;  %1116 = vmatprep.subr.bf16.mxu1 %v1196_v19 }
  0x75   : > { %1083 = vmatpush3.bf16.msra.mxu0 %v1197_v22  ;;  %1124 = vmatpush3.bf16.msra.mxu1 %v1197_v22 }
  0x76   : > { %1084 = vmatprep.subr.bf16.mxu0 %v1198_v23  ;;  %1117 = vmatprep.subr.bf16.mxu1 %v1198_v23 }
  0x79   : > { %1085 = vmatpush3.bf16.msra.mxu0 %v1199_v41  ;;  %1125 = vmatpush3.bf16.msra.mxu1 %v1199_v41 }
  0x7c   : > { %818 = vmatmul.mubr.bf16.vlgmr.msra.gmra.mrb[0].mxu0 %v649_v9  ;;  %834 = vmatmul.mubr.bf16.vlgmr.msra.gmra.mrb[0].mxu1 %v653_v61 }
  0x7d   : > { %825 = vmatprep.mubr.bf16.mxu0 %v652_v33  ;;  %841 = vmatprep.mubr.bf16.mxu1 %v656_v34 }
  0x84   : > { %826 = vmatmul.mubr.bf16.gmra.mrb[4].mxu0 %v651_v38  ;;  %842 = vmatmul.mubr.bf16.gmra.mrb[4].mxu1 %v655_v39 }
 0x14f   : > { %v1086_v40 = vpop.f32.mrb[0].mxu0  ;;  %v1098_v16 = vpop.f32.mrb[0].mxu1 }
 0x150   : > { %v1087_v14 = vpop.f32.mrb[1].mxu0  ;;  %v1099_v45 = vpop.f32.mrb[1].mxu1 }
 0x151   : > { %v1088_v46 = vadd.f32 %v1087_v14, %v1086_v40  ;;  %v1100_v48 = vadd.f32 %v1099_v45, %v1098_v16  ;;  %v1089_v31 = vpop.f32.mrb[2].mxu0  ;;  %v1101_v49 = vpop.f32.mrb[2].mxu1 }
 0x152   : > { %v1090_v42 = vpop.f32.mrb[3].mxu0  ;;  %v1102_v53 = vpop.f32.mrb[3].mxu1 }
 0x153   : > { %v857_v51 = vmul.f32 %v1088_v46, %v1043_v44  ;;  %v861_v62 = vmul.f32 %v1100_v48, %v1043_v44  ;;  %v1091_v54 = vadd.f32 %v1090_v42, %v1089_v31  ;;  %v1103_v57 = vadd.f32 %v1102_v53, %v1101_v49 }
 0x155   : > { %v872_v58 = vadd.f32 %v1044_v50, %v857_v51  ;;  %v876_v20 = vadd.f32 %v1044_v50, %v861_v62  ;;  %v858_v59 = vmul.f32 %v1091_v54, %v1043_v44  ;;  %v862_v60 = vmul.f32 %v1103_v57, %v1043_v44 }
 0x157   : > { %v873_v63 = vadd.f32 %v1044_v50, %v858_v59  ;;  %v877_v10 = vadd.f32 %v1044_v50, %v862_v60  ;;  %v1092_v0 = vpop.f32.mrb[4].mxu0  ;;  %v1104_v43 = vpop.f32.mrb[4].mxu1  ;;  %v880_v11 = vmax.f32 %v872_v58, 0.0  ;;  %v884_v17 = vmax.f32 %v876_v20, 0.0 }
 0x158   : > { %v1093_v27 = vpop.f32.mrb[5].mxu0  ;;  %v1105_v21 = vpop.f32.mrb[5].mxu1 }
 0x159   : > { %v881_v55 = vmax.f32 %v873_v63, 0.0  ;;  %v885_v47 = vmax.f32 %v877_v10, 0.0  ;;  %v1094_v52 = vadd.f32 %v1093_v27, %v1092_v0  ;;  %v1106_v7 = vadd.f32 %v1105_v21, %v1104_v43  ;;  %v1095_v3 = vpop.f32.mrb[6].mxu0  ;;  %v1107_v4 = vpop.f32.mrb[6].mxu1 }
 0x15a   : > { %v1096_v6 = vpop.f32.mrb[7].mxu0  ;;  %v1108_v36 = vpop.f32.mrb[7].mxu1 }
 0x15b   : > { %v1050_v1 = vpack.c.bf16 %v881_v55, %v880_v11  ;;  %v1060_v8 = vpack.c.bf16 %v885_v47, %v884_v17  ;;  %v859_v15 = vmul.f32 %v1094_v52, %v1043_v44  ;;  %v863_v2 = vmul.f32 %v1106_v7, %v1043_v44 }
 0x15c   : > { %v1097_v13 = vadd.f32 %v1096_v6, %v1095_v3  ;;  %v1109_v18 = vadd.f32 %v1108_v36, %v1107_v4 }
 0x15d   : > { %1051 = vst [vmem:[%s1348_s13] sm:$0xff] %v1050_v1   ;;  %1068 = vst [vmem:[%s1348_s13 + $0x10] sm:$0xff] %v1060_v8   ;;  %v874_v19 = vadd.f32 %v1044_v50, %v859_v15  ;;  %v878_v22 = vadd.f32 %v1044_v50, %v863_v2 }
 0x15e   : > { %v860_v23 = vmul.f32 %v1097_v13, %v1043_v44  ;;  %v864_v41 = vmul.f32 %v1109_v18, %v1043_v44 }
 0x15f   : > { %v882_v25 = vmax.f32 %v874_v19, 0.0  ;;  %v886_v5 = vmax.f32 %v878_v22, 0.0 }
 0x160   : > { %v875_v24 = vadd.f32 %v1044_v50, %v860_v23  ;;  %v879_v56 = vadd.f32 %v1044_v50, %v864_v41 }
 0x162   : > { %v883_v28 = vmax.f32 %v875_v24, 0.0  ;;  %v887_v29 = vmax.f32 %v879_v56, 0.0 }
 0x164   : > { %v1055_v30 = vpack.c.bf16 %v883_v28, %v882_v25  ;;  %v1065_v32 = vpack.c.bf16 %v887_v29, %v886_v5 }
 0x166   : > { %1067 = vst [vmem:[%s1348_s13 + $0x8] sm:$0xff] %v1055_v30   ;;  %1069 = vst [vmem:[%s1348_s13 + $0x18] sm:$0xff] %v1065_v32  }
 0x167 PF: > { %s14_s21 = sadd.s32 1, %s1254_s21   ;;  %s1647_s15 = smov %s1242_s18 }
 0x168   : > { %p11_p12 = scmp.ge.s32.totalorder %s14_s21, 26   ;;  %s1648_s16 = smov %s1246_s19 }
 0x169   : > { %s1649_s17 = smov %s1250_s20  ;;  %s1650_s18 = smov %s1654_s22 }
 0x16a   : > { %s1651_s19 = smov %s1658_s23  ;;  %s1652_s20 = smov %s1662_s24 }
 0x16b   :  { %13 = sbr.rel (!%p11_p12) target bundleno = 4 (0x4), region = 78 }

</bundles_post_ra>
